<compile_context>
chip_gen: v6e
topology: v6e:2x2x1
jax: 0.10.0
libtpu: 0.0.40
codegen_flags: <defaults>
</compile_context>

<pallas_src>
import functools
import math

import jax
import jax.numpy as jnp
from jax import lax
from jax.experimental import pallas as pl
from jax.experimental.pallas import tpu as pltpu


def _round_up(x, m):
    return (x + m - 1) // m * m


def _conv_kernel_sizes(inputsize):
    _, H, _ = inputsize
    return (H // 8, H // 10, 2)


def _final_spatial(inputsize):
    _, H, _ = inputsize
    k1, k2, k3 = _conv_kernel_sizes(inputsize)
    s = (H - k1 + 1) // 2
    s = (s - k2 + 1) // 2
    s = (s - k3 + 1) // 2
    return s


# ---------------------------------------------------------------------------
# Conv (valid) + bias + ReLU: tap-reduction kernel, one image per grid step.
# ---------------------------------------------------------------------------
def _conv_relu_kernel(x_ref, w_ref, b_ref, o_ref, *, kh, kw, oh, ow):
    """x:(1,H,W,Cin)  w:(kh,kw,Cin,Cout)  b:(1,Cout)  o:(1,oh,ow,Cout).

    Output row i is accumulated over the kh*kw taps with small 2D matmuls
    (ow, Cin) @ (Cin, Cout); the tap shift is a plain VMEM slice, so the input
    is never duplicated in HBM (no im2col)."""
    cout = o_ref.shape[-1]

    def row(i, carry):
        acc = jnp.zeros((ow, cout), jnp.float32)
        for ki in range(kh):
            for kj in range(kw):
                patch = x_ref[0, i + ki, pl.ds(kj, ow), :]          # (ow, Cin)
                acc = acc + jnp.dot(patch, w_ref[ki, kj],
                                    preferred_element_type=jnp.float32)
        acc = jnp.maximum(acc + b_ref[...], 0.0)                    # bias + ReLU (f32)
        o_ref[0, i] = acc.astype(o_ref.dtype)
        return carry

    lax.fori_loop(0, oh, row, 0, unroll=(oh <= 8))


def conv2d_relu(x_nhwc, w4, bias, kh, kw):
    """Valid conv + bias + ReLU.  Output is cropped to even H/W: the following
    2x2 floor max-pool discards the odd last row/col anyway, so this is
    semantics-preserving and keeps the pool's lane-merge reshape exact."""
    B, H, W, Cin = x_nhwc.shape
    Cout = w4.shape[-1]
    oh = ((H - kh + 1) // 2) * 2
    ow = ((W - kw + 1) // 2) * 2
    return pl.pallas_call(
        functools.partial(_conv_relu_kernel, kh=kh, kw=kw, oh=oh, ow=ow),
        out_shape=jax.ShapeDtypeStruct((B, oh, ow, Cout), jnp.bfloat16),
        grid=(B,),
        in_specs=[
            pl.BlockSpec((1, H, W, Cin), lambda b: (b, 0, 0, 0)),
            pl.BlockSpec((kh, kw, Cin, Cout), lambda b: (0, 0, 0, 0)),
            pl.BlockSpec((1, Cout), lambda b: (0, 0)),
        ],
        out_specs=pl.BlockSpec((1, oh, ow, Cout), lambda b: (b, 0, 0, 0)),
        compiler_params=pltpu.CompilerParams(dimension_semantics=("parallel",)),
        cost_estimate=pl.CostEstimate(
            flops=2 * B * oh * ow * Cin * Cout * kh * kw,
            transcendentals=0,
            bytes_accessed=(x_nhwc.size * 2 + w4.size * 2 + bias.size * 4
                            + B * oh * ow * Cout * 2)),
    )(x_nhwc, w4, bias)


# ---------------------------------------------------------------------------
# 2x2 / stride-2 max pool, single-input, lane-dense.
# ---------------------------------------------------------------------------
def _maxpool2_kernel(x_ref, o_ref):
    """x:(1, 2*POH, POW, 2C)  o:(1, POH, POW, C).
    H-pair max = two row loads; W-pair max = two aligned lane-half slices."""
    C = o_ref.shape[-1]
    poh = o_ref.shape[1]

    def row(p, carry):
        a = jnp.maximum(x_ref[0, 2 * p], x_ref[0, 2 * p + 1])       # (POW, 2C)
        o_ref[0, p] = jnp.maximum(a[:, :C], a[:, C:])                # (POW, C)
        return carry

    lax.fori_loop(0, poh, row, 0, unroll=(poh <= 8))


def maxpool2(x_nhwc):
    B, H, W, C = x_nhwc.shape
    assert H % 2 == 0 and W % 2 == 0 and C % 128 == 0
    POH, POW = H // 2, W // 2
    # Free metadata reshape: adjacent W pairs become the upper/lower lane halves.
    xp = x_nhwc.reshape(B, H, POW, 2 * C)
    itemsize = x_nhwc.dtype.itemsize
    return pl.pallas_call(
        _maxpool2_kernel,
        out_shape=jax.ShapeDtypeStruct((B, POH, POW, C), x_nhwc.dtype),
        grid=(B,),
        in_specs=[pl.BlockSpec((1, H, POW, 2 * C), lambda b: (b, 0, 0, 0))],
        out_specs=pl.BlockSpec((1, POH, POW, C), lambda b: (b, 0, 0, 0)),
        compiler_params=pltpu.CompilerParams(dimension_semantics=("parallel",)),
        cost_estimate=pl.CostEstimate(
            flops=3 * B * POH * POW * C,
            transcendentals=0,
            bytes_accessed=(x_nhwc.size + B * POH * POW * C) * itemsize),
    )(xp)


# ---------------------------------------------------------------------------
# Fused fc1(+relu) -> fc2(+relu) -> task head (intermediates stay on-chip).
# ---------------------------------------------------------------------------
def _fc_head_kernel(x_ref, w1_ref, b1_ref, w2_ref, b2_ref, wh_ref, bh_ref, o_ref):
    h = jnp.dot(x_ref[...], w1_ref[...], preferred_element_type=jnp.float32)
    h = jnp.maximum(h + b1_ref[...], 0.0)                                   # fc1
    h = jnp.dot(h.astype(jnp.bfloat16), w2_ref[...],
                preferred_element_type=jnp.float32)
    h = jnp.maximum(h + b2_ref[...], 0.0)                                   # fc2
    o = jnp.dot(h.astype(jnp.bfloat16), wh_ref[...],
                preferred_element_type=jnp.float32)
    o_ref[...] = o + bh_ref[...]                                            # head


def fc_head(xf, fc_p, head_p, ncls):
    B, flat = xf.shape
    w1, b1, w2, b2 = fc_p['w1'], fc_p['b1'], fc_p['w2'], fc_p['b2']
    wh, bh = head_p['w'], head_p['b']
    Hp, Cp = w1.shape[1], wh.shape[1]
    # >=2 grid steps for realistic batches (v7x dual TensorCore); single block
    # for tiny batches to keep the sublane block dim a full/aligned extent.
    if B <= 8:
        tb = B
    else:
        tb = min(128, _round_up((B + 1) // 2, 8))

    def const_spec(shape):
        # Grid-invariant weight blocks: single-buffered to halve weight VMEM.
        return pl.BlockSpec(shape, lambda i: (0,) * len(shape),
                            pipeline_mode=pl.Buffered(1))

    flops = 2 * B * (flat * Hp + Hp * Hp + Hp * Cp)
    bytes_accessed = (xf.size * 2 + w1.size * 2 + w2.size * 2 + wh.size * 2
                      + (b1.size + b2.size + bh.size) * 4 + B * Cp * 4)
    # TODO(synk): for very large flat (>~8k) split fc1 over a K grid with an f32
    # VMEM accumulator so w1 never needs to be VMEM-resident in one piece (v7x).
    out = pl.pallas_call(
        _fc_head_kernel,
        out_shape=jax.ShapeDtypeStruct((B, Cp), jnp.float32),
        grid=(pl.cdiv(B, tb),),
        in_specs=[
            pl.BlockSpec((tb, flat), lambda i: (i, 0)),
            const_spec((flat, Hp)), const_spec((1, Hp)),
            const_spec((Hp, Hp)), const_spec((1, Hp)),
            const_spec((Hp, Cp)), const_spec((1, Cp)),
        ],
        out_specs=pl.BlockSpec((tb, Cp), lambda i: (i, 0)),
        compiler_params=pltpu.CompilerParams(
            dimension_semantics=("parallel",),
            vmem_limit_bytes=64 * 1024 * 1024),
        cost_estimate=pl.CostEstimate(flops=flops, transcendentals=0,
                                      bytes_accessed=bytes_accessed),
    )(xf, w1, b1, w2, b2, wh, bh)
    return out[:, :ncls]


# ---------------------------------------------------------------------------
# Parameters: raw (PyTorch layout) init + one-time kernel-ready prep
# ---------------------------------------------------------------------------
def init_params(key, inputsize, nhid, list_ncls):
    """Raw parameters in PyTorch layout (OIHW convs, (out,in) linears)."""
    Cin, H, W = inputsize
    k1, k2, k3 = _conv_kernel_sizes(inputsize)
    s = _final_spatial(inputsize)
    flat = 256 * s * s

    def uni(k, shape, fan_in):
        bound = 1.0 / math.sqrt(fan_in)
        return jax.random.uniform(k, shape, jnp.float32, -bound, bound)

    keys = jax.random.split(key, 12 + 2 * len(list_ncls))
    params = {
        'c1_w': uni(keys[0], (64, Cin, k1, k1), Cin * k1 * k1),
        'c1_b': uni(keys[1], (64,), Cin * k1 * k1),
        'c2_w': uni(keys[2], (128, 64, k2, k2), 64 * k2 * k2),
        'c2_b': uni(keys[3], (128,), 64 * k2 * k2),
        'c3_w': uni(keys[4], (256, 128, k3, k3), 128 * k3 * k3),
        'c3_b': uni(keys[5], (256,), 128 * k3 * k3),
        'fc1_w': uni(keys[6], (nhid, flat), flat),
        'fc1_b': uni(keys[7], (nhid,), flat),
        'fc2_w': uni(keys[8], (nhid, nhid), nhid),
        'fc2_b': uni(keys[9], (nhid,), nhid),
        'heads': [],
    }
    for t, ncls in enumerate(list_ncls):
        hw = uni(keys[10 + 2 * t], (ncls, nhid), nhid)
        hb = uni(keys[11 + 2 * t], (ncls,), nhid)
        params['heads'].append((hw, hb))
    return params


def prepare_params(raw, inputsize, nhid):
    """One-time weight prep: (kh,kw,Cin,Cout) conv tensors, bf16 cast, lane
    padding (conv1 Cout 64->128, conv2 Cin to match), fc flatten-order fold."""
    s = _final_spatial(inputsize)

    def prep_conv(w, b, cin_pad=None, cout_pad=None):
        Cout, Ci, kh, kw = w.shape
        cin_p = cin_pad if cin_pad is not None else Ci
        cout_p = cout_pad if cout_pad is not None else Cout
        w4 = jnp.transpose(w, (2, 3, 1, 0)).astype(jnp.bfloat16)   # (kh,kw,Cin,Cout)
        w_full = jnp.zeros((kh, kw, cin_p, cout_p), jnp.bfloat16)
        w_full = w_full.at[:, :, :Ci, :Cout].set(w4)
        b_full = jnp.zeros((1, cout_p), jnp.float32).at[0, :Cout].set(
            b.astype(jnp.float32))
        return {'w': w_full, 'b': b_full}

    # conv1 output padded to 128 lanes (zero channels); conv2's extra input rows
    # are zero so results are unchanged while conv1/pool1 stores stay lane-dense.
    c1_cout_pad = _round_up(raw['c1_w'].shape[0], 128)

    Hp = _round_up(nhid, 128)
    c_feat = raw['fc1_w'].shape[1] // (s * s)
    # Fold PyTorch's NCHW flatten order into fc1's rows (kernel flattens NHWC).
    w1 = raw['fc1_w'].reshape(nhid, c_feat, s, s)
    w1 = jnp.transpose(w1, (2, 3, 1, 0)).reshape(s * s * c_feat, nhid)
    fc = {
        'w1': jnp.zeros((s * s * c_feat, Hp), jnp.bfloat16)
              .at[:, :nhid].set(w1.astype(jnp.bfloat16)),
        'b1': jnp.zeros((1, Hp), jnp.float32).at[0, :nhid].set(raw['fc1_b']),
        'w2': jnp.zeros((Hp, Hp), jnp.bfloat16)
              .at[:nhid, :nhid].set(raw['fc2_w'].T.astype(jnp.bfloat16)),
        'b2': jnp.zeros((1, Hp), jnp.float32).at[0, :nhid].set(raw['fc2_b']),
    }
    heads = []
    for hw, hb in raw['heads']:
        ncls = hw.shape[0]
        Cp = _round_up(ncls, 128)
        heads.append({
            'w': jnp.zeros((Hp, Cp), jnp.bfloat16)
                 .at[:nhid, :ncls].set(hw.T.astype(jnp.bfloat16)),
            'b': jnp.zeros((1, Cp), jnp.float32).at[0, :ncls].set(hb),
        })
    return {'c1': prep_conv(raw['c1_w'], raw['c1_b'], cout_pad=c1_cout_pad),
            'c2': prep_conv(raw['c2_w'], raw['c2_b'], cin_pad=c1_cout_pad),
            'c3': prep_conv(raw['c3_w'], raw['c3_b']),
            'fc': fc, 'heads': heads}


# ---------------------------------------------------------------------------
# ModelSPG.forward equivalent (eval mode)
# ---------------------------------------------------------------------------
def model_spg_forward(params, x_nchw, *, idx_task, ksizes, list_ncls):
    k1, k2, k3 = ksizes
    # TODO(synk): fold the NCHW->NHWC transpose into the conv1 input index_map
    # (or require NHWC at the API boundary); it is the smallest tensor here.
    x = jnp.transpose(x_nchw, (0, 2, 3, 1)).astype(jnp.bfloat16)     # NCHW -> NHWC
    x = maxpool2(conv2d_relu(x, params['c1']['w'], params['c1']['b'], k1, k1))
    x = maxpool2(conv2d_relu(x, params['c2']['w'], params['c2']['b'], k2, k2))
    x = maxpool2(conv2d_relu(x, params['c3']['w'], params['c3']['b'], k3, k3))
    B = x.shape[0]
    xf = x.reshape(B, -1)        # NHWC flatten; fc1 rows pre-permuted to match
    logits = fc_head(xf, params['fc'], params['heads'][idx_task],
                     ncls=list_ncls[idx_task])                       # fc1+fc2+head
    # TODO(synk): compute_importance / hessian / gradient_norm / modify_grads are
    # training-time autograd + SPG gradient-masking utilities, not forward ops.
    misc = {'reg': jnp.float32(0.0)}
    return logits, misc


# ---------------------------------------------------------------------------
# Plain-JAX f32 reference of the same forward (validation only)
# ---------------------------------------------------------------------------
def reference_forward(raw, x_nchw, idx_task):
    def conv(x, w, b):
        y = jax.lax.conv_general_dilated(
            x, w, window_strides=(1, 1), padding='VALID',
            dimension_numbers=('NCHW', 'OIHW', 'NCHW'))
        return jax.nn.relu(y + b[None, :, None, None])

    def pool(x):
        B, C, H, W = x.shape
        x = x[:, :, :H // 2 * 2, :W // 2 * 2]
        return x.reshape(B, C, H // 2, 2, W // 2, 2).max(axis=(3, 5))

    x = x_nchw.astype(jnp.float32)
    x = pool(conv(x, raw['c1_w'], raw['c1_b']))
    x = pool(conv(x, raw['c2_w'], raw['c2_b']))
    x = pool(conv(x, raw['c3_w'], raw['c3_b']))
    x = x.reshape(x.shape[0], -1)
    x = jax.nn.relu(x @ raw['fc1_w'].T + raw['fc1_b'])
    x = jax.nn.relu(x @ raw['fc2_w'].T + raw['fc2_b'])
    hw, hb = raw['heads'][idx_task]
    return x @ hw.T + hb


if __name__ == "__main__":
    key = jax.random.PRNGKey(0)
    k_param, k_x = jax.random.split(key)

    inputsize = (3, 16, 16)   # (C, H, W) -> c1 kernel 2, c2 kernel 1, c3 kernel 2
    nhid = 32
    list_ncls = (10, 10)
    batch = 2
    idx_task = 0

    raw = init_params(k_param, inputsize, nhid, list_ncls)
    params = prepare_params(raw, inputsize, nhid)
    x = jax.random.normal(k_x, (batch,) + inputsize, jnp.float32)

    fwd = jax.jit(functools.partial(
        model_spg_forward, idx_task=idx_task,
        ksizes=_conv_kernel_sizes(inputsize), list_ncls=list_ncls))
    logits, misc = fwd(params, x)
    jax.block_until_ready(logits)

    assert logits.shape == (batch, list_ncls[idx_task])
    assert bool(jnp.all(jnp.isfinite(logits)))

    # Validate against the plain-JAX f32 reference (generous bf16 tolerance).
    ref = reference_forward(raw, x, idx_task)
    err = float(jnp.max(jnp.abs(logits.astype(jnp.float32) - ref)))
    scale = float(jnp.max(jnp.abs(ref)))
    assert err <= 0.05 + 0.05 * scale, (err, scale)

    print("KERNEL_OK")
</pallas_src>

<mosaic_0001>
module attributes {stable_mosaic.version = 11 : i64} {
  func.func @_conv_relu_kernel(%arg0: i32, %arg1: memref<1x16x16x3xbf16, #tpu.memory_space<vmem>>, %arg2: memref<2x2x3x128xbf16, #tpu.memory_space<vmem>>, %arg3: memref<1x128xf32, #tpu.memory_space<vmem>>, %arg4: memref<1x14x14x128xbf16, #tpu.memory_space<vmem>>) attributes {dimension_semantics = [#tpu.dimension_semantics<parallel>], iteration_bounds = array<i64: 2>, scalar_prefetch = 0 : i64, scratch_operands = 0 : i64, tpu.core_type = #tpu.core_type<tc>, window_params = [{transform_indices = @transform_0, window_bounds = array<i64: 1, 16, 16, 3>}, {pipeline_mode = #tpu.pipeline_mode<synchronous>, transform_indices = @transform_1, window_bounds = array<i64: 2, 2, 3, 128>}, {pipeline_mode = #tpu.pipeline_mode<synchronous>, transform_indices = @transform_2, window_bounds = array<i64: 1, 128>}, {transform_indices = @transform_3, window_bounds = array<i64: 1, 14, 14, 128>}]} {
    %c0_i32 = arith.constant 0 : i32
    %c14_i32 = arith.constant 14 : i32
    %0 = arith.addi %c0_i32, %c14_i32 : i32
    %c1_i32 = arith.constant 1 : i32
    scf.for %arg5 = %c0_i32 to %0 step %c1_i32  : i32 {
      %cst = arith.constant 0.000000e+00 : f32
      %1 = vector.broadcast %cst : f32 to vector<14x128xf32>
      %c0_i32_1 = arith.constant 0 : i32
      %2 = arith.addi %arg5, %c0_i32_1 : i32
      %c0 = arith.constant 0 : index
      %3 = arith.index_cast %2 : i32 to index
      %c0_2 = arith.constant 0 : index
      %c0_3 = arith.constant 0 : index
      %4 = vector.load %arg1[%c0, %3, %c0_2, %c0_3] : memref<1x16x16x3xbf16, #tpu.memory_space<vmem>>, vector<1x1x14x3xbf16>
      %5 = vector.shape_cast %4 : vector<1x1x14x3xbf16> to vector<14x3xbf16>
      %c0_4 = arith.constant 0 : index
      %c0_5 = arith.constant 0 : index
      %c0_6 = arith.constant 0 : index
      %c0_7 = arith.constant 0 : index
      %6 = vector.load %arg2[%c0_4, %c0_5, %c0_6, %c0_7] : memref<2x2x3x128xbf16, #tpu.memory_space<vmem>>, vector<1x1x3x128xbf16>
      %7 = vector.shape_cast %6 : vector<1x1x3x128xbf16> to vector<3x128xbf16>
      %cst_8 = arith.constant dense<0.000000e+00> : vector<14x128xf32>
      %8 = tpu.matmul %5, %7, %cst_8 {dimension_numbers = #tpu.dot_dimension_numbers<[1], [0], [0], [1], [0, 0, 1, 1], [], []>} : vector<14x3xbf16>, vector<3x128xbf16>, vector<14x128xf32> -> vector<14x128xf32>
      %9 = arith.addf %1, %8 : vector<14x128xf32>
      %c0_i32_9 = arith.constant 0 : i32
      %10 = arith.addi %arg5, %c0_i32_9 : i32
      %c0_10 = arith.constant 0 : index
      %11 = arith.index_cast %10 : i32 to index
      %c1 = arith.constant 1 : index
      %c0_11 = arith.constant 0 : index
      %12 = vector.load %arg1[%c0_10, %11, %c1, %c0_11] : memref<1x16x16x3xbf16, #tpu.memory_space<vmem>>, vector<1x1x14x3xbf16>
      %13 = vector.shape_cast %12 : vector<1x1x14x3xbf16> to vector<14x3xbf16>
      %c0_12 = arith.constant 0 : index
      %c1_13 = arith.constant 1 : index
      %c0_14 = arith.constant 0 : index
      %c0_15 = arith.constant 0 : index
      %14 = vector.load %arg2[%c0_12, %c1_13, %c0_14, %c0_15] : memref<2x2x3x128xbf16, #tpu.memory_space<vmem>>, vector<1x1x3x128xbf16>
      %15 = vector.shape_cast %14 : vector<1x1x3x128xbf16> to vector<3x128xbf16>
      %cst_16 = arith.constant dense<0.000000e+00> : vector<14x128xf32>
      %16 = tpu.matmul %13, %15, %cst_16 {dimension_numbers = #tpu.dot_dimension_numbers<[1], [0], [0], [1], [0, 0, 1, 1], [], []>} : vector<14x3xbf16>, vector<3x128xbf16>, vector<14x128xf32> -> vector<14x128xf32>
      %17 = arith.addf %9, %16 : vector<14x128xf32>
      %c1_i32_17 = arith.constant 1 : i32
      %18 = arith.addi %arg5, %c1_i32_17 : i32
      %c0_18 = arith.constant 0 : index
      %19 = arith.index_cast %18 : i32 to index
      %c0_19 = arith.constant 0 : index
      %c0_20 = arith.constant 0 : index
      %20 = vector.load %arg1[%c0_18, %19, %c0_19, %c0_20] : memref<1x16x16x3xbf16, #tpu.memory_space<vmem>>, vector<1x1x14x3xbf16>
      %21 = vector.shape_cast %20 : vector<1x1x14x3xbf16> to vector<14x3xbf16>
      %c1_21 = arith.constant 1 : index
      %c0_22 = arith.constant 0 : index
      %c0_23 = arith.constant 0 : index
      %c0_24 = arith.constant 0 : index
      %22 = vector.load %arg2[%c1_21, %c0_22, %c0_23, %c0_24] : memref<2x2x3x128xbf16, #tpu.memory_space<vmem>>, vector<1x1x3x128xbf16>
      %23 = vector.shape_cast %22 : vector<1x1x3x128xbf16> to vector<3x128xbf16>
      %cst_25 = arith.constant dense<0.000000e+00> : vector<14x128xf32>
      %24 = tpu.matmul %21, %23, %cst_25 {dimension_numbers = #tpu.dot_dimension_numbers<[1], [0], [0], [1], [0, 0, 1, 1], [], []>} : vector<14x3xbf16>, vector<3x128xbf16>, vector<14x128xf32> -> vector<14x128xf32>
      %25 = arith.addf %17, %24 : vector<14x128xf32>
      %c1_i32_26 = arith.constant 1 : i32
      %26 = arith.addi %arg5, %c1_i32_26 : i32
      %c0_27 = arith.constant 0 : index
      %27 = arith.index_cast %26 : i32 to index
      %c1_28 = arith.constant 1 : index
      %c0_29 = arith.constant 0 : index
      %28 = vector.load %arg1[%c0_27, %27, %c1_28, %c0_29] : memref<1x16x16x3xbf16, #tpu.memory_space<vmem>>, vector<1x1x14x3xbf16>
      %29 = vector.shape_cast %28 : vector<1x1x14x3xbf16> to vector<14x3xbf16>
      %c1_30 = arith.constant 1 : index
      %c1_31 = arith.constant 1 : index
      %c0_32 = arith.constant 0 : index
      %c0_33 = arith.constant 0 : index
      %30 = vector.load %arg2[%c1_30, %c1_31, %c0_32, %c0_33] : memref<2x2x3x128xbf16, #tpu.memory_space<vmem>>, vector<1x1x3x128xbf16>
      %31 = vector.shape_cast %30 : vector<1x1x3x128xbf16> to vector<3x128xbf16>
      %cst_34 = arith.constant dense<0.000000e+00> : vector<14x128xf32>
      %32 = tpu.matmul %29, %31, %cst_34 {dimension_numbers = #tpu.dot_dimension_numbers<[1], [0], [0], [1], [0, 0, 1, 1], [], []>} : vector<14x3xbf16>, vector<3x128xbf16>, vector<14x128xf32> -> vector<14x128xf32>
      %33 = arith.addf %25, %32 : vector<14x128xf32>
      %c0_35 = arith.constant 0 : index
      %c0_36 = arith.constant 0 : index
      %34 = vector.load %arg3[%c0_35, %c0_36] : memref<1x128xf32, #tpu.memory_space<vmem>>, vector<1x128xf32>
      %35 = vector.broadcast %34 : vector<1x128xf32> to vector<14x128xf32>
      %36 = arith.addf %33, %35 : vector<14x128xf32>
      %cst_37 = arith.constant 0.000000e+00 : f32
      %37 = vector.broadcast %cst_37 : f32 to vector<14x128xf32>
      %38 = arith.maximumf %36, %37 : vector<14x128xf32>
      %39 = arith.truncf %38 : vector<14x128xf32> to vector<14x128xbf16>
      %c0_38 = arith.constant 0 : index
      %40 = arith.index_cast %arg5 : i32 to index
      %c0_39 = arith.constant 0 : index
      %c0_40 = arith.constant 0 : index
      %41 = vector.load %arg4[%c0_38, %40, %c0_39, %c0_40] : memref<1x14x14x128xbf16, #tpu.memory_space<vmem>>, vector<1x1x14x128xbf16>
      %42 = vector.shape_cast %41 : vector<1x1x14x128xbf16> to vector<14x128xbf16>
      %43 = vector.shape_cast %39 : vector<14x128xbf16> to vector<1x1x14x128xbf16>
      tpu.vector_store %arg4[%c0_38, %40, %c0_39, %c0_40], %43 {strides = array<i32>} : memref<1x14x14x128xbf16, #tpu.memory_space<vmem>>, vector<1x1x14x128xbf16>,
    }
    %c14_i32_0 = arith.constant 14 : i32
    return
  }
  func.func @transform_0(%arg0: i32) -> (i32, i32, i32, i32) {
    %c0_i32 = arith.constant 0 : i32
    %c0_i32_0 = arith.constant 0 : i32
    %c0_i32_1 = arith.constant 0 : i32
    %c0_i32_2 = arith.constant 0 : i32
    return %arg0, %c0_i32, %c0_i32_0, %c0_i32_1 : i32, i32, i32, i32
  }
  func.func @transform_1(%arg0: i32) -> (i32, i32, i32, i32) {
    %c0_i32 = arith.constant 0 : i32
    %c0_i32_0 = arith.constant 0 : i32
    %c0_i32_1 = arith.constant 0 : i32
    %c0_i32_2 = arith.constant 0 : i32
    %c0_i32_3 = arith.constant 0 : i32
    return %c0_i32, %c0_i32_0, %c0_i32_1, %c0_i32_2 : i32, i32, i32, i32
  }
  func.func @transform_2(%arg0: i32) -> (i32, i32) {
    %c0_i32 = arith.constant 0 : i32
    %c0_i32_0 = arith.constant 0 : i32
    %c0_i32_1 = arith.constant 0 : i32
    return %c0_i32, %c0_i32_0 : i32, i32
  }
  func.func @transform_3(%arg0: i32) -> (i32, i32, i32, i32) {
    %c0_i32 = arith.constant 0 : i32
    %c0_i32_0 = arith.constant 0 : i32
    %c0_i32_1 = arith.constant 0 : i32
    %c0_i32_2 = arith.constant 0 : i32
    return %arg0, %c0_i32, %c0_i32_0, %c0_i32_1 : i32, i32, i32, i32
  }
}

module attributes {stable_mosaic.version = 11 : i64} {
  func.func @_maxpool2_kernel(%arg0: i32, %arg1: memref<1x6x3x256xbf16, #tpu.memory_space<vmem>>, %arg2: memref<1x3x3x128xbf16, #tpu.memory_space<vmem>>) attributes {dimension_semantics = [#tpu.dimension_semantics<parallel>], iteration_bounds = array<i64: 2>, scalar_prefetch = 0 : i64, scratch_operands = 0 : i64, tpu.core_type = #tpu.core_type<tc>, window_params = [{transform_indices = @transform_0, window_bounds = array<i64: 1, 6, 3, 256>}, {transform_indices = @transform_1, window_bounds = array<i64: 1, 3, 3, 128>}]} {
    %c0_i32 = arith.constant 0 : i32
    %c2_i32 = arith.constant 2 : i32
    %0 = arith.muli %c2_i32, %c0_i32 : i32
    %c0 = arith.constant 0 : index
    %1 = arith.index_cast %0 : i32 to index
    %c0_0 = arith.constant 0 : index
    %c0_1 = arith.constant 0 : index
    %2 = vector.load %arg1[%c0, %1, %c0_0, %c0_1] : memref<1x6x3x256xbf16, #tpu.memory_space<vmem>>, vector<1x1x3x256xbf16>
    %3 = vector.shape_cast %2 : vector<1x1x3x256xbf16> to vector<3x256xbf16>
    %c2_i32_2 = arith.constant 2 : i32
    %4 = arith.muli %c2_i32_2, %c0_i32 : i32
    %c1_i32 = arith.constant 1 : i32
    %5 = arith.addi %4, %c1_i32 : i32
    %c0_3 = arith.constant 0 : index
    %6 = arith.index_cast %5 : i32 to index
    %c0_4 = arith.constant 0 : index
    %c0_5 = arith.constant 0 : index
    %7 = vector.load %arg1[%c0_3, %6, %c0_4, %c0_5] : memref<1x6x3x256xbf16, #tpu.memory_space<vmem>>, vector<1x1x3x256xbf16>
    %8 = vector.shape_cast %7 : vector<1x1x3x256xbf16> to vector<3x256xbf16>
    %9 = arith.maximumf %3, %8 : vector<3x256xbf16>
    %10 = vector.extract_strided_slice %9 {offsets = [0, 0], sizes = [3, 128], strides = [1, 1]} : vector<3x256xbf16> to vector<3x128xbf16>
    %11 = vector.extract_strided_slice %9 {offsets = [0, 128], sizes = [3, 128], strides = [1, 1]} : vector<3x256xbf16> to vector<3x128xbf16>
    %12 = arith.maximumf %10, %11 : vector<3x128xbf16>
    %c0_6 = arith.constant 0 : index
    %13 = arith.index_cast %c0_i32 : i32 to index
    %c0_7 = arith.constant 0 : index
    %c0_8 = arith.constant 0 : index
    %14 = vector.load %arg2[%c0_6, %13, %c0_7, %c0_8] : memref<1x3x3x128xbf16, #tpu.memory_space<vmem>>, vector<1x1x3x128xbf16>
    %15 = vector.shape_cast %14 : vector<1x1x3x128xbf16> to vector<3x128xbf16>
    %16 = vector.shape_cast %12 : vector<3x128xbf16> to vector<1x1x3x128xbf16>
    tpu.vector_store %arg2[%c0_6, %13, %c0_7, %c0_8], %16 {strides = array<i32>} : memref<1x3x3x128xbf16, #tpu.memory_space<vmem>>, vector<1x1x3x128xbf16>,
    %c1_i32_9 = arith.constant 1 : i32
    %c2_i32_10 = arith.constant 2 : i32
    %17 = arith.muli %c2_i32_10, %c1_i32_9 : i32
    %c0_11 = arith.constant 0 : index
    %18 = arith.index_cast %17 : i32 to index
    %c0_12 = arith.constant 0 : index
    %c0_13 = arith.constant 0 : index
    %19 = vector.load %arg1[%c0_11, %18, %c0_12, %c0_13] : memref<1x6x3x256xbf16, #tpu.memory_space<vmem>>, vector<1x1x3x256xbf16>
    %20 = vector.shape_cast %19 : vector<1x1x3x256xbf16> to vector<3x256xbf16>
    %c2_i32_14 = arith.constant 2 : i32
    %21 = arith.muli %c2_i32_14, %c1_i32_9 : i32
    %c1_i32_15 = arith.constant 1 : i32
    %22 = arith.addi %21, %c1_i32_15 : i32
    %c0_16 = arith.constant 0 : index
    %23 = arith.index_cast %22 : i32 to index
    %c0_17 = arith.constant 0 : index
    %c0_18 = arith.constant 0 : index
    %24 = vector.load %arg1[%c0_16, %23, %c0_17, %c0_18] : memref<1x6x3x256xbf16, #tpu.memory_space<vmem>>, vector<1x1x3x256xbf16>
    %25 = vector.shape_cast %24 : vector<1x1x3x256xbf16> to vector<3x256xbf16>
    %26 = arith.maximumf %20, %25 : vector<3x256xbf16>
    %27 = vector.extract_strided_slice %26 {offsets = [0, 0], sizes = [3, 128], strides = [1, 1]} : vector<3x256xbf16> to vector<3x128xbf16>
    %28 = vector.extract_strided_slice %26 {offsets = [0, 128], sizes = [3, 128], strides = [1, 1]} : vector<3x256xbf16> to vector<3x128xbf16>
    %29 = arith.maximumf %27, %28 : vector<3x128xbf16>
    %c0_19 = arith.constant 0 : index
    %30 = arith.index_cast %c1_i32_9 : i32 to index
    %c0_20 = arith.constant 0 : index
    %c0_21 = arith.constant 0 : index
    %31 = vector.load %arg2[%c0_19, %30, %c0_20, %c0_21] : memref<1x3x3x128xbf16, #tpu.memory_space<vmem>>, vector<1x1x3x128xbf16>
    %32 = vector.shape_cast %31 : vector<1x1x3x128xbf16> to vector<3x128xbf16>
    %33 = vector.shape_cast %29 : vector<3x128xbf16> to vector<1x1x3x128xbf16>
    tpu.vector_store %arg2[%c0_19, %30, %c0_20, %c0_21], %33 {strides = array<i32>} : memref<1x3x3x128xbf16, #tpu.memory_space<vmem>>, vector<1x1x3x128xbf16>,
    %c2_i32_22 = arith.constant 2 : i32
    %c2_i32_23 = arith.constant 2 : i32
    %34 = arith.muli %c2_i32_23, %c2_i32_22 : i32
    %c0_24 = arith.constant 0 : index
    %35 = arith.index_cast %34 : i32 to index
    %c0_25 = arith.constant 0 : index
    %c0_26 = arith.constant 0 : index
    %36 = vector.load %arg1[%c0_24, %35, %c0_25, %c0_26] : memref<1x6x3x256xbf16, #tpu.memory_space<vmem>>, vector<1x1x3x256xbf16>
    %37 = vector.shape_cast %36 : vector<1x1x3x256xbf16> to vector<3x256xbf16>
    %c2_i32_27 = arith.constant 2 : i32
    %38 = arith.muli %c2_i32_27, %c2_i32_22 : i32
    %c1_i32_28 = arith.constant 1 : i32
    %39 = arith.addi %38, %c1_i32_28 : i32
    %c0_29 = arith.constant 0 : index
    %40 = arith.index_cast %39 : i32 to index
    %c0_30 = arith.constant 0 : index
    %c0_31 = arith.constant 0 : index
    %41 = vector.load %arg1[%c0_29, %40, %c0_30, %c0_31] : memref<1x6x3x256xbf16, #tpu.memory_space<vmem>>, vector<1x1x3x256xbf16>
    %42 = vector.shape_cast %41 : vector<1x1x3x256xbf16> to vector<3x256xbf16>
    %43 = arith.maximumf %37, %42 : vector<3x256xbf16>
    %44 = vector.extract_strided_slice %43 {offsets = [0, 0], sizes = [3, 128], strides = [1, 1]} : vector<3x256xbf16> to vector<3x128xbf16>
    %45 = vector.extract_strided_slice %43 {offsets = [0, 128], sizes = [3, 128], strides = [1, 1]} : vector<3x256xbf16> to vector<3x128xbf16>
    %46 = arith.maximumf %44, %45 : vector<3x128xbf16>
    %c0_32 = arith.constant 0 : index
    %47 = arith.index_cast %c2_i32_22 : i32 to index
    %c0_33 = arith.constant 0 : index
    %c0_34 = arith.constant 0 : index
    %48 = vector.load %arg2[%c0_32, %47, %c0_33, %c0_34] : memref<1x3x3x128xbf16, #tpu.memory_space<vmem>>, vector<1x1x3x128xbf16>
    %49 = vector.shape_cast %48 : vector<1x1x3x128xbf16> to vector<3x128xbf16>
    %50 = vector.shape_cast %46 : vector<3x128xbf16> to vector<1x1x3x128xbf16>
    tpu.vector_store %arg2[%c0_32, %47, %c0_33, %c0_34], %50 {strides = array<i32>} : memref<1x3x3x128xbf16, #tpu.memory_space<vmem>>, vector<1x1x3x128xbf16>,
    %c3_i32 = arith.constant 3 : i32
    return
  }
  func.func @transform_0(%arg0: i32) -> (i32, i32, i32, i32) {
    %c0_i32 = arith.constant 0 : i32
    %c0_i32_0 = arith.constant 0 : i32
    %c0_i32_1 = arith.constant 0 : i32
    %c0_i32_2 = arith.constant 0 : i32
    return %arg0, %c0_i32, %c0_i32_0, %c0_i32_1 : i32, i32, i32, i32
  }
  func.func @transform_1(%arg0: i32) -> (i32, i32, i32, i32) {
    %c0_i32 = arith.constant 0 : i32
    %c0_i32_0 = arith.constant 0 : i32
    %c0_i32_1 = arith.constant 0 : i32
    %c0_i32_2 = arith.constant 0 : i32
    return %arg0, %c0_i32, %c0_i32_0, %c0_i32_1 : i32, i32, i32, i32
  }
}

module attributes {stable_mosaic.version = 11 : i64} {
  func.func @_conv_relu_kernel(%arg0: i32, %arg1: memref<1x7x7x128xbf16, #tpu.memory_space<vmem>>, %arg2: memref<1x1x128x128xbf16, #tpu.memory_space<vmem>>, %arg3: memref<1x128xf32, #tpu.memory_space<vmem>>, %arg4: memref<1x6x6x128xbf16, #tpu.memory_space<vmem>>) attributes {dimension_semantics = [#tpu.dimension_semantics<parallel>], iteration_bounds = array<i64: 2>, scalar_prefetch = 0 : i64, scratch_operands = 0 : i64, tpu.core_type = #tpu.core_type<tc>, window_params = [{transform_indices = @transform_0, window_bounds = array<i64: 1, 7, 7, 128>}, {pipeline_mode = #tpu.pipeline_mode<synchronous>, transform_indices = @transform_1, window_bounds = array<i64: 1, 1, 128, 128>}, {pipeline_mode = #tpu.pipeline_mode<synchronous>, transform_indices = @transform_2, window_bounds = array<i64: 1, 128>}, {transform_indices = @transform_3, window_bounds = array<i64: 1, 6, 6, 128>}]} {
    %c0_i32 = arith.constant 0 : i32
    %cst = arith.constant 0.000000e+00 : f32
    %0 = vector.broadcast %cst : f32 to vector<6x128xf32>
    %c0_i32_0 = arith.constant 0 : i32
    %1 = arith.addi %c0_i32, %c0_i32_0 : i32
    %c0 = arith.constant 0 : index
    %2 = arith.index_cast %1 : i32 to index
    %c0_1 = arith.constant 0 : index
    %c0_2 = arith.constant 0 : index
    %3 = vector.load %arg1[%c0, %2, %c0_1, %c0_2] : memref<1x7x7x128xbf16, #tpu.memory_space<vmem>>, vector<1x1x6x128xbf16>
    %4 = vector.shape_cast %3 : vector<1x1x6x128xbf16> to vector<6x128xbf16>
    %c0_3 = arith.constant 0 : index
    %c0_4 = arith.constant 0 : index
    %c0_5 = arith.constant 0 : index
    %c0_6 = arith.constant 0 : index
    %5 = vector.load %arg2[%c0_3, %c0_4, %c0_5, %c0_6] : memref<1x1x128x128xbf16, #tpu.memory_space<vmem>>, vector<1x1x128x128xbf16>
    %6 = vector.shape_cast %5 : vector<1x1x128x128xbf16> to vector<128x128xbf16>
    %cst_7 = arith.constant dense<0.000000e+00> : vector<6x128xf32>
    %7 = tpu.matmul %4, %6, %cst_7 {dimension_numbers = #tpu.dot_dimension_numbers<[1], [0], [0], [1], [0, 0, 1, 1], [], []>} : vector<6x128xbf16>, vector<128x128xbf16>, vector<6x128xf32> -> vector<6x128xf32>
    %8 = arith.addf %0, %7 : vector<6x128xf32>
    %c0_8 = arith.constant 0 : index
    %c0_9 = arith.constant 0 : index
    %9 = vector.load %arg3[%c0_8, %c0_9] : memref<1x128xf32, #tpu.memory_space<vmem>>, vector<1x128xf32>
    %10 = vector.broadcast %9 : vector<1x128xf32> to vector<6x128xf32>
    %11 = arith.addf %8, %10 : vector<6x128xf32>
    %cst_10 = arith.constant 0.000000e+00 : f32
    %12 = vector.broadcast %cst_10 : f32 to vector<6x128xf32>
    %13 = arith.maximumf %11, %12 : vector<6x128xf32>
    %14 = arith.truncf %13 : vector<6x128xf32> to vector<6x128xbf16>
    %c0_11 = arith.constant 0 : index
    %15 = arith.index_cast %c0_i32 : i32 to index
    %c0_12 = arith.constant 0 : index
    %c0_13 = arith.constant 0 : index
    %16 = vector.load %arg4[%c0_11, %15, %c0_12, %c0_13] : memref<1x6x6x128xbf16, #tpu.memory_space<vmem>>, vector<1x1x6x128xbf16>
    %17 = vector.shape_cast %16 : vector<1x1x6x128xbf16> to vector<6x128xbf16>
    %18 = vector.shape_cast %14 : vector<6x128xbf16> to vector<1x1x6x128xbf16>
    tpu.vector_store %arg4[%c0_11, %15, %c0_12, %c0_13], %18 {strides = array<i32>} : memref<1x6x6x128xbf16, #tpu.memory_space<vmem>>, vector<1x1x6x128xbf16>,
    %c1_i32 = arith.constant 1 : i32
    %cst_14 = arith.constant 0.000000e+00 : f32
    %19 = vector.broadcast %cst_14 : f32 to vector<6x128xf32>
    %c0_i32_15 = arith.constant 0 : i32
    %20 = arith.addi %c1_i32, %c0_i32_15 : i32
    %c0_16 = arith.constant 0 : index
    %21 = arith.index_cast %20 : i32 to index
    %c0_17 = arith.constant 0 : index
    %c0_18 = arith.constant 0 : index
    %22 = vector.load %arg1[%c0_16, %21, %c0_17, %c0_18] : memref<1x7x7x128xbf16, #tpu.memory_space<vmem>>, vector<1x1x6x128xbf16>
    %23 = vector.shape_cast %22 : vector<1x1x6x128xbf16> to vector<6x128xbf16>
    %c0_19 = arith.constant 0 : index
    %c0_20 = arith.constant 0 : index
    %c0_21 = arith.constant 0 : index
    %c0_22 = arith.constant 0 : index
    %24 = vector.load %arg2[%c0_19, %c0_20, %c0_21, %c0_22] : memref<1x1x128x128xbf16, #tpu.memory_space<vmem>>, vector<1x1x128x128xbf16>
    %25 = vector.shape_cast %24 : vector<1x1x128x128xbf16> to vector<128x128xbf16>
    %cst_23 = arith.constant dense<0.000000e+00> : vector<6x128xf32>
    %26 = tpu.matmul %23, %25, %cst_23 {dimension_numbers = #tpu.dot_dimension_numbers<[1], [0], [0], [1], [0, 0, 1, 1], [], []>} : vector<6x128xbf16>, vector<128x128xbf16>, vector<6x128xf32> -> vector<6x128xf32>
    %27 = arith.addf %19, %26 : vector<6x128xf32>
    %c0_24 = arith.constant 0 : index
    %c0_25 = arith.constant 0 : index
    %28 = vector.load %arg3[%c0_24, %c0_25] : memref<1x128xf32, #tpu.memory_space<vmem>>, vector<1x128xf32>
    %29 = vector.broadcast %28 : vector<1x128xf32> to vector<6x128xf32>
    %30 = arith.addf %27, %29 : vector<6x128xf32>
    %cst_26 = arith.constant 0.000000e+00 : f32
    %31 = vector.broadcast %cst_26 : f32 to vector<6x128xf32>
    %32 = arith.maximumf %30, %31 : vector<6x128xf32>
    %33 = arith.truncf %32 : vector<6x128xf32> to vector<6x128xbf16>
    %c0_27 = arith.constant 0 : index
    %34 = arith.index_cast %c1_i32 : i32 to index
    %c0_28 = arith.constant 0 : index
    %c0_29 = arith.constant 0 : index
    %35 = vector.load %arg4[%c0_27, %34, %c0_28, %c0_29] : memref<1x6x6x128xbf16, #tpu.memory_space<vmem>>, vector<1x1x6x128xbf16>
    %36 = vector.shape_cast %35 : vector<1x1x6x128xbf16> to vector<6x128xbf16>
    %37 = vector.shape_cast %33 : vector<6x128xbf16> to vector<1x1x6x128xbf16>
    tpu.vector_store %arg4[%c0_27, %34, %c0_28, %c0_29], %37 {strides = array<i32>} : memref<1x6x6x128xbf16, #tpu.memory_space<vmem>>, vector<1x1x6x128xbf16>,
    %c2_i32 = arith.constant 2 : i32
    %cst_30 = arith.constant 0.000000e+00 : f32
    %38 = vector.broadcast %cst_30 : f32 to vector<6x128xf32>
    %c0_i32_31 = arith.constant 0 : i32
    %39 = arith.addi %c2_i32, %c0_i32_31 : i32
    %c0_32 = arith.constant 0 : index
    %40 = arith.index_cast %39 : i32 to index
    %c0_33 = arith.constant 0 : index
    %c0_34 = arith.constant 0 : index
    %41 = vector.load %arg1[%c0_32, %40, %c0_33, %c0_34] : memref<1x7x7x128xbf16, #tpu.memory_space<vmem>>, vector<1x1x6x128xbf16>
    %42 = vector.shape_cast %41 : vector<1x1x6x128xbf16> to vector<6x128xbf16>
    %c0_35 = arith.constant 0 : index
    %c0_36 = arith.constant 0 : index
    %c0_37 = arith.constant 0 : index
    %c0_38 = arith.constant 0 : index
    %43 = vector.load %arg2[%c0_35, %c0_36, %c0_37, %c0_38] : memref<1x1x128x128xbf16, #tpu.memory_space<vmem>>, vector<1x1x128x128xbf16>
    %44 = vector.shape_cast %43 : vector<1x1x128x128xbf16> to vector<128x128xbf16>
    %cst_39 = arith.constant dense<0.000000e+00> : vector<6x128xf32>
    %45 = tpu.matmul %42, %44, %cst_39 {dimension_numbers = #tpu.dot_dimension_numbers<[1], [0], [0], [1], [0, 0, 1, 1], [], []>} : vector<6x128xbf16>, vector<128x128xbf16>, vector<6x128xf32> -> vector<6x128xf32>
    %46 = arith.addf %38, %45 : vector<6x128xf32>
    %c0_40 = arith.constant 0 : index
    %c0_41 = arith.constant 0 : index
    %47 = vector.load %arg3[%c0_40, %c0_41] : memref<1x128xf32, #tpu.memory_space<vmem>>, vector<1x128xf32>
    %48 = vector.broadcast %47 : vector<1x128xf32> to vector<6x128xf32>
    %49 = arith.addf %46, %48 : vector<6x128xf32>
    %cst_42 = arith.constant 0.000000e+00 : f32
    %50 = vector.broadcast %cst_42 : f32 to vector<6x128xf32>
    %51 = arith.maximumf %49, %50 : vector<6x128xf32>
    %52 = arith.truncf %51 : vector<6x128xf32> to vector<6x128xbf16>
    %c0_43 = arith.constant 0 : index
    %53 = arith.index_cast %c2_i32 : i32 to index
    %c0_44 = arith.constant 0 : index
    %c0_45 = arith.constant 0 : index
    %54 = vector.load %arg4[%c0_43, %53, %c0_44, %c0_45] : memref<1x6x6x128xbf16, #tpu.memory_space<vmem>>, vector<1x1x6x128xbf16>
    %55 = vector.shape_cast %54 : vector<1x1x6x128xbf16> to vector<6x128xbf16>
    %56 = vector.shape_cast %52 : vector<6x128xbf16> to vector<1x1x6x128xbf16>
    tpu.vector_store %arg4[%c0_43, %53, %c0_44, %c0_45], %56 {strides = array<i32>} : memref<1x6x6x128xbf16, #tpu.memory_space<vmem>>, vector<1x1x6x128xbf16>,
    %c3_i32 = arith.constant 3 : i32
    %cst_46 = arith.constant 0.000000e+00 : f32
    %57 = vector.broadcast %cst_46 : f32 to vector<6x128xf32>
    %c0_i32_47 = arith.constant 0 : i32
    %58 = arith.addi %c3_i32, %c0_i32_47 : i32
    %c0_48 = arith.constant 0 : index
    %59 = arith.index_cast %58 : i32 to index
    %c0_49 = arith.constant 0 : index
    %c0_50 = arith.constant 0 : index
    %60 = vector.load %arg1[%c0_48, %59, %c0_49, %c0_50] : memref<1x7x7x128xbf16, #tpu.memory_space<vmem>>, vector<1x1x6x128xbf16>
    %61 = vector.shape_cast %60 : vector<1x1x6x128xbf16> to vector<6x128xbf16>
    %c0_51 = arith.constant 0 : index
    %c0_52 = arith.constant 0 : index
    %c0_53 = arith.constant 0 : index
    %c0_54 = arith.constant 0 : index
    %62 = vector.load %arg2[%c0_51, %c0_52, %c0_53, %c0_54] : memref<1x1x128x128xbf16, #tpu.memory_space<vmem>>, vector<1x1x128x128xbf16>
    %63 = vector.shape_cast %62 : vector<1x1x128x128xbf16> to vector<128x128xbf16>
    %cst_55 = arith.constant dense<0.000000e+00> : vector<6x128xf32>
    %64 = tpu.matmul %61, %63, %cst_55 {dimension_numbers = #tpu.dot_dimension_numbers<[1], [0], [0], [1], [0, 0, 1, 1], [], []>} : vector<6x128xbf16>, vector<128x128xbf16>, vector<6x128xf32> -> vector<6x128xf32>
    %65 = arith.addf %57, %64 : vector<6x128xf32>
    %c0_56 = arith.constant 0 : index
    %c0_57 = arith.constant 0 : index
    %66 = vector.load %arg3[%c0_56, %c0_57] : memref<1x128xf32, #tpu.memory_space<vmem>>, vector<1x128xf32>
    %67 = vector.broadcast %66 : vector<1x128xf32> to vector<6x128xf32>
    %68 = arith.addf %65, %67 : vector<6x128xf32>
    %cst_58 = arith.constant 0.000000e+00 : f32
    %69 = vector.broadcast %cst_58 : f32 to vector<6x128xf32>
    %70 = arith.maximumf %68, %69 : vector<6x128xf32>
    %71 = arith.truncf %70 : vector<6x128xf32> to vector<6x128xbf16>
    %c0_59 = arith.constant 0 : index
    %72 = arith.index_cast %c3_i32 : i32 to index
    %c0_60 = arith.constant 0 : index
    %c0_61 = arith.constant 0 : index
    %73 = vector.load %arg4[%c0_59, %72, %c0_60, %c0_61] : memref<1x6x6x128xbf16, #tpu.memory_space<vmem>>, vector<1x1x6x128xbf16>
    %74 = vector.shape_cast %73 : vector<1x1x6x128xbf16> to vector<6x128xbf16>
    %75 = vector.shape_cast %71 : vector<6x128xbf16> to vector<1x1x6x128xbf16>
    tpu.vector_store %arg4[%c0_59, %72, %c0_60, %c0_61], %75 {strides = array<i32>} : memref<1x6x6x128xbf16, #tpu.memory_space<vmem>>, vector<1x1x6x128xbf16>,
    %c4_i32 = arith.constant 4 : i32
    %cst_62 = arith.constant 0.000000e+00 : f32
    %76 = vector.broadcast %cst_62 : f32 to vector<6x128xf32>
    %c0_i32_63 = arith.constant 0 : i32
    %77 = arith.addi %c4_i32, %c0_i32_63 : i32
    %c0_64 = arith.constant 0 : index
    %78 = arith.index_cast %77 : i32 to index
    %c0_65 = arith.constant 0 : index
    %c0_66 = arith.constant 0 : index
    %79 = vector.load %arg1[%c0_64, %78, %c0_65, %c0_66] : memref<1x7x7x128xbf16, #tpu.memory_space<vmem>>, vector<1x1x6x128xbf16>
    %80 = vector.shape_cast %79 : vector<1x1x6x128xbf16> to vector<6x128xbf16>
    %c0_67 = arith.constant 0 : index
    %c0_68 = arith.constant 0 : index
    %c0_69 = arith.constant 0 : index
    %c0_70 = arith.constant 0 : index
    %81 = vector.load %arg2[%c0_67, %c0_68, %c0_69, %c0_70] : memref<1x1x128x128xbf16, #tpu.memory_space<vmem>>, vector<1x1x128x128xbf16>
    %82 = vector.shape_cast %81 : vector<1x1x128x128xbf16> to vector<128x128xbf16>
    %cst_71 = arith.constant dense<0.000000e+00> : vector<6x128xf32>
    %83 = tpu.matmul %80, %82, %cst_71 {dimension_numbers = #tpu.dot_dimension_numbers<[1], [0], [0], [1], [0, 0, 1, 1], [], []>} : vector<6x128xbf16>, vector<128x128xbf16>, vector<6x128xf32> -> vector<6x128xf32>
    %84 = arith.addf %76, %83 : vector<6x128xf32>
    %c0_72 = arith.constant 0 : index
    %c0_73 = arith.constant 0 : index
    %85 = vector.load %arg3[%c0_72, %c0_73] : memref<1x128xf32, #tpu.memory_space<vmem>>, vector<1x128xf32>
    %86 = vector.broadcast %85 : vector<1x128xf32> to vector<6x128xf32>
    %87 = arith.addf %84, %86 : vector<6x128xf32>
    %cst_74 = arith.constant 0.000000e+00 : f32
    %88 = vector.broadcast %cst_74 : f32 to vector<6x128xf32>
    %89 = arith.maximumf %87, %88 : vector<6x128xf32>
    %90 = arith.truncf %89 : vector<6x128xf32> to vector<6x128xbf16>
    %c0_75 = arith.constant 0 : index
    %91 = arith.index_cast %c4_i32 : i32 to index
    %c0_76 = arith.constant 0 : index
    %c0_77 = arith.constant 0 : index
    %92 = vector.load %arg4[%c0_75, %91, %c0_76, %c0_77] : memref<1x6x6x128xbf16, #tpu.memory_space<vmem>>, vector<1x1x6x128xbf16>
    %93 = vector.shape_cast %92 : vector<1x1x6x128xbf16> to vector<6x128xbf16>
    %94 = vector.shape_cast %90 : vector<6x128xbf16> to vector<1x1x6x128xbf16>
    tpu.vector_store %arg4[%c0_75, %91, %c0_76, %c0_77], %94 {strides = array<i32>} : memref<1x6x6x128xbf16, #tpu.memory_space<vmem>>, vector<1x1x6x128xbf16>,
    %c5_i32 = arith.constant 5 : i32
    %cst_78 = arith.constant 0.000000e+00 : f32
    %95 = vector.broadcast %cst_78 : f32 to vector<6x128xf32>
    %c0_i32_79 = arith.constant 0 : i32
    %96 = arith.addi %c5_i32, %c0_i32_79 : i32
    %c0_80 = arith.constant 0 : index
    %97 = arith.index_cast %96 : i32 to index
    %c0_81 = arith.constant 0 : index
    %c0_82 = arith.constant 0 : index
    %98 = vector.load %arg1[%c0_80, %97, %c0_81, %c0_82] : memref<1x7x7x128xbf16, #tpu.memory_space<vmem>>, vector<1x1x6x128xbf16>
    %99 = vector.shape_cast %98 : vector<1x1x6x128xbf16> to vector<6x128xbf16>
    %c0_83 = arith.constant 0 : index
    %c0_84 = arith.constant 0 : index
    %c0_85 = arith.constant 0 : index
    %c0_86 = arith.constant 0 : index
    %100 = vector.load %arg2[%c0_83, %c0_84, %c0_85, %c0_86] : memref<1x1x128x128xbf16, #tpu.memory_space<vmem>>, vector<1x1x128x128xbf16>
    %101 = vector.shape_cast %100 : vector<1x1x128x128xbf16> to vector<128x128xbf16>
    %cst_87 = arith.constant dense<0.000000e+00> : vector<6x128xf32>
    %102 = tpu.matmul %99, %101, %cst_87 {dimension_numbers = #tpu.dot_dimension_numbers<[1], [0], [0], [1], [0, 0, 1, 1], [], []>} : vector<6x128xbf16>, vector<128x128xbf16>, vector<6x128xf32> -> vector<6x128xf32>
    %103 = arith.addf %95, %102 : vector<6x128xf32>
    %c0_88 = arith.constant 0 : index
    %c0_89 = arith.constant 0 : index
    %104 = vector.load %arg3[%c0_88, %c0_89] : memref<1x128xf32, #tpu.memory_space<vmem>>, vector<1x128xf32>
    %105 = vector.broadcast %104 : vector<1x128xf32> to vector<6x128xf32>
    %106 = arith.addf %103, %105 : vector<6x128xf32>
    %cst_90 = arith.constant 0.000000e+00 : f32
    %107 = vector.broadcast %cst_90 : f32 to vector<6x128xf32>
    %108 = arith.maximumf %106, %107 : vector<6x128xf32>
    %109 = arith.truncf %108 : vector<6x128xf32> to vector<6x128xbf16>
    %c0_91 = arith.constant 0 : index
    %110 = arith.index_cast %c5_i32 : i32 to index
    %c0_92 = arith.constant 0 : index
    %c0_93 = arith.constant 0 : index
    %111 = vector.load %arg4[%c0_91, %110, %c0_92, %c0_93] : memref<1x6x6x128xbf16, #tpu.memory_space<vmem>>, vector<1x1x6x128xbf16>
    %112 = vector.shape_cast %111 : vector<1x1x6x128xbf16> to vector<6x128xbf16>
    %113 = vector.shape_cast %109 : vector<6x128xbf16> to vector<1x1x6x128xbf16>
    tpu.vector_store %arg4[%c0_91, %110, %c0_92, %c0_93], %113 {strides = array<i32>} : memref<1x6x6x128xbf16, #tpu.memory_space<vmem>>, vector<1x1x6x128xbf16>,
    %c6_i32 = arith.constant 6 : i32
    return
  }
  func.func @transform_0(%arg0: i32) -> (i32, i32, i32, i32) {
    %c0_i32 = arith.constant 0 : i32
    %c0_i32_0 = arith.constant 0 : i32
    %c0_i32_1 = arith.constant 0 : i32
    %c0_i32_2 = arith.constant 0 : i32
    return %arg0, %c0_i32, %c0_i32_0, %c0_i32_1 : i32, i32, i32, i32
  }
  func.func @transform_1(%arg0: i32) -> (i32, i32, i32, i32) {
    %c0_i32 = arith.constant 0 : i32
    %c0_i32_0 = arith.constant 0 : i32
    %c0_i32_1 = arith.constant 0 : i32
    %c0_i32_2 = arith.constant 0 : i32
    %c0_i32_3 = arith.constant 0 : i32
    return %c0_i32, %c0_i32_0, %c0_i32_1, %c0_i32_2 : i32, i32, i32, i32
  }
  func.func @transform_2(%arg0: i32) -> (i32, i32) {
    %c0_i32 = arith.constant 0 : i32
    %c0_i32_0 = arith.constant 0 : i32
    %c0_i32_1 = arith.constant 0 : i32
    return %c0_i32, %c0_i32_0 : i32, i32
  }
  func.func @transform_3(%arg0: i32) -> (i32, i32, i32, i32) {
    %c0_i32 = arith.constant 0 : i32
    %c0_i32_0 = arith.constant 0 : i32
    %c0_i32_1 = arith.constant 0 : i32
    %c0_i32_2 = arith.constant 0 : i32
    return %arg0, %c0_i32, %c0_i32_0, %c0_i32_1 : i32, i32, i32, i32
  }
}

module attributes {stable_mosaic.version = 11 : i64} {
  func.func @_maxpool2_kernel(%arg0: i32, %arg1: memref<1x14x7x256xbf16, #tpu.memory_space<vmem>>, %arg2: memref<1x7x7x128xbf16, #tpu.memory_space<vmem>>) attributes {dimension_semantics = [#tpu.dimension_semantics<parallel>], iteration_bounds = array<i64: 2>, scalar_prefetch = 0 : i64, scratch_operands = 0 : i64, tpu.core_type = #tpu.core_type<tc>, window_params = [{transform_indices = @transform_0, window_bounds = array<i64: 1, 14, 7, 256>}, {transform_indices = @transform_1, window_bounds = array<i64: 1, 7, 7, 128>}]} {
    %c0_i32 = arith.constant 0 : i32
    %c2_i32 = arith.constant 2 : i32
    %0 = arith.muli %c2_i32, %c0_i32 : i32
    %c0 = arith.constant 0 : index
    %1 = arith.index_cast %0 : i32 to index
    %c0_0 = arith.constant 0 : index
    %c0_1 = arith.constant 0 : index
    %2 = vector.load %arg1[%c0, %1, %c0_0, %c0_1] : memref<1x14x7x256xbf16, #tpu.memory_space<vmem>>, vector<1x1x7x256xbf16>
    %3 = vector.shape_cast %2 : vector<1x1x7x256xbf16> to vector<7x256xbf16>
    %c2_i32_2 = arith.constant 2 : i32
    %4 = arith.muli %c2_i32_2, %c0_i32 : i32
    %c1_i32 = arith.constant 1 : i32
    %5 = arith.addi %4, %c1_i32 : i32
    %c0_3 = arith.constant 0 : index
    %6 = arith.index_cast %5 : i32 to index
    %c0_4 = arith.constant 0 : index
    %c0_5 = arith.constant 0 : index
    %7 = vector.load %arg1[%c0_3, %6, %c0_4, %c0_5] : memref<1x14x7x256xbf16, #tpu.memory_space<vmem>>, vector<1x1x7x256xbf16>
    %8 = vector.shape_cast %7 : vector<1x1x7x256xbf16> to vector<7x256xbf16>
    %9 = arith.maximumf %3, %8 : vector<7x256xbf16>
    %10 = vector.extract_strided_slice %9 {offsets = [0, 0], sizes = [7, 128], strides = [1, 1]} : vector<7x256xbf16> to vector<7x128xbf16>
    %11 = vector.extract_strided_slice %9 {offsets = [0, 128], sizes = [7, 128], strides = [1, 1]} : vector<7x256xbf16> to vector<7x128xbf16>
    %12 = arith.maximumf %10, %11 : vector<7x128xbf16>
    %c0_6 = arith.constant 0 : index
    %13 = arith.index_cast %c0_i32 : i32 to index
    %c0_7 = arith.constant 0 : index
    %c0_8 = arith.constant 0 : index
    %14 = vector.load %arg2[%c0_6, %13, %c0_7, %c0_8] : memref<1x7x7x128xbf16, #tpu.memory_space<vmem>>, vector<1x1x7x128xbf16>
    %15 = vector.shape_cast %14 : vector<1x1x7x128xbf16> to vector<7x128xbf16>
    %16 = vector.shape_cast %12 : vector<7x128xbf16> to vector<1x1x7x128xbf16>
    tpu.vector_store %arg2[%c0_6, %13, %c0_7, %c0_8], %16 {strides = array<i32>} : memref<1x7x7x128xbf16, #tpu.memory_space<vmem>>, vector<1x1x7x128xbf16>,
    %c1_i32_9 = arith.constant 1 : i32
    %c2_i32_10 = arith.constant 2 : i32
    %17 = arith.muli %c2_i32_10, %c1_i32_9 : i32
    %c0_11 = arith.constant 0 : index
    %18 = arith.index_cast %17 : i32 to index
    %c0_12 = arith.constant 0 : index
    %c0_13 = arith.constant 0 : index
    %19 = vector.load %arg1[%c0_11, %18, %c0_12, %c0_13] : memref<1x14x7x256xbf16, #tpu.memory_space<vmem>>, vector<1x1x7x256xbf16>
    %20 = vector.shape_cast %19 : vector<1x1x7x256xbf16> to vector<7x256xbf16>
    %c2_i32_14 = arith.constant 2 : i32
    %21 = arith.muli %c2_i32_14, %c1_i32_9 : i32
    %c1_i32_15 = arith.constant 1 : i32
    %22 = arith.addi %21, %c1_i32_15 : i32
    %c0_16 = arith.constant 0 : index
    %23 = arith.index_cast %22 : i32 to index
    %c0_17 = arith.constant 0 : index
    %c0_18 = arith.constant 0 : index
    %24 = vector.load %arg1[%c0_16, %23, %c0_17, %c0_18] : memref<1x14x7x256xbf16, #tpu.memory_space<vmem>>, vector<1x1x7x256xbf16>
    %25 = vector.shape_cast %24 : vector<1x1x7x256xbf16> to vector<7x256xbf16>
    %26 = arith.maximumf %20, %25 : vector<7x256xbf16>
    %27 = vector.extract_strided_slice %26 {offsets = [0, 0], sizes = [7, 128], strides = [1, 1]} : vector<7x256xbf16> to vector<7x128xbf16>
    %28 = vector.extract_strided_slice %26 {offsets = [0, 128], sizes = [7, 128], strides = [1, 1]} : vector<7x256xbf16> to vector<7x128xbf16>
    %29 = arith.maximumf %27, %28 : vector<7x128xbf16>
    %c0_19 = arith.constant 0 : index
    %30 = arith.index_cast %c1_i32_9 : i32 to index
    %c0_20 = arith.constant 0 : index
    %c0_21 = arith.constant 0 : index
    %31 = vector.load %arg2[%c0_19, %30, %c0_20, %c0_21] : memref<1x7x7x128xbf16, #tpu.memory_space<vmem>>, vector<1x1x7x128xbf16>
    %32 = vector.shape_cast %31 : vector<1x1x7x128xbf16> to vector<7x128xbf16>
    %33 = vector.shape_cast %29 : vector<7x128xbf16> to vector<1x1x7x128xbf16>
    tpu.vector_store %arg2[%c0_19, %30, %c0_20, %c0_21], %33 {strides = array<i32>} : memref<1x7x7x128xbf16, #tpu.memory_space<vmem>>, vector<1x1x7x128xbf16>,
    %c2_i32_22 = arith.constant 2 : i32
    %c2_i32_23 = arith.constant 2 : i32
    %34 = arith.muli %c2_i32_23, %c2_i32_22 : i32
    %c0_24 = arith.constant 0 : index
    %35 = arith.index_cast %34 : i32 to index
    %c0_25 = arith.constant 0 : index
    %c0_26 = arith.constant 0 : index
    %36 = vector.load %arg1[%c0_24, %35, %c0_25, %c0_26] : memref<1x14x7x256xbf16, #tpu.memory_space<vmem>>, vector<1x1x7x256xbf16>
    %37 = vector.shape_cast %36 : vector<1x1x7x256xbf16> to vector<7x256xbf16>
    %c2_i32_27 = arith.constant 2 : i32
    %38 = arith.muli %c2_i32_27, %c2_i32_22 : i32
    %c1_i32_28 = arith.constant 1 : i32
    %39 = arith.addi %38, %c1_i32_28 : i32
    %c0_29 = arith.constant 0 : index
    %40 = arith.index_cast %39 : i32 to index
    %c0_30 = arith.constant 0 : index
    %c0_31 = arith.constant 0 : index
    %41 = vector.load %arg1[%c0_29, %40, %c0_30, %c0_31] : memref<1x14x7x256xbf16, #tpu.memory_space<vmem>>, vector<1x1x7x256xbf16>
    %42 = vector.shape_cast %41 : vector<1x1x7x256xbf16> to vector<7x256xbf16>
    %43 = arith.maximumf %37, %42 : vector<7x256xbf16>
    %44 = vector.extract_strided_slice %43 {offsets = [0, 0], sizes = [7, 128], strides = [1, 1]} : vector<7x256xbf16> to vector<7x128xbf16>
    %45 = vector.extract_strided_slice %43 {offsets = [0, 128], sizes = [7, 128], strides = [1, 1]} : vector<7x256xbf16> to vector<7x128xbf16>
    %46 = arith.maximumf %44, %45 : vector<7x128xbf16>
    %c0_32 = arith.constant 0 : index
    %47 = arith.index_cast %c2_i32_22 : i32 to index
    %c0_33 = arith.constant 0 : index
    %c0_34 = arith.constant 0 : index
    %48 = vector.load %arg2[%c0_32, %47, %c0_33, %c0_34] : memref<1x7x7x128xbf16, #tpu.memory_space<vmem>>, vector<1x1x7x128xbf16>
    %49 = vector.shape_cast %48 : vector<1x1x7x128xbf16> to vector<7x128xbf16>
    %50 = vector.shape_cast %46 : vector<7x128xbf16> to vector<1x1x7x128xbf16>
    tpu.vector_store %arg2[%c0_32, %47, %c0_33, %c0_34], %50 {strides = array<i32>} : memref<1x7x7x128xbf16, #tpu.memory_space<vmem>>, vector<1x1x7x128xbf16>,
    %c3_i32 = arith.constant 3 : i32
    %c2_i32_35 = arith.constant 2 : i32
    %51 = arith.muli %c2_i32_35, %c3_i32 : i32
    %c0_36 = arith.constant 0 : index
    %52 = arith.index_cast %51 : i32 to index
    %c0_37 = arith.constant 0 : index
    %c0_38 = arith.constant 0 : index
    %53 = vector.load %arg1[%c0_36, %52, %c0_37, %c0_38] : memref<1x14x7x256xbf16, #tpu.memory_space<vmem>>, vector<1x1x7x256xbf16>
    %54 = vector.shape_cast %53 : vector<1x1x7x256xbf16> to vector<7x256xbf16>
    %c2_i32_39 = arith.constant 2 : i32
    %55 = arith.muli %c2_i32_39, %c3_i32 : i32
    %c1_i32_40 = arith.constant 1 : i32
    %56 = arith.addi %55, %c1_i32_40 : i32
    %c0_41 = arith.constant 0 : index
    %57 = arith.index_cast %56 : i32 to index
    %c0_42 = arith.constant 0 : index
    %c0_43 = arith.constant 0 : index
    %58 = vector.load %arg1[%c0_41, %57, %c0_42, %c0_43] : memref<1x14x7x256xbf16, #tpu.memory_space<vmem>>, vector<1x1x7x256xbf16>
    %59 = vector.shape_cast %58 : vector<1x1x7x256xbf16> to vector<7x256xbf16>
    %60 = arith.maximumf %54, %59 : vector<7x256xbf16>
    %61 = vector.extract_strided_slice %60 {offsets = [0, 0], sizes = [7, 128], strides = [1, 1]} : vector<7x256xbf16> to vector<7x128xbf16>
    %62 = vector.extract_strided_slice %60 {offsets = [0, 128], sizes = [7, 128], strides = [1, 1]} : vector<7x256xbf16> to vector<7x128xbf16>
    %63 = arith.maximumf %61, %62 : vector<7x128xbf16>
    %c0_44 = arith.constant 0 : index
    %64 = arith.index_cast %c3_i32 : i32 to index
    %c0_45 = arith.constant 0 : index
    %c0_46 = arith.constant 0 : index
    %65 = vector.load %arg2[%c0_44, %64, %c0_45, %c0_46] : memref<1x7x7x128xbf16, #tpu.memory_space<vmem>>, vector<1x1x7x128xbf16>
    %66 = vector.shape_cast %65 : vector<1x1x7x128xbf16> to vector<7x128xbf16>
    %67 = vector.shape_cast %63 : vector<7x128xbf16> to vector<1x1x7x128xbf16>
    tpu.vector_store %arg2[%c0_44, %64, %c0_45, %c0_46], %67 {strides = array<i32>} : memref<1x7x7x128xbf16, #tpu.memory_space<vmem>>, vector<1x1x7x128xbf16>,
    %c4_i32 = arith.constant 4 : i32
    %c2_i32_47 = arith.constant 2 : i32
    %68 = arith.muli %c2_i32_47, %c4_i32 : i32
    %c0_48 = arith.constant 0 : index
    %69 = arith.index_cast %68 : i32 to index
    %c0_49 = arith.constant 0 : index
    %c0_50 = arith.constant 0 : index
    %70 = vector.load %arg1[%c0_48, %69, %c0_49, %c0_50] : memref<1x14x7x256xbf16, #tpu.memory_space<vmem>>, vector<1x1x7x256xbf16>
    %71 = vector.shape_cast %70 : vector<1x1x7x256xbf16> to vector<7x256xbf16>
    %c2_i32_51 = arith.constant 2 : i32
    %72 = arith.muli %c2_i32_51, %c4_i32 : i32
    %c1_i32_52 = arith.constant 1 : i32
    %73 = arith.addi %72, %c1_i32_52 : i32
    %c0_53 = arith.constant 0 : index
    %74 = arith.index_cast %73 : i32 to index
    %c0_54 = arith.constant 0 : index
    %c0_55 = arith.constant 0 : index
    %75 = vector.load %arg1[%c0_53, %74, %c0_54, %c0_55] : memref<1x14x7x256xbf16, #tpu.memory_space<vmem>>, vector<1x1x7x256xbf16>
    %76 = vector.shape_cast %75 : vector<1x1x7x256xbf16> to vector<7x256xbf16>
    %77 = arith.maximumf %71, %76 : vector<7x256xbf16>
    %78 = vector.extract_strided_slice %77 {offsets = [0, 0], sizes = [7, 128], strides = [1, 1]} : vector<7x256xbf16> to vector<7x128xbf16>
    %79 = vector.extract_strided_slice %77 {offsets = [0, 128], sizes = [7, 128], strides = [1, 1]} : vector<7x256xbf16> to vector<7x128xbf16>
    %80 = arith.maximumf %78, %79 : vector<7x128xbf16>
    %c0_56 = arith.constant 0 : index
    %81 = arith.index_cast %c4_i32 : i32 to index
    %c0_57 = arith.constant 0 : index
    %c0_58 = arith.constant 0 : index
    %82 = vector.load %arg2[%c0_56, %81, %c0_57, %c0_58] : memref<1x7x7x128xbf16, #tpu.memory_space<vmem>>, vector<1x1x7x128xbf16>
    %83 = vector.shape_cast %82 : vector<1x1x7x128xbf16> to vector<7x128xbf16>
    %84 = vector.shape_cast %80 : vector<7x128xbf16> to vector<1x1x7x128xbf16>
    tpu.vector_store %arg2[%c0_56, %81, %c0_57, %c0_58], %84 {strides = array<i32>} : memref<1x7x7x128xbf16, #tpu.memory_space<vmem>>, vector<1x1x7x128xbf16>,
    %c5_i32 = arith.constant 5 : i32
    %c2_i32_59 = arith.constant 2 : i32
    %85 = arith.muli %c2_i32_59, %c5_i32 : i32
    %c0_60 = arith.constant 0 : index
    %86 = arith.index_cast %85 : i32 to index
    %c0_61 = arith.constant 0 : index
    %c0_62 = arith.constant 0 : index
    %87 = vector.load %arg1[%c0_60, %86, %c0_61, %c0_62] : memref<1x14x7x256xbf16, #tpu.memory_space<vmem>>, vector<1x1x7x256xbf16>
    %88 = vector.shape_cast %87 : vector<1x1x7x256xbf16> to vector<7x256xbf16>
    %c2_i32_63 = arith.constant 2 : i32
    %89 = arith.muli %c2_i32_63, %c5_i32 : i32
    %c1_i32_64 = arith.constant 1 : i32
    %90 = arith.addi %89, %c1_i32_64 : i32
    %c0_65 = arith.constant 0 : index
    %91 = arith.index_cast %90 : i32 to index
    %c0_66 = arith.constant 0 : index
    %c0_67 = arith.constant 0 : index
    %92 = vector.load %arg1[%c0_65, %91, %c0_66, %c0_67] : memref<1x14x7x256xbf16, #tpu.memory_space<vmem>>, vector<1x1x7x256xbf16>
    %93 = vector.shape_cast %92 : vector<1x1x7x256xbf16> to vector<7x256xbf16>
    %94 = arith.maximumf %88, %93 : vector<7x256xbf16>
    %95 = vector.extract_strided_slice %94 {offsets = [0, 0], sizes = [7, 128], strides = [1, 1]} : vector<7x256xbf16> to vector<7x128xbf16>
    %96 = vector.extract_strided_slice %94 {offsets = [0, 128], sizes = [7, 128], strides = [1, 1]} : vector<7x256xbf16> to vector<7x128xbf16>
    %97 = arith.maximumf %95, %96 : vector<7x128xbf16>
    %c0_68 = arith.constant 0 : index
    %98 = arith.index_cast %c5_i32 : i32 to index
    %c0_69 = arith.constant 0 : index
    %c0_70 = arith.constant 0 : index
    %99 = vector.load %arg2[%c0_68, %98, %c0_69, %c0_70] : memref<1x7x7x128xbf16, #tpu.memory_space<vmem>>, vector<1x1x7x128xbf16>
    %100 = vector.shape_cast %99 : vector<1x1x7x128xbf16> to vector<7x128xbf16>
    %101 = vector.shape_cast %97 : vector<7x128xbf16> to vector<1x1x7x128xbf16>
    tpu.vector_store %arg2[%c0_68, %98, %c0_69, %c0_70], %101 {strides = array<i32>} : memref<1x7x7x128xbf16, #tpu.memory_space<vmem>>, vector<1x1x7x128xbf16>,
    %c6_i32 = arith.constant 6 : i32
    %c2_i32_71 = arith.constant 2 : i32
    %102 = arith.muli %c2_i32_71, %c6_i32 : i32
    %c0_72 = arith.constant 0 : index
    %103 = arith.index_cast %102 : i32 to index
    %c0_73 = arith.constant 0 : index
    %c0_74 = arith.constant 0 : index
    %104 = vector.load %arg1[%c0_72, %103, %c0_73, %c0_74] : memref<1x14x7x256xbf16, #tpu.memory_space<vmem>>, vector<1x1x7x256xbf16>
    %105 = vector.shape_cast %104 : vector<1x1x7x256xbf16> to vector<7x256xbf16>
    %c2_i32_75 = arith.constant 2 : i32
    %106 = arith.muli %c2_i32_75, %c6_i32 : i32
    %c1_i32_76 = arith.constant 1 : i32
    %107 = arith.addi %106, %c1_i32_76 : i32
    %c0_77 = arith.constant 0 : index
    %108 = arith.index_cast %107 : i32 to index
    %c0_78 = arith.constant 0 : index
    %c0_79 = arith.constant 0 : index
    %109 = vector.load %arg1[%c0_77, %108, %c0_78, %c0_79] : memref<1x14x7x256xbf16, #tpu.memory_space<vmem>>, vector<1x1x7x256xbf16>
    %110 = vector.shape_cast %109 : vector<1x1x7x256xbf16> to vector<7x256xbf16>
    %111 = arith.maximumf %105, %110 : vector<7x256xbf16>
    %112 = vector.extract_strided_slice %111 {offsets = [0, 0], sizes = [7, 128], strides = [1, 1]} : vector<7x256xbf16> to vector<7x128xbf16>
    %113 = vector.extract_strided_slice %111 {offsets = [0, 128], sizes = [7, 128], strides = [1, 1]} : vector<7x256xbf16> to vector<7x128xbf16>
    %114 = arith.maximumf %112, %113 : vector<7x128xbf16>
    %c0_80 = arith.constant 0 : index
    %115 = arith.index_cast %c6_i32 : i32 to index
    %c0_81 = arith.constant 0 : index
    %c0_82 = arith.constant 0 : index
    %116 = vector.load %arg2[%c0_80, %115, %c0_81, %c0_82] : memref<1x7x7x128xbf16, #tpu.memory_space<vmem>>, vector<1x1x7x128xbf16>
    %117 = vector.shape_cast %116 : vector<1x1x7x128xbf16> to vector<7x128xbf16>
    %118 = vector.shape_cast %114 : vector<7x128xbf16> to vector<1x1x7x128xbf16>
    tpu.vector_store %arg2[%c0_80, %115, %c0_81, %c0_82], %118 {strides = array<i32>} : memref<1x7x7x128xbf16, #tpu.memory_space<vmem>>, vector<1x1x7x128xbf16>,
    %c7_i32 = arith.constant 7 : i32
    return
  }
  func.func @transform_0(%arg0: i32) -> (i32, i32, i32, i32) {
    %c0_i32 = arith.constant 0 : i32
    %c0_i32_0 = arith.constant 0 : i32
    %c0_i32_1 = arith.constant 0 : i32
    %c0_i32_2 = arith.constant 0 : i32
    return %arg0, %c0_i32, %c0_i32_0, %c0_i32_1 : i32, i32, i32, i32
  }
  func.func @transform_1(%arg0: i32) -> (i32, i32, i32, i32) {
    %c0_i32 = arith.constant 0 : i32
    %c0_i32_0 = arith.constant 0 : i32
    %c0_i32_1 = arith.constant 0 : i32
    %c0_i32_2 = arith.constant 0 : i32
    return %arg0, %c0_i32, %c0_i32_0, %c0_i32_1 : i32, i32, i32, i32
  }
}

module attributes {stable_mosaic.version = 11 : i64} {
  func.func @_maxpool2_kernel(%arg0: i32, %arg1: memref<1x2x1x512xbf16, #tpu.memory_space<vmem>>, %arg2: memref<1x1x1x256xbf16, #tpu.memory_space<vmem>>) attributes {dimension_semantics = [#tpu.dimension_semantics<parallel>], iteration_bounds = array<i64: 2>, scalar_prefetch = 0 : i64, scratch_operands = 0 : i64, tpu.core_type = #tpu.core_type<tc>, window_params = [{transform_indices = @transform_0, window_bounds = array<i64: 1, 2, 1, 512>}, {transform_indices = @transform_1, window_bounds = array<i64: 1, 1, 1, 256>}]} {
    %c0_i32 = arith.constant 0 : i32
    %c2_i32 = arith.constant 2 : i32
    %0 = arith.muli %c2_i32, %c0_i32 : i32
    %c0 = arith.constant 0 : index
    %1 = arith.index_cast %0 : i32 to index
    %c0_0 = arith.constant 0 : index
    %c0_1 = arith.constant 0 : index
    %2 = vector.load %arg1[%c0, %1, %c0_0, %c0_1] : memref<1x2x1x512xbf16, #tpu.memory_space<vmem>>, vector<1x1x1x512xbf16>
    %3 = vector.shape_cast %2 : vector<1x1x1x512xbf16> to vector<1x512xbf16>
    %c2_i32_2 = arith.constant 2 : i32
    %4 = arith.muli %c2_i32_2, %c0_i32 : i32
    %c1_i32 = arith.constant 1 : i32
    %5 = arith.addi %4, %c1_i32 : i32
    %c0_3 = arith.constant 0 : index
    %6 = arith.index_cast %5 : i32 to index
    %c0_4 = arith.constant 0 : index
    %c0_5 = arith.constant 0 : index
    %7 = vector.load %arg1[%c0_3, %6, %c0_4, %c0_5] : memref<1x2x1x512xbf16, #tpu.memory_space<vmem>>, vector<1x1x1x512xbf16>
    %8 = vector.shape_cast %7 : vector<1x1x1x512xbf16> to vector<1x512xbf16>
    %9 = arith.maximumf %3, %8 : vector<1x512xbf16>
    %10 = vector.extract_strided_slice %9 {offsets = [0, 0], sizes = [1, 256], strides = [1, 1]} : vector<1x512xbf16> to vector<1x256xbf16>
    %11 = vector.extract_strided_slice %9 {offsets = [0, 256], sizes = [1, 256], strides = [1, 1]} : vector<1x512xbf16> to vector<1x256xbf16>
    %12 = arith.maximumf %10, %11 : vector<1x256xbf16>
    %c0_6 = arith.constant 0 : index
    %13 = arith.index_cast %c0_i32 : i32 to index
    %c0_7 = arith.constant 0 : index
    %c0_8 = arith.constant 0 : index
    %14 = vector.load %arg2[%c0_6, %13, %c0_7, %c0_8] : memref<1x1x1x256xbf16, #tpu.memory_space<vmem>>, vector<1x1x1x256xbf16>
    %15 = vector.shape_cast %14 : vector<1x1x1x256xbf16> to vector<1x256xbf16>
    %16 = vector.shape_cast %12 : vector<1x256xbf16> to vector<1x1x1x256xbf16>
    tpu.vector_store %arg2[%c0_6, %13, %c0_7, %c0_8], %16 {strides = array<i32>} : memref<1x1x1x256xbf16, #tpu.memory_space<vmem>>, vector<1x1x1x256xbf16>,
    %c1_i32_9 = arith.constant 1 : i32
    return
  }
  func.func @transform_0(%arg0: i32) -> (i32, i32, i32, i32) {
    %c0_i32 = arith.constant 0 : i32
    %c0_i32_0 = arith.constant 0 : i32
    %c0_i32_1 = arith.constant 0 : i32
    %c0_i32_2 = arith.constant 0 : i32
    return %arg0, %c0_i32, %c0_i32_0, %c0_i32_1 : i32, i32, i32, i32
  }
  func.func @transform_1(%arg0: i32) -> (i32, i32, i32, i32) {
    %c0_i32 = arith.constant 0 : i32
    %c0_i32_0 = arith.constant 0 : i32
    %c0_i32_1 = arith.constant 0 : i32
    %c0_i32_2 = arith.constant 0 : i32
    return %arg0, %c0_i32, %c0_i32_0, %c0_i32_1 : i32, i32, i32, i32
  }
}

module attributes {stable_mosaic.version = 11 : i64} {
  func.func @_conv_relu_kernel(%arg0: i32, %arg1: memref<1x3x3x128xbf16, #tpu.memory_space<vmem>>, %arg2: memref<2x2x128x256xbf16, #tpu.memory_space<vmem>>, %arg3: memref<1x256xf32, #tpu.memory_space<vmem>>, %arg4: memref<1x2x2x256xbf16, #tpu.memory_space<vmem>>) attributes {dimension_semantics = [#tpu.dimension_semantics<parallel>], iteration_bounds = array<i64: 2>, scalar_prefetch = 0 : i64, scratch_operands = 0 : i64, tpu.core_type = #tpu.core_type<tc>, window_params = [{transform_indices = @transform_0, window_bounds = array<i64: 1, 3, 3, 128>}, {pipeline_mode = #tpu.pipeline_mode<synchronous>, transform_indices = @transform_1, window_bounds = array<i64: 2, 2, 128, 256>}, {pipeline_mode = #tpu.pipeline_mode<synchronous>, transform_indices = @transform_2, window_bounds = array<i64: 1, 256>}, {transform_indices = @transform_3, window_bounds = array<i64: 1, 2, 2, 256>}]} {
    %c0_i32 = arith.constant 0 : i32
    %cst = arith.constant 0.000000e+00 : f32
    %0 = vector.broadcast %cst : f32 to vector<2x256xf32>
    %c0_i32_0 = arith.constant 0 : i32
    %1 = arith.addi %c0_i32, %c0_i32_0 : i32
    %c0 = arith.constant 0 : index
    %2 = arith.index_cast %1 : i32 to index
    %c0_1 = arith.constant 0 : index
    %c0_2 = arith.constant 0 : index
    %3 = vector.load %arg1[%c0, %2, %c0_1, %c0_2] : memref<1x3x3x128xbf16, #tpu.memory_space<vmem>>, vector<1x1x2x128xbf16>
    %4 = vector.shape_cast %3 : vector<1x1x2x128xbf16> to vector<2x128xbf16>
    %c0_3 = arith.constant 0 : index
    %c0_4 = arith.constant 0 : index
    %c0_5 = arith.constant 0 : index
    %c0_6 = arith.constant 0 : index
    %5 = vector.load %arg2[%c0_3, %c0_4, %c0_5, %c0_6] : memref<2x2x128x256xbf16, #tpu.memory_space<vmem>>, vector<1x1x128x256xbf16>
    %6 = vector.shape_cast %5 : vector<1x1x128x256xbf16> to vector<128x256xbf16>
    %cst_7 = arith.constant dense<0.000000e+00> : vector<2x256xf32>
    %7 = tpu.matmul %4, %6, %cst_7 {dimension_numbers = #tpu.dot_dimension_numbers<[1], [0], [0], [1], [0, 0, 1, 1], [], []>} : vector<2x128xbf16>, vector<128x256xbf16>, vector<2x256xf32> -> vector<2x256xf32>
    %8 = arith.addf %0, %7 : vector<2x256xf32>
    %c0_i32_8 = arith.constant 0 : i32
    %9 = arith.addi %c0_i32, %c0_i32_8 : i32
    %c0_9 = arith.constant 0 : index
    %10 = arith.index_cast %9 : i32 to index
    %c1 = arith.constant 1 : index
    %c0_10 = arith.constant 0 : index
    %11 = vector.load %arg1[%c0_9, %10, %c1, %c0_10] : memref<1x3x3x128xbf16, #tpu.memory_space<vmem>>, vector<1x1x2x128xbf16>
    %12 = vector.shape_cast %11 : vector<1x1x2x128xbf16> to vector<2x128xbf16>
    %c0_11 = arith.constant 0 : index
    %c1_12 = arith.constant 1 : index
    %c0_13 = arith.constant 0 : index
    %c0_14 = arith.constant 0 : index
    %13 = vector.load %arg2[%c0_11, %c1_12, %c0_13, %c0_14] : memref<2x2x128x256xbf16, #tpu.memory_space<vmem>>, vector<1x1x128x256xbf16>
    %14 = vector.shape_cast %13 : vector<1x1x128x256xbf16> to vector<128x256xbf16>
    %cst_15 = arith.constant dense<0.000000e+00> : vector<2x256xf32>
    %15 = tpu.matmul %12, %14, %cst_15 {dimension_numbers = #tpu.dot_dimension_numbers<[1], [0], [0], [1], [0, 0, 1, 1], [], []>} : vector<2x128xbf16>, vector<128x256xbf16>, vector<2x256xf32> -> vector<2x256xf32>
    %16 = arith.addf %8, %15 : vector<2x256xf32>
    %c1_i32 = arith.constant 1 : i32
    %17 = arith.addi %c0_i32, %c1_i32 : i32
    %c0_16 = arith.constant 0 : index
    %18 = arith.index_cast %17 : i32 to index
    %c0_17 = arith.constant 0 : index
    %c0_18 = arith.constant 0 : index
    %19 = vector.load %arg1[%c0_16, %18, %c0_17, %c0_18] : memref<1x3x3x128xbf16, #tpu.memory_space<vmem>>, vector<1x1x2x128xbf16>
    %20 = vector.shape_cast %19 : vector<1x1x2x128xbf16> to vector<2x128xbf16>
    %c1_19 = arith.constant 1 : index
    %c0_20 = arith.constant 0 : index
    %c0_21 = arith.constant 0 : index
    %c0_22 = arith.constant 0 : index
    %21 = vector.load %arg2[%c1_19, %c0_20, %c0_21, %c0_22] : memref<2x2x128x256xbf16, #tpu.memory_space<vmem>>, vector<1x1x128x256xbf16>
    %22 = vector.shape_cast %21 : vector<1x1x128x256xbf16> to vector<128x256xbf16>
    %cst_23 = arith.constant dense<0.000000e+00> : vector<2x256xf32>
    %23 = tpu.matmul %20, %22, %cst_23 {dimension_numbers = #tpu.dot_dimension_numbers<[1], [0], [0], [1], [0, 0, 1, 1], [], []>} : vector<2x128xbf16>, vector<128x256xbf16>, vector<2x256xf32> -> vector<2x256xf32>
    %24 = arith.addf %16, %23 : vector<2x256xf32>
    %c1_i32_24 = arith.constant 1 : i32
    %25 = arith.addi %c0_i32, %c1_i32_24 : i32
    %c0_25 = arith.constant 0 : index
    %26 = arith.index_cast %25 : i32 to index
    %c1_26 = arith.constant 1 : index
    %c0_27 = arith.constant 0 : index
    %27 = vector.load %arg1[%c0_25, %26, %c1_26, %c0_27] : memref<1x3x3x128xbf16, #tpu.memory_space<vmem>>, vector<1x1x2x128xbf16>
    %28 = vector.shape_cast %27 : vector<1x1x2x128xbf16> to vector<2x128xbf16>
    %c1_28 = arith.constant 1 : index
    %c1_29 = arith.constant 1 : index
    %c0_30 = arith.constant 0 : index
    %c0_31 = arith.constant 0 : index
    %29 = vector.load %arg2[%c1_28, %c1_29, %c0_30, %c0_31] : memref<2x2x128x256xbf16, #tpu.memory_space<vmem>>, vector<1x1x128x256xbf16>
    %30 = vector.shape_cast %29 : vector<1x1x128x256xbf16> to vector<128x256xbf16>
    %cst_32 = arith.constant dense<0.000000e+00> : vector<2x256xf32>
    %31 = tpu.matmul %28, %30, %cst_32 {dimension_numbers = #tpu.dot_dimension_numbers<[1], [0], [0], [1], [0, 0, 1, 1], [], []>} : vector<2x128xbf16>, vector<128x256xbf16>, vector<2x256xf32> -> vector<2x256xf32>
    %32 = arith.addf %24, %31 : vector<2x256xf32>
    %c0_33 = arith.constant 0 : index
    %c0_34 = arith.constant 0 : index
    %33 = vector.load %arg3[%c0_33, %c0_34] : memref<1x256xf32, #tpu.memory_space<vmem>>, vector<1x256xf32>
    %34 = vector.broadcast %33 : vector<1x256xf32> to vector<2x256xf32>
    %35 = arith.addf %32, %34 : vector<2x256xf32>
    %cst_35 = arith.constant 0.000000e+00 : f32
    %36 = vector.broadcast %cst_35 : f32 to vector<2x256xf32>
    %37 = arith.maximumf %35, %36 : vector<2x256xf32>
    %38 = arith.truncf %37 : vector<2x256xf32> to vector<2x256xbf16>
    %c0_36 = arith.constant 0 : index
    %39 = arith.index_cast %c0_i32 : i32 to index
    %c0_37 = arith.constant 0 : index
    %c0_38 = arith.constant 0 : index
    %40 = vector.load %arg4[%c0_36, %39, %c0_37, %c0_38] : memref<1x2x2x256xbf16, #tpu.memory_space<vmem>>, vector<1x1x2x256xbf16>
    %41 = vector.shape_cast %40 : vector<1x1x2x256xbf16> to vector<2x256xbf16>
    %42 = vector.shape_cast %38 : vector<2x256xbf16> to vector<1x1x2x256xbf16>
    tpu.vector_store %arg4[%c0_36, %39, %c0_37, %c0_38], %42 {strides = array<i32>} : memref<1x2x2x256xbf16, #tpu.memory_space<vmem>>, vector<1x1x2x256xbf16>,
    %c1_i32_39 = arith.constant 1 : i32
    %cst_40 = arith.constant 0.000000e+00 : f32
    %43 = vector.broadcast %cst_40 : f32 to vector<2x256xf32>
    %c0_i32_41 = arith.constant 0 : i32
    %44 = arith.addi %c1_i32_39, %c0_i32_41 : i32
    %c0_42 = arith.constant 0 : index
    %45 = arith.index_cast %44 : i32 to index
    %c0_43 = arith.constant 0 : index
    %c0_44 = arith.constant 0 : index
    %46 = vector.load %arg1[%c0_42, %45, %c0_43, %c0_44] : memref<1x3x3x128xbf16, #tpu.memory_space<vmem>>, vector<1x1x2x128xbf16>
    %47 = vector.shape_cast %46 : vector<1x1x2x128xbf16> to vector<2x128xbf16>
    %c0_45 = arith.constant 0 : index
    %c0_46 = arith.constant 0 : index
    %c0_47 = arith.constant 0 : index
    %c0_48 = arith.constant 0 : index
    %48 = vector.load %arg2[%c0_45, %c0_46, %c0_47, %c0_48] : memref<2x2x128x256xbf16, #tpu.memory_space<vmem>>, vector<1x1x128x256xbf16>
    %49 = vector.shape_cast %48 : vector<1x1x128x256xbf16> to vector<128x256xbf16>
    %cst_49 = arith.constant dense<0.000000e+00> : vector<2x256xf32>
    %50 = tpu.matmul %47, %49, %cst_49 {dimension_numbers = #tpu.dot_dimension_numbers<[1], [0], [0], [1], [0, 0, 1, 1], [], []>} : vector<2x128xbf16>, vector<128x256xbf16>, vector<2x256xf32> -> vector<2x256xf32>
    %51 = arith.addf %43, %50 : vector<2x256xf32>
    %c0_i32_50 = arith.constant 0 : i32
    %52 = arith.addi %c1_i32_39, %c0_i32_50 : i32
    %c0_51 = arith.constant 0 : index
    %53 = arith.index_cast %52 : i32 to index
    %c1_52 = arith.constant 1 : index
    %c0_53 = arith.constant 0 : index
    %54 = vector.load %arg1[%c0_51, %53, %c1_52, %c0_53] : memref<1x3x3x128xbf16, #tpu.memory_space<vmem>>, vector<1x1x2x128xbf16>
    %55 = vector.shape_cast %54 : vector<1x1x2x128xbf16> to vector<2x128xbf16>
    %c0_54 = arith.constant 0 : index
    %c1_55 = arith.constant 1 : index
    %c0_56 = arith.constant 0 : index
    %c0_57 = arith.constant 0 : index
    %56 = vector.load %arg2[%c0_54, %c1_55, %c0_56, %c0_57] : memref<2x2x128x256xbf16, #tpu.memory_space<vmem>>, vector<1x1x128x256xbf16>
    %57 = vector.shape_cast %56 : vector<1x1x128x256xbf16> to vector<128x256xbf16>
    %cst_58 = arith.constant dense<0.000000e+00> : vector<2x256xf32>
    %58 = tpu.matmul %55, %57, %cst_58 {dimension_numbers = #tpu.dot_dimension_numbers<[1], [0], [0], [1], [0, 0, 1, 1], [], []>} : vector<2x128xbf16>, vector<128x256xbf16>, vector<2x256xf32> -> vector<2x256xf32>
    %59 = arith.addf %51, %58 : vector<2x256xf32>
    %c1_i32_59 = arith.constant 1 : i32
    %60 = arith.addi %c1_i32_39, %c1_i32_59 : i32
    %c0_60 = arith.constant 0 : index
    %61 = arith.index_cast %60 : i32 to index
    %c0_61 = arith.constant 0 : index
    %c0_62 = arith.constant 0 : index
    %62 = vector.load %arg1[%c0_60, %61, %c0_61, %c0_62] : memref<1x3x3x128xbf16, #tpu.memory_space<vmem>>, vector<1x1x2x128xbf16>
    %63 = vector.shape_cast %62 : vector<1x1x2x128xbf16> to vector<2x128xbf16>
    %c1_63 = arith.constant 1 : index
    %c0_64 = arith.constant 0 : index
    %c0_65 = arith.constant 0 : index
    %c0_66 = arith.constant 0 : index
    %64 = vector.load %arg2[%c1_63, %c0_64, %c0_65, %c0_66] : memref<2x2x128x256xbf16, #tpu.memory_space<vmem>>, vector<1x1x128x256xbf16>
    %65 = vector.shape_cast %64 : vector<1x1x128x256xbf16> to vector<128x256xbf16>
    %cst_67 = arith.constant dense<0.000000e+00> : vector<2x256xf32>
    %66 = tpu.matmul %63, %65, %cst_67 {dimension_numbers = #tpu.dot_dimension_numbers<[1], [0], [0], [1], [0, 0, 1, 1], [], []>} : vector<2x128xbf16>, vector<128x256xbf16>, vector<2x256xf32> -> vector<2x256xf32>
    %67 = arith.addf %59, %66 : vector<2x256xf32>
    %c1_i32_68 = arith.constant 1 : i32
    %68 = arith.addi %c1_i32_39, %c1_i32_68 : i32
    %c0_69 = arith.constant 0 : index
    %69 = arith.index_cast %68 : i32 to index
    %c1_70 = arith.constant 1 : index
    %c0_71 = arith.constant 0 : index
    %70 = vector.load %arg1[%c0_69, %69, %c1_70, %c0_71] : memref<1x3x3x128xbf16, #tpu.memory_space<vmem>>, vector<1x1x2x128xbf16>
    %71 = vector.shape_cast %70 : vector<1x1x2x128xbf16> to vector<2x128xbf16>
    %c1_72 = arith.constant 1 : index
    %c1_73 = arith.constant 1 : index
    %c0_74 = arith.constant 0 : index
    %c0_75 = arith.constant 0 : index
    %72 = vector.load %arg2[%c1_72, %c1_73, %c0_74, %c0_75] : memref<2x2x128x256xbf16, #tpu.memory_space<vmem>>, vector<1x1x128x256xbf16>
    %73 = vector.shape_cast %72 : vector<1x1x128x256xbf16> to vector<128x256xbf16>
    %cst_76 = arith.constant dense<0.000000e+00> : vector<2x256xf32>
    %74 = tpu.matmul %71, %73, %cst_76 {dimension_numbers = #tpu.dot_dimension_numbers<[1], [0], [0], [1], [0, 0, 1, 1], [], []>} : vector<2x128xbf16>, vector<128x256xbf16>, vector<2x256xf32> -> vector<2x256xf32>
    %75 = arith.addf %67, %74 : vector<2x256xf32>
    %c0_77 = arith.constant 0 : index
    %c0_78 = arith.constant 0 : index
    %76 = vector.load %arg3[%c0_77, %c0_78] : memref<1x256xf32, #tpu.memory_space<vmem>>, vector<1x256xf32>
    %77 = vector.broadcast %76 : vector<1x256xf32> to vector<2x256xf32>
    %78 = arith.addf %75, %77 : vector<2x256xf32>
    %cst_79 = arith.constant 0.000000e+00 : f32
    %79 = vector.broadcast %cst_79 : f32 to vector<2x256xf32>
    %80 = arith.maximumf %78, %79 : vector<2x256xf32>
    %81 = arith.truncf %80 : vector<2x256xf32> to vector<2x256xbf16>
    %c0_80 = arith.constant 0 : index
    %82 = arith.index_cast %c1_i32_39 : i32 to index
    %c0_81 = arith.constant 0 : index
    %c0_82 = arith.constant 0 : index
    %83 = vector.load %arg4[%c0_80, %82, %c0_81, %c0_82] : memref<1x2x2x256xbf16, #tpu.memory_space<vmem>>, vector<1x1x2x256xbf16>
    %84 = vector.shape_cast %83 : vector<1x1x2x256xbf16> to vector<2x256xbf16>
    %85 = vector.shape_cast %81 : vector<2x256xbf16> to vector<1x1x2x256xbf16>
    tpu.vector_store %arg4[%c0_80, %82, %c0_81, %c0_82], %85 {strides = array<i32>} : memref<1x2x2x256xbf16, #tpu.memory_space<vmem>>, vector<1x1x2x256xbf16>,
    %c2_i32 = arith.constant 2 : i32
    return
  }
  func.func @transform_0(%arg0: i32) -> (i32, i32, i32, i32) {
    %c0_i32 = arith.constant 0 : i32
    %c0_i32_0 = arith.constant 0 : i32
    %c0_i32_1 = arith.constant 0 : i32
    %c0_i32_2 = arith.constant 0 : i32
    return %arg0, %c0_i32, %c0_i32_0, %c0_i32_1 : i32, i32, i32, i32
  }
  func.func @transform_1(%arg0: i32) -> (i32, i32, i32, i32) {
    %c0_i32 = arith.constant 0 : i32
    %c0_i32_0 = arith.constant 0 : i32
    %c0_i32_1 = arith.constant 0 : i32
    %c0_i32_2 = arith.constant 0 : i32
    %c0_i32_3 = arith.constant 0 : i32
    return %c0_i32, %c0_i32_0, %c0_i32_1, %c0_i32_2 : i32, i32, i32, i32
  }
  func.func @transform_2(%arg0: i32) -> (i32, i32) {
    %c0_i32 = arith.constant 0 : i32
    %c0_i32_0 = arith.constant 0 : i32
    %c0_i32_1 = arith.constant 0 : i32
    return %c0_i32, %c0_i32_0 : i32, i32
  }
  func.func @transform_3(%arg0: i32) -> (i32, i32, i32, i32) {
    %c0_i32 = arith.constant 0 : i32
    %c0_i32_0 = arith.constant 0 : i32
    %c0_i32_1 = arith.constant 0 : i32
    %c0_i32_2 = arith.constant 0 : i32
    return %arg0, %c0_i32, %c0_i32_0, %c0_i32_1 : i32, i32, i32, i32
  }
}

module attributes {stable_mosaic.version = 11 : i64} {
  func.func @_fc_head_kernel(%arg0: i32, %arg1: memref<2x256xbf16, #tpu.memory_space<vmem>>, %arg2: memref<256x128xbf16, #tpu.memory_space<vmem>>, %arg3: memref<1x128xf32, #tpu.memory_space<vmem>>, %arg4: memref<128x128xbf16, #tpu.memory_space<vmem>>, %arg5: memref<1x128xf32, #tpu.memory_space<vmem>>, %arg6: memref<128x128xbf16, #tpu.memory_space<vmem>>, %arg7: memref<1x128xf32, #tpu.memory_space<vmem>>, %arg8: memref<2x128xf32, #tpu.memory_space<vmem>>) attributes {dimension_semantics = [#tpu.dimension_semantics<parallel>], iteration_bounds = array<i64: 1>, scalar_prefetch = 0 : i64, scratch_operands = 0 : i64, tpu.core_type = #tpu.core_type<tc>, window_params = [{transform_indices = @transform_0, window_bounds = array<i64: 2, 256>}, {pipeline_mode = #tpu.pipeline_mode<synchronous>, transform_indices = @transform_1, window_bounds = array<i64: 256, 128>}, {pipeline_mode = #tpu.pipeline_mode<synchronous>, transform_indices = @transform_2, window_bounds = array<i64: 1, 128>}, {pipeline_mode = #tpu.pipeline_mode<synchronous>, transform_indices = @transform_3, window_bounds = array<i64: 128, 128>}, {pipeline_mode = #tpu.pipeline_mode<synchronous>, transform_indices = @transform_4, window_bounds = array<i64: 1, 128>}, {pipeline_mode = #tpu.pipeline_mode<synchronous>, transform_indices = @transform_5, window_bounds = array<i64: 128, 128>}, {pipeline_mode = #tpu.pipeline_mode<synchronous>, transform_indices = @transform_6, window_bounds = array<i64: 1, 128>}, {transform_indices = @transform_7, window_bounds = array<i64: 2, 128>}]} {
    %c0 = arith.constant 0 : index
    %c0_0 = arith.constant 0 : index
    %0 = vector.load %arg1[%c0, %c0_0] : memref<2x256xbf16, #tpu.memory_space<vmem>>, vector<2x256xbf16>
    %c0_1 = arith.constant 0 : index
    %c0_2 = arith.constant 0 : index
    %1 = vector.load %arg2[%c0_1, %c0_2] : memref<256x128xbf16, #tpu.memory_space<vmem>>, vector<256x128xbf16>
    %cst = arith.constant dense<0.000000e+00> : vector<2x128xf32>
    %2 = tpu.matmul %0, %1, %cst {dimension_numbers = #tpu.dot_dimension_numbers<[1], [0], [0], [1], [0, 0, 1, 1], [], []>} : vector<2x256xbf16>, vector<256x128xbf16>, vector<2x128xf32> -> vector<2x128xf32>
    %c0_3 = arith.constant 0 : index
    %c0_4 = arith.constant 0 : index
    %3 = vector.load %arg3[%c0_3, %c0_4] : memref<1x128xf32, #tpu.memory_space<vmem>>, vector<1x128xf32>
    %4 = vector.broadcast %3 : vector<1x128xf32> to vector<2x128xf32>
    %5 = arith.addf %2, %4 : vector<2x128xf32>
    %cst_5 = arith.constant 0.000000e+00 : f32
    %6 = vector.broadcast %cst_5 : f32 to vector<2x128xf32>
    %7 = arith.maximumf %5, %6 : vector<2x128xf32>
    %8 = arith.truncf %7 : vector<2x128xf32> to vector<2x128xbf16>
    %c0_6 = arith.constant 0 : index
    %c0_7 = arith.constant 0 : index
    %9 = vector.load %arg4[%c0_6, %c0_7] : memref<128x128xbf16, #tpu.memory_space<vmem>>, vector<128x128xbf16>
    %cst_8 = arith.constant dense<0.000000e+00> : vector<2x128xf32>
    %10 = tpu.matmul %8, %9, %cst_8 {dimension_numbers = #tpu.dot_dimension_numbers<[1], [0], [0], [1], [0, 0, 1, 1], [], []>} : vector<2x128xbf16>, vector<128x128xbf16>, vector<2x128xf32> -> vector<2x128xf32>
    %c0_9 = arith.constant 0 : index
    %c0_10 = arith.constant 0 : index
    %11 = vector.load %arg5[%c0_9, %c0_10] : memref<1x128xf32, #tpu.memory_space<vmem>>, vector<1x128xf32>
    %12 = vector.broadcast %11 : vector<1x128xf32> to vector<2x128xf32>
    %13 = arith.addf %10, %12 : vector<2x128xf32>
    %cst_11 = arith.constant 0.000000e+00 : f32
    %14 = vector.broadcast %cst_11 : f32 to vector<2x128xf32>
    %15 = arith.maximumf %13, %14 : vector<2x128xf32>
    %16 = arith.truncf %15 : vector<2x128xf32> to vector<2x128xbf16>
    %c0_12 = arith.constant 0 : index
    %c0_13 = arith.constant 0 : index
    %17 = vector.load %arg6[%c0_12, %c0_13] : memref<128x128xbf16, #tpu.memory_space<vmem>>, vector<128x128xbf16>
    %cst_14 = arith.constant dense<0.000000e+00> : vector<2x128xf32>
    %18 = tpu.matmul %16, %17, %cst_14 {dimension_numbers = #tpu.dot_dimension_numbers<[1], [0], [0], [1], [0, 0, 1, 1], [], []>} : vector<2x128xbf16>, vector<128x128xbf16>, vector<2x128xf32> -> vector<2x128xf32>
    %c0_15 = arith.constant 0 : index
    %c0_16 = arith.constant 0 : index
    %19 = vector.load %arg7[%c0_15, %c0_16] : memref<1x128xf32, #tpu.memory_space<vmem>>, vector<1x128xf32>
    %20 = vector.broadcast %19 : vector<1x128xf32> to vector<2x128xf32>
    %21 = arith.addf %18, %20 : vector<2x128xf32>
    %c0_17 = arith.constant 0 : index
    %c0_18 = arith.constant 0 : index
    %22 = vector.load %arg8[%c0_17, %c0_18] : memref<2x128xf32, #tpu.memory_space<vmem>>, vector<2x128xf32>
    tpu.vector_store %arg8[%c0_17, %c0_18], %21 {strides = array<i32>} : memref<2x128xf32, #tpu.memory_space<vmem>>, vector<2x128xf32>,
    return
  }
  func.func @transform_0(%arg0: i32) -> (i32, i32) {
    %c0_i32 = arith.constant 0 : i32
    %c0_i32_0 = arith.constant 0 : i32
    return %arg0, %c0_i32 : i32, i32
  }
  func.func @transform_1(%arg0: i32) -> (i32, i32) {
    %c0_i32 = arith.constant 0 : i32
    %c0_i32_0 = arith.constant 0 : i32
    %c0_i32_1 = arith.constant 0 : i32
    return %c0_i32, %c0_i32_0 : i32, i32
  }
  func.func @transform_2(%arg0: i32) -> (i32, i32) {
    %c0_i32 = arith.constant 0 : i32
    %c0_i32_0 = arith.constant 0 : i32
    %c0_i32_1 = arith.constant 0 : i32
    return %c0_i32, %c0_i32_0 : i32, i32
  }
  func.func @transform_3(%arg0: i32) -> (i32, i32) {
    %c0_i32 = arith.constant 0 : i32
    %c0_i32_0 = arith.constant 0 : i32
    %c0_i32_1 = arith.constant 0 : i32
    return %c0_i32, %c0_i32_0 : i32, i32
  }
  func.func @transform_4(%arg0: i32) -> (i32, i32) {
    %c0_i32 = arith.constant 0 : i32
    %c0_i32_0 = arith.constant 0 : i32
    %c0_i32_1 = arith.constant 0 : i32
    return %c0_i32, %c0_i32_0 : i32, i32
  }
  func.func @transform_5(%arg0: i32) -> (i32, i32) {
    %c0_i32 = arith.constant 0 : i32
    %c0_i32_0 = arith.constant 0 : i32
    %c0_i32_1 = arith.constant 0 : i32
    return %c0_i32, %c0_i32_0 : i32, i32
  }
  func.func @transform_6(%arg0: i32) -> (i32, i32) {
    %c0_i32 = arith.constant 0 : i32
    %c0_i32_0 = arith.constant 0 : i32
    %c0_i32_1 = arith.constant 0 : i32
    return %c0_i32, %c0_i32_0 : i32, i32
  }
  func.func @transform_7(%arg0: i32) -> (i32, i32) {
    %c0_i32 = arith.constant 0 : i32
    %c0_i32_0 = arith.constant 0 : i32
    return %arg0, %c0_i32 : i32, i32
  }
}

</mosaic_0001>

<bundles_post_ra>
// kernel: model_spg_forward.10
= control target key start
LH: loop header
LB: loop body
LE: loop exit
PB: predicated region body
PF: predicated region fallthrough
CT: control target
= control target key end

     0   :  { %s258_s6 = smov 0   ;;  %s275_s0 = inlined_call_operand.vmem [shape: bf16[2,6,3,256], index: 0, kind: input, shape index: {}]   ;;  %s276_s1 = inlined_call_operand.vmem [shape: bf16[2,3,3,128], index: 1, kind: output, shape index: {}]  }
   0x1 LB: > { %s212_s7 = sadd.s32 4294967295, %s246_s6   ;;  %p216_p0 = scmp.ge.s32.totalorder %s246_s6, 1  ;;  %s246_s6 = sphi %s258_s6, %s11_s6  }
   0x2   : > { %p87_p1 = scmp.lt.s32.totalorder %s246_s6, 3 }
   0x4   : > { %p88_p2 = pnand %p216_p0, %p87_p1 }
   0x5   : > { %p107_p3 = scmp.lt.s32.totalorder (!%p88_p2), %s212_s7, 1 }
   0x6   : > { %91 = sbr.rel (%p88_p2) target bundleno = 25 (0x19), region = 24 }
   0xb   : > { %s278_s7 = smov (!%p107_p3, %s212_s7), 1  ;;  %vm125_vm0 = vcmask 1041408   ;;  %vm126_vm1 = vsmask.f32 1280 }
   0xc   : > { %s230_s8 = smul.u32 24, %s278_s7  ;;  %vm127_vm2 = vmand %vm125_vm0, %vm126_vm1 }
   0xd   : > { %s231_s9 = smul.u32 6, %s278_s7 }
   0xe   : > { %s111_s12 = scalar_lea.vmem %s275_s0, %s230_s8 }
   0xf   : > { %v117_v0 = vld [vmem:[%s111_s12] sm:$0xf]  ;;  %v219_v1 = vld [vmem:[%s111_s12 + $0x4] sm:$0xf]  ;;  %v220_v2 = vld [vmem:[%s111_s12 + $0x8] sm:$0xf]  ;;  %s116_s15 = scalar_lea.vmem %s276_s1, %s231_s9 }
  0x10   : > { %v120_v3 = vmax.bf16 %v219_v1, %v117_v0  ;;  %v221_v4 = vld [vmem:[%s111_s12 + $0xc] sm:$0xf]  ;;  %v224_v6 = vld [vmem:[%s111_s12 + $0x10] sm:$0xf]  ;;  %v225_v7 = vld [vmem:[%s111_s12 + $0x14] sm:$0xf] }
  0x11   : > { %v135_v5 = vmax.bf16 %v221_v4, %v220_v2  ;;  %v148_v9 = vmax.bf16 %v225_v7, %v224_v6  ;;  %v128_v10 = vld [vmem:[%s116_s15] sm:$0x3]  ;;  %v222_v13 = vld [vmem:[%s116_s15 + $0x2] sm:$0x3]  ;;  %v226_v16 = vld [vmem:[%s116_s15 + $0x4] sm:$0x3] }
  0x12   : > { %v122_v8 = vrot.slane %v120_v3, 2 }
  0x13   : > { %v137_v11 = vrot.slane %v135_v5, 2  ;;  %v150_v14 = vrot.slane %v148_v9, 2 }
  0x14   : > { %v124_v12 = vmax.bf16 %v122_v8, %v120_v3 }
  0x15   : > { %v139_v15 = vmax.bf16 %v137_v11, %v135_v5  ;;  %v152_v18 = vmax.bf16 %v150_v14, %v148_v9 }
  0x16   : > { %v129_v17 = vsel %vm127_vm2, %v124_v12, %v128_v10 }
  0x17   : > { %130 = vst [vmem:[%s116_s15] sm:$0x3] %v129_v17  ;;  %v142_v19 = vsel %vm127_vm2, %v139_v15, %v222_v13  ;;  %v155_v20 = vsel %vm127_vm2, %v152_v18, %v226_v16 }
  0x18   : > { %223 = vst [vmem:[%s116_s15 + $0x2] sm:$0x3] %v142_v19  ;;  %227 = vst [vmem:[%s116_s15 + $0x4] sm:$0x3] %v155_v20 }
  0x19 PF: > { %s11_s6 = sadd.s32 1, %s246_s6  }
  0x1a   : > { %p8_p4 = scmp.ge.s32.totalorder %s11_s6, 4  }
  0x1c   :  { %10 = sbr.rel (!%p8_p4) target bundleno = 1 (0x1), region = 61 }

// kernel: model_spg_forward.7
= control target key start
LH: loop header
LB: loop body
LE: loop exit
PB: predicated region body
PF: predicated region fallthrough
CT: control target
= control target key end

     0   :  { %s646_s12 = smov 0   ;;  %s713_s0 = inlined_call_operand.vmem [shape: bf16[2,16,16,3], index: 0, kind: input, shape index: {}]   ;;  %s714_s1 = inlined_call_operand.vmem [shape: bf16[2,2,3,128], index: 1, kind: input, shape index: {}]   ;;  %s715_s2 = inlined_call_operand.vmem [shape: f32[1,128], index: 2, kind: input, shape index: {}]   ;;  %s716_s3 = inlined_call_operand.vmem [shape: bf16[2,14,14,128], index: 3, kind: output, shape index: {}]  }
   0x1 LB: > { %s515_s13 = sadd.s32 4294967295, %s617_s12   ;;  %p519_p0 = scmp.ge.s32.totalorder %s617_s12, 1  ;;  %s617_s12 = sphi %s646_s12, %s13_s12  }
   0x2   : > { %p137_p1 = scmp.lt.s32.totalorder %s617_s12, 3 }
   0x4   : > { %p138_p2 = pnand %p519_p0, %p137_p1 }
   0x5   : > { %p161_p3 = scmp.lt.s32.totalorder (!%p138_p2), %s515_s13, 1  ;;  %s664_s22 = smov (!%p138_p2), 0  }
   0x6   : > { %141 = sbr.rel (%p138_p2) target bundleno = 244 (0xf4), region = 32 }
   0xb   : > { %s718_s13 = smov (!%p161_p3, %s515_s13), 1 }
   0xc   : > { %s546_s14 = sshll.u32 %s718_s13, 7  ;;  %s583_s15 = smul.u32 112, %s718_s13 }
   0xd   : > { %s657_s18 = scalar_lea.vmem %s713_s0, %s546_s14 }
   0xe   : > { %s662_s21 = scalar_lea.vmem %s716_s3, %s583_s15 }
   0xf LB: >> { %v183_v0 = vld [vmem:[%s714_s1] sm:$0x3]  ;;  %vm203_vm0 = vcmask 1040384   ;;  %vm204_vm1 = vcmask 1041408   ;;  %v623_v1 = vmov 0.0   ;;  %v624_v2 = vmov 65535   ;;  %s621_s22 = sphi %s664_s22, %s177_s22  }
  0x10   : >> { %565 = vmatprep.subr.bf16.mxu1 %v623_v1  ;;  %v205_v3 = vsel %vm203_vm0, 4294967295, %v624_v2  ;;  %559 = vmatprep.subr.bf16.mxu0 %v623_v1  ;;  %v525_v4 = vld [vmem:[%s714_s1 + $0x2] sm:$0x3]  ;;  %vm625_vm2 = vmmov 0   ;;  %s547_s27 = sshll.u32 %s621_s22, 3  ;;  %vm199_vm3 = vcmask 23552  }
  0x11   : >> { %v206_v5 = vsel %vm204_vm1, %v205_v3, 0  ;;  %567 = vmatprep.mubr.msk.bf16.mxu1 %vm625_vm2, %v623_v1  ;;  %561 = vmatprep.mubr.msk.bf16.mxu0 %vm625_vm2, %v623_v1  ;;  %v537_v6 = vld [vmem:[%s714_s1 + $0x6] sm:$0x3]  ;;  %s684_s30 = scalar_lea.vmem %s657_s18, %s547_s27  ;;  %v533_v20 = vld [vmem:[%s714_s1 + $0x4] sm:$0x3]  ;;  %s445_s8 = scalar_lea.vmem %s662_s21, %s547_s27 }
  0x12   : >> { %v258_v7 = vand.u32 %v206_v5, %v183_v0  ;;  %v208_v8 = vand.u32 %v525_v4, %v206_v5  ;;  %v181_v9 = vld [vmem:[%s684_s30] sm:$0xf]  ;;  %v182_v10 = vld [vmem:[%s684_s30 + $0x4] sm:$0x7]  ;;  %v380_v14 = vand.u32 %v537_v6, %v206_v5  ;;  %v531_v15 = vld [vmem:[%s684_s30 + $0x8] sm:$0xf]  ;;  %v318_v24 = vand.u32 %v533_v20, %v206_v5 }
  0x13   : >> { %v184_v11 = vld [vmem:[%s684_s30 + $0x4] sm:$0xf]  ;;  %v528_v13 = vcombine.low %v181_v9, %v182_v10  ;;  %v536_v16 = vld [vmem:[%s684_s30 + $0xc] sm:$0xf]  ;;  %v540_v45 = vld [vmem:[%s715_s2] ss:$0 sm:$0xff] }
  0x14   : >> { %566 = vmatpush3.bf16.msra.mxu1 %v258_v7  ;;  %560 = vmatpush3.bf16.msra.mxu0 %v208_v8  ;;  %v526_v12 = vcombine.low %v181_v9, %v184_v11  ;;  %v538_v17 = vcombine.low %v531_v15, %v536_v16  ;;  %v532_v28 = vld [vmem:[%s684_s30 + $0xc] sm:$0x7]  ;;  %s177_s22 = sadd.s32 1, %s621_s22  }
  0x15   : >> { %571 = vmatprep.subr.bf16.mxu0 %v623_v1  ;;  %577 = vmatprep.subr.bf16.mxu1 %v623_v1  ;;  %v534_v29 = vcombine.low %v531_v15, %v532_v28  ;;  %p174_p4 = scmp.ge.s32.totalorder %s177_s22, 14  }
  0x16   : >> { %v193_v18 = vshrl.u32 %v526_v12, 16  ;;  %v195_v19 = vshll.u32 %v526_v12, 16  ;;  %v370_v21 = vshrl.u32 %v538_v17, 16  ;;  %v372_v22 = vshll.u32 %v538_v17, 16 }
  0x17   : >> { %568 = vmatmul.mubr.msk.bf16.vlgmr.msra.gmra.mxu1 %vm199_vm3, %v528_v13 }
  0x18   : >> { %v197_v23 = vrot.slane %v195_v19, 1  ;;  %578 = vmatpush3.bf16.msra.mxu1 %v380_v14  ;;  %579 = vmatprep.mubr.msk.bf16.mxu1 %vm625_vm2, %v623_v1  ;;  %v374_v25 = vrot.slane %v372_v22, 1 }
  0x1a   : >> { %v198_v26 = vor.u32 %v197_v23, %v193_v18  ;;  %v375_v27 = vor.u32 %v374_v25, %v370_v21 }
  0x1c   : >> { %562 = vmatmul.mubr.msk.bf16.vlgmr.msra.gmra.mxu0 %vm199_vm3, %v198_v26 }
  0x1d   : >> { %572 = vmatpush3.bf16.msra.mxu0 %v318_v24  ;;  %573 = vmatprep.mubr.msk.bf16.mxu0 %vm625_vm2, %v623_v1 }
  0x1f   : >> { %580 = vmatmul.mubr.msk.bf16.vlgmr.msra.gmra.mxu1 %vm199_vm3, %v375_v27 }
  0x24   : >> { %574 = vmatmul.mubr.msk.bf16.vlgmr.msra.gmra.mxu0 %vm199_vm3, %v534_v29 }
  0xd7   : >> { %v294_v30 = vpop.f32.mrf.mxu1 }
  0xd9   : >> { %v569_v31 = vpop.f32.mrf.mxu1 }
  0xdb   : >> { %v297_v32 = vpop.f32.mrf.mxu1 }
  0xdc   : >> { %v244_v33 = vpop.f32.mrf.mxu0 }
  0xdd   : >> { %v570_v34 = vpop.f32.mrf.mxu1  ;;  %v295_v40 = vadd.f32 %v294_v30, %v244_v33 }
  0xde   : >> { %v563_v35 = vpop.f32.mrf.mxu0 }
  0xdf   : >> { %v416_v36 = vpop.f32.mrf.mxu1 }
  0xe0   : >> { %v247_v37 = vpop.f32.mrf.mxu0 }
  0xe1   : >> { %v581_v38 = vpop.f32.mrf.mxu1  ;;  %v298_v47 = vadd.f32 %v297_v32, %v247_v37 }
  0xe2   : >> { %v564_v39 = vpop.f32.mrf.mxu0 }
  0xe3   : >> { %v419_v41 = vpop.f32.mrf.mxu1 }
  0xe4   : >> { %v354_v42 = vpop.f32.mrf.mxu0 }
  0xe5   : >> { %v361_v43 = vadd.f32 %v354_v42, %v295_v40  ;;  %v582_v44 = vpop.f32.mrf.mxu1 }
  0xe6   : >> { %v575_v46 = vpop.f32.mrf.mxu0 }
  0xe7   : >> { %v423_v48 = vadd.f32 %v416_v36, %v361_v43 }
  0xe8   : >> { %v357_v49 = vpop.f32.mrf.mxu0 }
  0xe9   : >> { %v432_v50 = vadd.f32 %v540_v45, %v423_v48  ;;  %v362_v51 = vadd.f32 %v357_v49, %v298_v47 }
  0xea   : >> { %v576_v52 = vpop.f32.mrf.mxu0 }
  0xeb   : >> { %v434_v53 = vmax.f32 %v432_v50, 0.0  ;;  %v424_v54 = vadd.f32 %v419_v41, %v362_v51 }
  0xed   : >> { %v548_v55 = vpack.c.bf16 %v434_v53, %v434_v53  ;;  %v433_v56 = vadd.f32 %v540_v45, %v424_v54 }
  0xef   : >> { %446 = vst [vmem:[%s445_s8] sm:$0xf] %v548_v55  ;;  %v435_v57 = vmax.f32 %v433_v56, 0.0  ;;  %176 = sbr.rel (!%p174_p4) target bundleno = 15 (0xf), region = 75 }
  0xf1   : >> { %v549_v58 = vpack.c.bf16 %v435_v57, %v435_v57 }
  0xf3   : >> { %447 = vst [vmem:[%s445_s8 + $0x4] sm:$0x7] %v549_v58 }
  0xf4 PF: > { %s13_s12 = sadd.s32 1, %s617_s12  }
  0xf5   : > { %p10_p5 = scmp.ge.s32.totalorder %s13_s12, 4  }
  0xf7   :  { %12 = sbr.rel (!%p10_p5) target bundleno = 1 (0x1), region = 86 }

// kernel: model_spg_forward.8
= control target key start
LH: loop header
LB: loop body
LE: loop exit
PB: predicated region body
PF: predicated region fallthrough
CT: control target
= control target key end

     0   :  { %s326_s6 = smov 0   ;;  %s393_s0 = inlined_call_operand.vmem [shape: bf16[2,14,7,256], index: 0, kind: input, shape index: {}]   ;;  %s394_s1 = inlined_call_operand.vmem [shape: bf16[2,7,7,128], index: 1, kind: output, shape index: {}]  }
   0x1 LB: > { %s264_s7 = sadd.s32 4294967295, %s314_s6   ;;  %p268_p0 = scmp.ge.s32.totalorder %s314_s6, 1  ;;  %s314_s6 = sphi %s326_s6, %s11_s6  }
   0x2   : > { %p87_p1 = scmp.lt.s32.totalorder %s314_s6, 3 }
   0x4   : > { %p88_p2 = pnand %p268_p0, %p87_p1 }
   0x5   : > { %p107_p3 = scmp.lt.s32.totalorder (!%p88_p2), %s264_s7, 1 }
   0x6   : > { %91 = sbr.rel (%p88_p2) target bundleno = 29 (0x1d), region = 24 }
   0xb   : > { %s398_s7 = smov (!%p107_p3, %s264_s7), 1  ;;  %vm125_vm0 = vcmask 1043456   ;;  %vm126_vm1 = vsmask.f32 3328 }
   0xc   : > { %s298_s8 = smul.u32 112, %s398_s7  ;;  %vm350_vm2 = vmand %vm125_vm0, %vm126_vm1 }
   0xd   : > { %s299_s9 = smul.u32 28, %s398_s7 }
   0xe   : > { %s337_s12 = scalar_lea.vmem %s393_s0, %s298_s8 }
   0xf   : > { %v117_v0 = vld [vmem:[%s337_s12] sm:$0xff]  ;;  %v271_v1 = vld [vmem:[%s337_s12 + $0x8] sm:$0xff]  ;;  %v272_v2 = vld [vmem:[%s337_s12 + $0x10] sm:$0xff]  ;;  %s345_s15 = scalar_lea.vmem %s394_s1, %s299_s9 }
  0x10   : > { %v120_v3 = vmax.bf16 %v271_v1, %v117_v0  ;;  %v273_v4 = vld [vmem:[%s337_s12 + $0x18] sm:$0xff]  ;;  %v276_v6 = vld [vmem:[%s337_s12 + $0x20] sm:$0xff]  ;;  %v277_v7 = vld [vmem:[%s337_s12 + $0x28] sm:$0xff] }
  0x11   : > { %v135_v5 = vmax.bf16 %v273_v4, %v272_v2  ;;  %v148_v10 = vmax.bf16 %v277_v7, %v276_v6  ;;  %v280_v11 = vld [vmem:[%s337_s12 + $0x30] sm:$0xff]  ;;  %v281_v12 = vld [vmem:[%s337_s12 + $0x38] sm:$0xff]  ;;  %v128_v13 = vld [vmem:[%s345_s15] sm:$0xf] }
  0x12   : > { %v122_v8 = vrot.slane %v120_v3, 4  ;;  %v161_v15 = vmax.bf16 %v281_v12, %v280_v11  ;;  %v284_v16 = vld [vmem:[%s337_s12 + $0x40] sm:$0xff]  ;;  %v285_v17 = vld [vmem:[%s337_s12 + $0x48] sm:$0xff]  ;;  %v288_v22 = vld [vmem:[%s337_s12 + $0x50] sm:$0xff] }
  0x13   : > { %v137_v14 = vrot.slane %v135_v5, 4  ;;  %v274_v19 = vld [vmem:[%s345_s15 + $0x4] sm:$0xf]  ;;  %v150_v20 = vrot.slane %v148_v10, 4  ;;  %v174_v21 = vmax.bf16 %v285_v17, %v284_v16  ;;  %v289_v23 = vld [vmem:[%s337_s12 + $0x58] sm:$0xff]  ;;  %v293_v29 = vld [vmem:[%s337_s12 + $0x68] sm:$0xff] }
  0x14   : > { %v124_v18 = vmax.bf16 %v122_v8, %v120_v3  ;;  %v278_v25 = vld [vmem:[%s345_s15 + $0x8] sm:$0xf]  ;;  %v163_v26 = vrot.slane %v161_v15, 4  ;;  %v187_v27 = vmax.bf16 %v289_v23, %v288_v22  ;;  %v292_v28 = vld [vmem:[%s337_s12 + $0x60] sm:$0xff]  ;;  %v282_v32 = vld [vmem:[%s345_s15 + $0xc] sm:$0xf] }
  0x15   : > { %v139_v24 = vmax.bf16 %v137_v14, %v135_v5  ;;  %v152_v31 = vmax.bf16 %v150_v20, %v148_v10  ;;  %v176_v33 = vrot.slane %v174_v21, 4  ;;  %v200_v34 = vmax.bf16 %v293_v29, %v292_v28  ;;  %v286_v37 = vld [vmem:[%s345_s15 + $0x10] sm:$0xf]  ;;  %v290_v41 = vld [vmem:[%s345_s15 + $0x14] sm:$0xf] }
  0x16   : > { %v129_v30 = vsel %vm350_vm2, %v124_v18, %v128_v13  ;;  %v165_v36 = vmax.bf16 %v163_v26, %v161_v15  ;;  %v189_v38 = vrot.slane %v187_v27, 4  ;;  %v294_v45 = vld [vmem:[%s345_s15 + $0x18] sm:$0xf] }
  0x17   : > { %130 = vst [vmem:[%s345_s15] sm:$0xf] %v129_v30  ;;  %v142_v35 = vsel %vm350_vm2, %v139_v24, %v274_v19  ;;  %v155_v39 = vsel %vm350_vm2, %v152_v31, %v278_v25  ;;  %v178_v40 = vmax.bf16 %v176_v33, %v174_v21  ;;  %v202_v42 = vrot.slane %v200_v34, 4 }
  0x18   : > { %275 = vst [vmem:[%s345_s15 + $0x4] sm:$0xf] %v142_v35  ;;  %279 = vst [vmem:[%s345_s15 + $0x8] sm:$0xf] %v155_v39  ;;  %v168_v43 = vsel %vm350_vm2, %v165_v36, %v282_v32  ;;  %v191_v44 = vmax.bf16 %v189_v38, %v187_v27 }
  0x19   : > { %283 = vst [vmem:[%s345_s15 + $0xc] sm:$0xf] %v168_v43  ;;  %v181_v46 = vsel %vm350_vm2, %v178_v40, %v286_v37  ;;  %v204_v47 = vmax.bf16 %v202_v42, %v200_v34 }
  0x1a   : > { %287 = vst [vmem:[%s345_s15 + $0x10] sm:$0xf] %v181_v46  ;;  %v194_v48 = vsel %vm350_vm2, %v191_v44, %v290_v41 }
  0x1b   : > { %291 = vst [vmem:[%s345_s15 + $0x14] sm:$0xf] %v194_v48  ;;  %v207_v49 = vsel %vm350_vm2, %v204_v47, %v294_v45 }
  0x1c   : > { %295 = vst [vmem:[%s345_s15 + $0x18] sm:$0xf] %v207_v49 }
  0x1d PF: > { %s11_s6 = sadd.s32 1, %s314_s6  }
  0x1e   : > { %p8_p4 = scmp.ge.s32.totalorder %s11_s6, 4  }
  0x20   :  { %10 = sbr.rel (!%p8_p4) target bundleno = 1 (0x1), region = 73 }

// kernel: model_spg_forward.9
= control target key start
LH: loop header
LB: loop body
LE: loop exit
PB: predicated region body
PF: predicated region fallthrough
CT: control target
= control target key end

     0   :  { %s1264_s12 = smov 0   ;;  %s1512_s0 = inlined_call_operand.vmem [shape: bf16[2,7,7,128], index: 0, kind: input, shape index: {}]   ;;  %s1513_s1 = inlined_call_operand.vmem [shape: bf16[1,1,128,128], index: 1, kind: input, shape index: {}]   ;;  %s1514_s2 = inlined_call_operand.vmem [shape: f32[1,128], index: 2, kind: input, shape index: {}]   ;;  %s1515_s3 = inlined_call_operand.vmem [shape: bf16[2,6,6,128], index: 3, kind: output, shape index: {}]  }
   0x1 LB: > { %s927_s13 = sadd.s32 4294967295, %s1240_s12   ;;  %p931_p0 = scmp.ge.s32.totalorder %s1240_s12, 1  ;;  %s1240_s12 = sphi %s1264_s12, %s13_s12  }
   0x2   : > { %p137_p1 = scmp.lt.s32.totalorder %s1240_s12, 3 }
   0x4   : > { %p138_p2 = pnand %p931_p0, %p137_p1 }
   0x5   : > { %p161_p3 = scmp.lt.s32.totalorder (!%p138_p2), %s927_s13, 1 }
   0x6   : > { %141 = sbr.rel (%p138_p2) target bundleno = 309 (0x135), region = 32 }
   0xb   : > { %v1186_v0 = vld [vmem:[%s1513_s1 + $0x38] sm:$0xff]   ;;  %v1242_v1 = vmov 0.0   ;;  %v1188_v3 = vld [vmem:[%s1513_s1 + $0x30] sm:$0xff]   ;;  %vm1243_vm0 = vmmov 0   ;;  %v1190_v5 = vld [vmem:[%s1513_s1 + $0x28] sm:$0xff]   ;;  %s1517_s13 = smov (!%p161_p3, %s927_s13), 1 }
   0xc   : > { %1054 = vmatprep.subr.bf16.mxu0 %v1242_v1  ;;  %1074 = vmatprep.subr.bf16.mxu1 %v1242_v1  ;;  %v1187_v2 = vld [vmem:[%s1513_s1 + $0x38] sm:$0xff]   ;;  %v1189_v4 = vld [vmem:[%s1513_s1 + $0x30] sm:$0xff]   ;;  %v1191_v6 = vld [vmem:[%s1513_s1 + $0x28] sm:$0xff]   ;;  %s1174_s11 = smul.u32 28, %s1517_s13 }
   0xd   : > { %1055 = vmatpush3.bf16.msra.mxu0 %v1186_v0  ;;  %1070 = vmatprep.mubr.msk.bf16.mxu0 %vm1243_vm0, %v1242_v1  ;;  %v1192_v7 = vld [vmem:[%s1513_s1 + $0x20] sm:$0xff]   ;;  %v1194_v9 = vld [vmem:[%s1513_s1 + $0x18] sm:$0xff]   ;;  %v1196_v11 = vld [vmem:[%s1513_s1 + $0x10] sm:$0xff]   ;;  %s1175_s18 = smul.u32 24, %s1517_s13 }
   0xe   : > { %1075 = vmatpush3.bf16.msra.mxu1 %v1187_v2  ;;  %1056 = vmatprep.subr.bf16.mxu0 %v1242_v1  ;;  %v1193_v8 = vld [vmem:[%s1513_s1 + $0x20] sm:$0xff]   ;;  %v1195_v10 = vld [vmem:[%s1513_s1 + $0x18] sm:$0xff]   ;;  %v1197_v12 = vld [vmem:[%s1513_s1 + $0x10] sm:$0xff]   ;;  %s1342_s20 = scalar_lea.vmem %s1512_s0, %s1174_s11 }
   0xf   : > { %1076 = vmatprep.subr.bf16.mxu1 %v1242_v1  ;;  %1090 = vmatprep.mubr.msk.bf16.mxu1 %vm1243_vm0, %v1242_v1  ;;  %v1198_v13 = vld [vmem:[%s1513_s1 + $0x8] sm:$0xff]   ;;  %v1200_v15 = vld [vmem:[%s1513_s1] sm:$0xff]   ;;  %v1202_v19 = vld [vmem:[%s1513_s1 + $0x38] sm:$0xff]   ;;  %s1501_s22 = scalar_lea.vmem %s1515_s3, %s1175_s18 }
  0x10   : > { %v1199_v14 = vld [vmem:[%s1513_s1 + $0x8] sm:$0xff]   ;;  %v1201_v16 = vld [vmem:[%s1513_s1] sm:$0xff]   ;;  %v1203_v20 = vld [vmem:[%s1513_s1 + $0x38] sm:$0xff]  }
  0x11   : > { %1057 = vmatpush3.bf16.msra.mxu0 %v1188_v3  ;;  %v172_v17 = vld [vmem:[%s1342_s20] sm:$0x7]  ;;  %v943_v18 = vld [vmem:[%s1342_s20 + $0x4] sm:$0x7]  ;;  %v1204_v21 = vld [vmem:[%s1513_s1 + $0x30] sm:$0xff]  }
  0x12   : > { %1077 = vmatpush3.bf16.msra.mxu1 %v1189_v4  ;;  %1058 = vmatprep.subr.bf16.mxu0 %v1242_v1  ;;  %v1205_v22 = vld [vmem:[%s1513_s1 + $0x30] sm:$0xff]   ;;  %v1206_v23 = vld [vmem:[%s1513_s1 + $0x28] sm:$0xff]   ;;  %v1208_v25 = vld [vmem:[%s1513_s1 + $0x20] sm:$0xff]  }
  0x13   : > { %1078 = vmatprep.subr.bf16.mxu1 %v1242_v1  ;;  %v1207_v24 = vld [vmem:[%s1513_s1 + $0x28] sm:$0xff]   ;;  %v1209_v26 = vld [vmem:[%s1513_s1 + $0x20] sm:$0xff]   ;;  %v1210_v27 = vld [vmem:[%s1513_s1 + $0x18] sm:$0xff]  }
  0x14   : > { %v1211_v28 = vld [vmem:[%s1513_s1 + $0x18] sm:$0xff]   ;;  %v1212_v29 = vld [vmem:[%s1513_s1 + $0x10] sm:$0xff]   ;;  %v1214_v31 = vld [vmem:[%s1513_s1 + $0x8] sm:$0xff]  }
  0x15   : > { %1059 = vmatpush3.bf16.msra.mxu0 %v1190_v5  ;;  %v1213_v30 = vld [vmem:[%s1513_s1 + $0x10] sm:$0xff]   ;;  %v1215_v32 = vld [vmem:[%s1513_s1 + $0x8] sm:$0xff]   ;;  %v1216_v33 = vld [vmem:[%s1513_s1] sm:$0xff]  }
  0x16   : > { %1079 = vmatpush3.bf16.msra.mxu1 %v1191_v6  ;;  %1060 = vmatprep.subr.bf16.mxu0 %v1242_v1  ;;  %v1217_v34 = vld [vmem:[%s1513_s1] sm:$0xff]   ;;  %v954_v35 = vld [vmem:[%s1342_s20 + $0x8] sm:$0x7]  ;;  %v1218_v36 = vld [vmem:[%s1513_s1 + $0x38] sm:$0xff]  }
  0x17   : > { %1080 = vmatprep.subr.bf16.mxu1 %v1242_v1  ;;  %v965_v37 = vld [vmem:[%s1342_s20 + $0xc] sm:$0x7]  ;;  %v1219_v38 = vld [vmem:[%s1513_s1 + $0x38] sm:$0xff]   ;;  %v1220_v39 = vld [vmem:[%s1513_s1 + $0x30] sm:$0xff]  }
  0x18   : > { %v1221_v40 = vld [vmem:[%s1513_s1 + $0x30] sm:$0xff]   ;;  %v1222_v41 = vld [vmem:[%s1513_s1 + $0x28] sm:$0xff]   ;;  %v1224_v43 = vld [vmem:[%s1513_s1 + $0x20] sm:$0xff]  }
  0x19   : > { %1061 = vmatpush3.bf16.msra.mxu0 %v1192_v7  ;;  %v1223_v42 = vld [vmem:[%s1513_s1 + $0x28] sm:$0xff]   ;;  %v1225_v44 = vld [vmem:[%s1513_s1 + $0x20] sm:$0xff]   ;;  %v1226_v45 = vld [vmem:[%s1513_s1 + $0x18] sm:$0xff]  }
  0x1a   : > { %1081 = vmatpush3.bf16.msra.mxu1 %v1193_v8  ;;  %1062 = vmatprep.subr.bf16.mxu0 %v1242_v1  ;;  %v1227_v46 = vld [vmem:[%s1513_s1 + $0x18] sm:$0xff]   ;;  %v1228_v47 = vld [vmem:[%s1513_s1 + $0x10] sm:$0xff]   ;;  %v1230_v49 = vld [vmem:[%s1513_s1 + $0x8] sm:$0xff]  }
  0x1b   : > { %1082 = vmatprep.subr.bf16.mxu1 %v1242_v1  ;;  %v1229_v48 = vld [vmem:[%s1513_s1 + $0x10] sm:$0xff]   ;;  %v1231_v50 = vld [vmem:[%s1513_s1 + $0x8] sm:$0xff]   ;;  %v1232_v51 = vld [vmem:[%s1513_s1] sm:$0xff]  }
  0x1c   : > { %v1233_v52 = vld [vmem:[%s1513_s1] sm:$0xff]   ;;  %v976_v53 = vld [vmem:[%s1342_s20 + $0x10] sm:$0x7]  ;;  %v987_v54 = vld [vmem:[%s1342_s20 + $0x14] sm:$0x7] }
  0x1d   : > { %1063 = vmatpush3.bf16.msra.mxu0 %v1194_v9  ;;  %v934_v55 = vld [vmem:[%s1514_s2] ss:$0 sm:$0xff] }
  0x1e   : > { %1083 = vmatpush3.bf16.msra.mxu1 %v1195_v10  ;;  %1064 = vmatprep.subr.bf16.mxu0 %v1242_v1 }
  0x1f   : > { %1084 = vmatprep.subr.bf16.mxu1 %v1242_v1 }
  0x21   : > { %1065 = vmatpush3.bf16.msra.mxu0 %v1196_v11 }
  0x22   : > { %1085 = vmatpush3.bf16.msra.mxu1 %v1197_v12  ;;  %1066 = vmatprep.subr.bf16.mxu0 %v1242_v1 }
  0x23   : > { %1086 = vmatprep.subr.bf16.mxu1 %v1242_v1 }
  0x25   : > { %1067 = vmatpush3.bf16.msra.mxu0 %v1198_v13 }
  0x26   : > { %1087 = vmatpush3.bf16.msra.mxu1 %v1199_v14  ;;  %1068 = vmatprep.subr.bf16.mxu0 %v1242_v1 }
  0x27   : > { %1088 = vmatprep.subr.bf16.mxu1 %v1242_v1 }
  0x29   : > { %1069 = vmatpush3.bf16.msra.mxu0 %v1200_v15 }
  0x2a   : > { %1089 = vmatpush3.bf16.msra.mxu1 %v1201_v16  ;;  %1094 = vmatprep.subr.bf16.mxu0 %v1242_v1 }
  0x2b   : > { %1114 = vmatprep.subr.bf16.mxu1 %v1242_v1 }
  0x2c   : > { %1071 = vmatmul.mubr.bf16.vlgmr.msra.gmra.mxu0 %v172_v17 }
  0x2d   : > { %1091 = vmatmul.mubr.bf16.vlgmr.msra.gmra.mxu1 %v943_v18  ;;  %1095 = vmatpush3.bf16.msra.mxu0 %v1202_v19 }
  0x2e   : > { %1115 = vmatpush3.bf16.msra.mxu1 %v1203_v20  ;;  %1096 = vmatprep.subr.bf16.mxu0 %v1242_v1 }
  0x2f   : > { %1116 = vmatprep.subr.bf16.mxu1 %v1242_v1  ;;  %1110 = vmatprep.mubr.msk.bf16.mxu0 %vm1243_vm0, %v1242_v1 }
  0x30   : > { %1130 = vmatprep.mubr.msk.bf16.mxu1 %vm1243_vm0, %v1242_v1 }
  0x31   : > { %1097 = vmatpush3.bf16.msra.mxu0 %v1204_v21 }
  0x32   : > { %1117 = vmatpush3.bf16.msra.mxu1 %v1205_v22  ;;  %1098 = vmatprep.subr.bf16.mxu0 %v1242_v1 }
  0x33   : > { %1118 = vmatprep.subr.bf16.mxu1 %v1242_v1 }
  0x35   : > { %1099 = vmatpush3.bf16.msra.mxu0 %v1206_v23 }
  0x36   : > { %1119 = vmatpush3.bf16.msra.mxu1 %v1207_v24  ;;  %1100 = vmatprep.subr.bf16.mxu0 %v1242_v1 }
  0x37   : > { %1120 = vmatprep.subr.bf16.mxu1 %v1242_v1 }
  0x39   : > { %1101 = vmatpush3.bf16.msra.mxu0 %v1208_v25 }
  0x3a   : > { %1121 = vmatpush3.bf16.msra.mxu1 %v1209_v26  ;;  %1102 = vmatprep.subr.bf16.mxu0 %v1242_v1 }
  0x3b   : > { %1122 = vmatprep.subr.bf16.mxu1 %v1242_v1 }
  0x3d   : > { %1103 = vmatpush3.bf16.msra.mxu0 %v1210_v27 }
  0x3e   : > { %1123 = vmatpush3.bf16.msra.mxu1 %v1211_v28  ;;  %1104 = vmatprep.subr.bf16.mxu0 %v1242_v1 }
  0x3f   : > { %1124 = vmatprep.subr.bf16.mxu1 %v1242_v1 }
  0x41   : > { %1105 = vmatpush3.bf16.msra.mxu0 %v1212_v29 }
  0x42   : > { %1125 = vmatpush3.bf16.msra.mxu1 %v1213_v30  ;;  %1106 = vmatprep.subr.bf16.mxu0 %v1242_v1 }
  0x43   : > { %1126 = vmatprep.subr.bf16.mxu1 %v1242_v1 }
  0x45   : > { %1107 = vmatpush3.bf16.msra.mxu0 %v1214_v31 }
  0x46   : > { %1127 = vmatpush3.bf16.msra.mxu1 %v1215_v32  ;;  %1108 = vmatprep.subr.bf16.mxu0 %v1242_v1 }
  0x47   : > { %1128 = vmatprep.subr.bf16.mxu1 %v1242_v1 }
  0x49   : > { %1109 = vmatpush3.bf16.msra.mxu0 %v1216_v33 }
  0x4a   : > { %1129 = vmatpush3.bf16.msra.mxu1 %v1217_v34  ;;  %1134 = vmatprep.subr.bf16.mxu0 %v1242_v1 }
  0x4b   : > { %1154 = vmatprep.subr.bf16.mxu1 %v1242_v1 }
  0x4c   : > { %1111 = vmatmul.mubr.bf16.vlgmr.msra.gmra.mxu0 %v954_v35 }
  0x4d   : > { %1131 = vmatmul.mubr.bf16.vlgmr.msra.gmra.mxu1 %v965_v37  ;;  %1135 = vmatpush3.bf16.msra.mxu0 %v1218_v36 }
  0x4e   : > { %1155 = vmatpush3.bf16.msra.mxu1 %v1219_v38  ;;  %1136 = vmatprep.subr.bf16.mxu0 %v1242_v1 }
  0x4f   : > { %1156 = vmatprep.subr.bf16.mxu1 %v1242_v1  ;;  %1150 = vmatprep.mubr.msk.bf16.mxu0 %vm1243_vm0, %v1242_v1 }
  0x50   : > { %1170 = vmatprep.mubr.msk.bf16.mxu1 %vm1243_vm0, %v1242_v1 }
  0x51   : > { %1137 = vmatpush3.bf16.msra.mxu0 %v1220_v39 }
  0x52   : > { %1157 = vmatpush3.bf16.msra.mxu1 %v1221_v40  ;;  %1138 = vmatprep.subr.bf16.mxu0 %v1242_v1 }
  0x53   : > { %1158 = vmatprep.subr.bf16.mxu1 %v1242_v1 }
  0x55   : > { %1139 = vmatpush3.bf16.msra.mxu0 %v1222_v41 }
  0x56   : > { %1159 = vmatpush3.bf16.msra.mxu1 %v1223_v42  ;;  %1140 = vmatprep.subr.bf16.mxu0 %v1242_v1 }
  0x57   : > { %1160 = vmatprep.subr.bf16.mxu1 %v1242_v1 }
  0x59   : > { %1141 = vmatpush3.bf16.msra.mxu0 %v1224_v43 }
  0x5a   : > { %1161 = vmatpush3.bf16.msra.mxu1 %v1225_v44  ;;  %1142 = vmatprep.subr.bf16.mxu0 %v1242_v1 }
  0x5b   : > { %1162 = vmatprep.subr.bf16.mxu1 %v1242_v1 }
  0x5d   : > { %1143 = vmatpush3.bf16.msra.mxu0 %v1226_v45 }
  0x5e   : > { %1163 = vmatpush3.bf16.msra.mxu1 %v1227_v46  ;;  %1144 = vmatprep.subr.bf16.mxu0 %v1242_v1 }
  0x5f   : > { %1164 = vmatprep.subr.bf16.mxu1 %v1242_v1 }
  0x61   : > { %1145 = vmatpush3.bf16.msra.mxu0 %v1228_v47 }
  0x62   : > { %1165 = vmatpush3.bf16.msra.mxu1 %v1229_v48  ;;  %1146 = vmatprep.subr.bf16.mxu0 %v1242_v1 }
  0x63   : > { %1166 = vmatprep.subr.bf16.mxu1 %v1242_v1 }
  0x65   : > { %1147 = vmatpush3.bf16.msra.mxu0 %v1230_v49 }
  0x66   : > { %1167 = vmatpush3.bf16.msra.mxu1 %v1231_v50  ;;  %1148 = vmatprep.subr.bf16.mxu0 %v1242_v1 }
  0x67   : > { %1168 = vmatprep.subr.bf16.mxu1 %v1242_v1 }
  0x69   : > { %1149 = vmatpush3.bf16.msra.mxu0 %v1232_v51 }
  0x6a   : > { %1169 = vmatpush3.bf16.msra.mxu1 %v1233_v52 }
  0x6c   : > { %1151 = vmatmul.mubr.bf16.vlgmr.msra.gmra.mxu0 %v976_v53 }
  0x6d   : > { %1171 = vmatmul.mubr.bf16.vlgmr.msra.gmra.mxu1 %v987_v54 }
  0xec   : > { %v278_v56 = vpop.f32.mrf.mxu0 }
  0xed   : > { %v279_v57 = vadd.f32 %v934_v55, %v278_v56  ;;  %v394_v58 = vpop.f32.mrf.mxu1 }
  0xee   : > { %v395_v59 = vadd.f32 %v934_v55, %v394_v58  ;;  %v1072_v60 = vpop.f32.mrf.mxu0 }
  0xef   : > { %v284_v61 = vmax.f32 %v279_v57, 0.0  ;;  %v1092_v62 = vpop.f32.mrf.mxu1 }
  0xf0   : > { %v400_v63 = vmax.f32 %v395_v59, 0.0  ;;  %v281_v0 = vpop.f32.mrf.mxu0 }
  0xf1   : > { %v285_v1 = vpack.c.bf16 %v284_v61, %v284_v61  ;;  %v397_v2 = vpop.f32.mrf.mxu1 }
  0xf2   : > { %v401_v3 = vpack.c.bf16 %v400_v63, %v400_v63  ;;  %v1073_v4 = vpop.f32.mrf.mxu0 }
  0xf3   : > { %286 = vst [vmem:[%s1501_s22] sm:$0x7] %v285_v1  ;;  %v1093_v5 = vpop.f32.mrf.mxu1 }
  0xf4   : > { %953 = vst [vmem:[%s1501_s22 + $0x4] sm:$0x7] %v401_v3 }
 0x10c   : > { %v511_v6 = vpop.f32.mrf.mxu0 }
 0x10d   : > { %v512_v7 = vadd.f32 %v934_v55, %v511_v6  ;;  %v628_v8 = vpop.f32.mrf.mxu1 }
 0x10e   : > { %v629_v9 = vadd.f32 %v934_v55, %v628_v8  ;;  %v1112_v10 = vpop.f32.mrf.mxu0 }
 0x10f   : > { %v517_v11 = vmax.f32 %v512_v7, 0.0  ;;  %v1132_v12 = vpop.f32.mrf.mxu1 }
 0x110   : > { %v634_v13 = vmax.f32 %v629_v9, 0.0  ;;  %v514_v14 = vpop.f32.mrf.mxu0 }
 0x111   : > { %v518_v15 = vpack.c.bf16 %v517_v11, %v517_v11  ;;  %v631_v16 = vpop.f32.mrf.mxu1 }
 0x112   : > { %v635_v17 = vpack.c.bf16 %v634_v13, %v634_v13  ;;  %v1113_v18 = vpop.f32.mrf.mxu0 }
 0x113   : > { %964 = vst [vmem:[%s1501_s22 + $0x8] sm:$0x7] %v518_v15  ;;  %v1133_v19 = vpop.f32.mrf.mxu1 }
 0x114   : > { %975 = vst [vmem:[%s1501_s22 + $0xc] sm:$0x7] %v635_v17 }
 0x12c   : > { %v745_v20 = vpop.f32.mrf.mxu0 }
 0x12d   : > { %v746_v21 = vadd.f32 %v934_v55, %v745_v20  ;;  %v862_v22 = vpop.f32.mrf.mxu1 }
 0x12e   : > { %v863_v23 = vadd.f32 %v934_v55, %v862_v22  ;;  %v1152_v24 = vpop.f32.mrf.mxu0 }
 0x12f   : > { %v751_v25 = vmax.f32 %v746_v21, 0.0  ;;  %v1172_v26 = vpop.f32.mrf.mxu1 }
 0x130   : > { %v868_v27 = vmax.f32 %v863_v23, 0.0  ;;  %v748_v28 = vpop.f32.mrf.mxu0 }
 0x131   : > { %v752_v29 = vpack.c.bf16 %v751_v25, %v751_v25  ;;  %v865_v30 = vpop.f32.mrf.mxu1 }
 0x132   : > { %v869_v31 = vpack.c.bf16 %v868_v27, %v868_v27  ;;  %v1153_v32 = vpop.f32.mrf.mxu0 }
 0x133   : > { %986 = vst [vmem:[%s1501_s22 + $0x10] sm:$0x7] %v752_v29  ;;  %v1173_v33 = vpop.f32.mrf.mxu1 }
 0x134   : > { %997 = vst [vmem:[%s1501_s22 + $0x14] sm:$0x7] %v869_v31 }
 0x135 PF: > { %s13_s12 = sadd.s32 1, %s1240_s12  }
 0x136   : > { %p10_p4 = scmp.ge.s32.totalorder %s13_s12, 4  }
 0x138   :  { %12 = sbr.rel (!%p10_p4) target bundleno = 1 (0x1), region = 72 }

// kernel: model_spg_forward.12
= control target key start
LH: loop header
LB: loop body
LE: loop exit
PB: predicated region body
PF: predicated region fallthrough
CT: control target
= control target key end

     0   :  { %s219_s6 = smov 0   ;;  %s236_s0 = inlined_call_operand.vmem [shape: bf16[2,2,1,512], index: 0, kind: input, shape index: {}]   ;;  %s237_s1 = inlined_call_operand.vmem [shape: bf16[2,1,1,256], index: 1, kind: output, shape index: {}]  }
   0x1 LB: > { %s183_s7 = sadd.s32 4294967295, %s207_s6   ;;  %p187_p0 = scmp.ge.s32.totalorder %s207_s6, 1  ;;  %s207_s6 = sphi %s219_s6, %s11_s6  }
   0x2   : > { %p86_p1 = scmp.lt.s32.totalorder %s207_s6, 3 }
   0x4   : > { %p87_p2 = pnand %p187_p0, %p86_p1 }
   0x5   : > { %p104_p3 = scmp.lt.s32.totalorder (!%p87_p2), %s183_s7, 1 }
   0x6   : > { %90 = sbr.rel (%p87_p2) target bundleno = 23 (0x17), region = 24 }
   0xb   : > { %s239_s7 = smov (!%p104_p3, %s183_s7), 1  ;;  %vm120_vm0 = vcmask 1040384   ;;  %vm121_vm1 = vsmask.f32 256  ;;  %vm123_vm2 = vcmask 1041409  }
   0xc   : > { %s188_s8 = sshll.u32 %s239_s7, 3  ;;  %s189_s9 = sshll.u32 %s239_s7, 1  ;;  %vm124_vm3 = vsmask.f32 1280  ;;  %vm122_vm4 = vmand %vm120_vm0, %vm121_vm1 }
   0xd   : > { %s107_s12 = scalar_lea.vmem %s236_s0, %s188_s8  ;;  %s111_s15 = scalar_lea.vmem %s237_s1, %s189_s9  ;;  %vm125_vm5 = vmand %vm123_vm2, %vm124_vm3 }
   0xe   : > { %v112_v0 = vld [vmem:[%s107_s12] sm:$0xf]  ;;  %v190_v1 = vld [vmem:[%s107_s12 + $0x4] sm:$0xf]  ;;  %vm126_vm6 = vmor %vm125_vm5, %vm122_vm4 }
   0xf   : > { %v115_v2 = vmax.bf16 %v190_v1, %v112_v0  ;;  %v127_v4 = vld [vmem:[%s111_s15] sm:$0x3] }
  0x11   : > { %v117_v3 = vrot.slane %v115_v2, 2 }
  0x13   : > { %v119_v5 = vmax.bf16 %v117_v3, %v115_v2 }
  0x15   : > { %v128_v6 = vsel %vm126_vm6, %v119_v5, %v127_v4 }
  0x16   : > { %129 = vst [vmem:[%s111_s15] sm:$0x3] %v128_v6 }
  0x17 PF: > { %s11_s6 = sadd.s32 1, %s207_s6  }
  0x18   : > { %p8_p4 = scmp.ge.s32.totalorder %s11_s6, 4  }
  0x1a   :  { %10 = sbr.rel (!%p8_p4) target bundleno = 1 (0x1), region = 55 }

// kernel: model_spg_forward.13
= control target key start
LH: loop header
LB: loop body
LE: loop exit
PB: predicated region body
PF: predicated region fallthrough
CT: control target
= control target key end

     0   :  { %v644_v2 = vmov 0.0   ;;  %v80_v10 = vlaneseq  ;;  %v645_v14 = vmov 1966171168   ;;  %s817_s0 = inlined_call_operand.vmem [shape: bf16[2,256], index: 0, kind: input, shape index: {}]   ;;  %s818_s1 = inlined_call_operand.vmem [shape: bf16[256,128], index: 1, kind: input, shape index: {}]   ;;  %s819_s2 = inlined_call_operand.vmem [shape: f32[1,128], index: 2, kind: input, shape index: {}]   ;;  %s820_s3 = inlined_call_operand.vmem [shape: bf16[128,128], index: 3, kind: input, shape index: {}]   ;;  %s821_s4 = inlined_call_operand.vmem [shape: f32[1,128], index: 4, kind: input, shape index: {}]   ;;  %s822_s5 = inlined_call_operand.vmem [shape: bf16[128,128], index: 5, kind: input, shape index: {}]   ;;  %s823_s6 = inlined_call_operand.vmem [shape: f32[1,128], index: 6, kind: input, shape index: {}]   ;;  %s824_s7 = inlined_call_operand.hbm [shape: f32[2,128], index: 7, kind: output, shape index: {}]  }
   0x1   :  { %v590_v0 = vld [vmem:[%s818_s1 + $0x78] sm:$0xff]   ;;  %546 = vmatprep.subr.bf16.mxu1 %v644_v2  ;;  %v592_v3 = vld [vmem:[%s818_s1 + $0x70] sm:$0xff]   ;;  %v594_v5 = vld [vmem:[%s818_s1 + $0x68] sm:$0xff]   ;;  %v78_v15 = vunpack.c.l.s4 %v645_v14 }
   0x2   :  { %v591_v1 = vld [vmem:[%s818_s1 + $0x38] sm:$0xff]   ;;  %506 = vmatprep.subr.bf16.mxu0 %v590_v0  ;;  %v593_v4 = vld [vmem:[%s818_s1 + $0x30] sm:$0xff]   ;;  %v595_v6 = vld [vmem:[%s818_s1 + $0x28] sm:$0xff]   ;;  %v81_v16 = vshrl.u32 %v80_v10, 7 }
   0x3   :  { %507 = vmatpush3.bf16.msra.mxu0 %v591_v1  ;;  %v596_v7 = vld [vmem:[%s818_s1 + $0x60] sm:$0xff]   ;;  %v598_v9 = vld [vmem:[%s818_s1 + $0x58] sm:$0xff]   ;;  %v600_v12 = vld [vmem:[%s818_s1 + $0x50] sm:$0xff]   ;;  %v79_v20 = vunpack.c.0.s8 %v78_v15 }
   0x4   :  { %508 = vmatprep.subr.bf16.mxu0 %v592_v3  ;;  %v597_v8 = vld [vmem:[%s818_s1 + $0x20] sm:$0xff]   ;;  %v599_v11 = vld [vmem:[%s818_s1 + $0x18] sm:$0xff]   ;;  %v601_v18 = vld [vmem:[%s818_s1 + $0x10] sm:$0xff]  }
   0x5   :  { %v471_v13 = vld.sshfl [vmem:[%s817_s0] sm:$0x11 pattern:$0x75316420]  ;;  %v606_v17 = vld [vmem:[%s820_s3 + $0x38] sm:$0xff]   ;;  %v607_v21 = vld [vmem:[%s820_s3 + $0x30] sm:$0xff]   ;;  %v82_v24 = vsub.s32 %v79_v20, %v81_v16 }
   0x6   :  { %v76_v19 = vcombine.high %v471_v13, %v471_v13  ;;  %547 = vmatpush3.bf16.msra.mxu1 %v606_v17  ;;  %v602_v22 = vld [vmem:[%s818_s1 + $0x48] sm:$0xff]   ;;  %v604_v26 = vld [vmem:[%s818_s1 + $0x40] sm:$0xff]  }
   0x7   :  { %509 = vmatpush3.bf16.msra.mxu0 %v593_v4  ;;  %548 = vmatprep.subr.bf16.mxu1 %v644_v2  ;;  %v603_v23 = vld [vmem:[%s818_s1 + $0x8] sm:$0xff]   ;;  %v605_v28 = vld [vmem:[%s818_s1] sm:$0xff]  }
   0x8   :  { %510 = vmatprep.subr.bf16.mxu0 %v594_v5  ;;  %v608_v25 = vld [vmem:[%s820_s3 + $0x28] sm:$0xff]   ;;  %v90_v27 = vrot.slane %v76_v19, %v82_v24  ;;  %v609_v29 = vld [vmem:[%s820_s3 + $0x20] sm:$0xff]  }
   0xa   :  { %549 = vmatpush3.bf16.msra.mxu1 %v607_v21  ;;  %221 = vmatprep.mubr.bf16.mxu0 %v90_v27 }
   0xb   :  { %511 = vmatpush3.bf16.msra.mxu0 %v595_v6  ;;  %550 = vmatprep.subr.bf16.mxu1 %v644_v2 }
   0xc   :  { %512 = vmatprep.subr.bf16.mxu0 %v596_v7 }
   0xe   :  { %551 = vmatpush3.bf16.msra.mxu1 %v608_v25 }
   0xf   :  { %513 = vmatpush3.bf16.msra.mxu0 %v597_v8  ;;  %552 = vmatprep.subr.bf16.mxu1 %v644_v2 }
  0x10   :  { %514 = vmatprep.subr.bf16.mxu0 %v598_v9 }
  0x13   :  { %515 = vmatpush3.bf16.msra.mxu0 %v599_v11 }
  0x14   :  { %516 = vmatprep.subr.bf16.mxu0 %v600_v12 }
  0x17   :  { %517 = vmatpush3.bf16.msra.mxu0 %v601_v18 }
  0x18   :  { %518 = vmatprep.subr.bf16.mxu0 %v602_v22 }
  0x1b   :  { %519 = vmatpush3.bf16.msra.mxu0 %v603_v23 }
  0x1c   :  { %520 = vmatprep.subr.bf16.mxu0 %v604_v26 }
  0x1d   :  { %12 = vsyncpa [#allocation3], 0  ;;  %v83_v30 = vrot.slane %v471_v13, %v82_v24  ;;  %553 = vmatpush3.bf16.msra.mxu1 %v609_v29  ;;  %v610_v31 = vld [vmem:[%s820_s3 + $0x18] sm:$0xff]   ;;  %v611_v32 = vld [vmem:[%s820_s3 + $0x10] sm:$0xff]   ;;  %vm646_vm0 = vmmov 0   ;;  %s647_s21 = smov [#allocation2]  }
  0x1e   :  { %554 = vmatprep.subr.bf16.mxu1 %v644_v2  ;;  %v612_v33 = vld [vmem:[%s820_s3 + $0x8] sm:$0xff]   ;;  %v613_v34 = vld [vmem:[%s820_s3] sm:$0xff]   ;;  %562 = vmatprep.mubr.msk.bf16.mxu1 %vm646_vm0, %v644_v2  ;;  %v614_v35 = vld [vmem:[%s822_s5 + $0x38] sm:$0xff]   ;;  %s462_s22 = sshll.u32 %s647_s21, 4  ;;  %s463_s22 = int_to_ptr.vmem [resolvable:$true] %s462_s22 }
  0x1f   :  { %521 = vmatpush3.bf16.msra.mxu0 %v605_v28  ;;  %v615_v36 = vld [vmem:[%s822_s5 + $0x30] sm:$0xff]   ;;  %v616_v37 = vld [vmem:[%s822_s5 + $0x28] sm:$0xff]   ;;  %v617_v38 = vld [vmem:[%s822_s5 + $0x20] sm:$0xff]   ;;  %p627_p1 = scmp.lt.s32.totalorder %s463_s22, %s463_s22 }
  0x20   :  { %566 = vmatprep.subr.bf16.mxu0 %v644_v2  ;;  %v618_v39 = vld [vmem:[%s822_s5 + $0x18] sm:$0xff]   ;;  %v619_v40 = vld [vmem:[%s822_s5 + $0x10] sm:$0xff]   ;;  %v470_v42 = vld [vmem:[%s819_s2] ss:$0 sm:$0xff] }
  0x21   :  { %555 = vmatpush3.bf16.msra.mxu1 %v610_v31  ;;  %v620_v50 = vld [vmem:[%s822_s5 + $0x8] sm:$0xff]   ;;  %v621_v51 = vld [vmem:[%s822_s5] sm:$0xff]  }
  0x22   :  { %222 = vmatmul.mubr.bf16.vlgmr.msra.gmra.mxu0 %v83_v30  ;;  %556 = vmatprep.subr.bf16.mxu1 %v644_v2  ;;  %v488_v52 = vld [vmem:[%s821_s4] ss:$0 sm:$0xff]  ;;  %s622_s4 = scalar_lea.vmem %s463_s22, 32 }
  0x23   :  { %582 = vmatprep.mubr.msk.bf16.mxu0 %vm646_vm0, %v644_v2  ;;  %567 = vmatpush3.bf16.msra.mxu0 %v614_v35  ;;  %v497_v60 = vld [vmem:[%s823_s6] ss:$0 sm:$0xff]  ;;  %p623_p0 = scmp.ne.s32.totalorder %s463_s22, %s622_s4  ;;  %p628_p2 = scmp.lt.s32.totalorder %s622_s4, %s622_s4 }
  0x24   :  { %568 = vmatprep.subr.bf16.mxu0 %v644_v2 }
  0x25   :  { %557 = vmatpush3.bf16.msra.mxu1 %v611_v32  ;;  %p629_p3 = por %p628_p2, %p627_p1 }
  0x26   :  { %558 = vmatprep.subr.bf16.mxu1 %v644_v2 }
  0x27   :  { %569 = vmatpush3.bf16.msra.mxu0 %v615_v36  ;;  %p630_p4 = pnand %p629_p3, %p623_p0 }
  0x28   :  { %570 = vmatprep.subr.bf16.mxu0 %v644_v2 }
  0x29   :  { %559 = vmatpush3.bf16.msra.mxu1 %v612_v33 }
  0x2a   :  { %560 = vmatprep.subr.bf16.mxu1 %v644_v2 }
  0x2b   :  { %571 = vmatpush3.bf16.msra.mxu0 %v616_v37 }
  0x2c   :  { %572 = vmatprep.subr.bf16.mxu0 %v644_v2 }
  0x2d   :  { %561 = vmatpush3.bf16.msra.mxu1 %v613_v34 }
  0x2f   :  { %573 = vmatpush3.bf16.msra.mxu0 %v617_v38 }
  0x30   :  { %574 = vmatprep.subr.bf16.mxu0 %v644_v2 }
  0x33   :  { %575 = vmatpush3.bf16.msra.mxu0 %v618_v39 }
  0x34   :  { %576 = vmatprep.subr.bf16.mxu0 %v644_v2 }
  0x37   :  { %577 = vmatpush3.bf16.msra.mxu0 %v619_v40 }
  0x38   :  { %578 = vmatprep.subr.bf16.mxu0 %v644_v2 }
  0x3b   :  { %579 = vmatpush3.bf16.msra.mxu0 %v620_v50 }
  0x3c   :  { %580 = vmatprep.subr.bf16.mxu0 %v644_v2 }
  0x3f   :  { %581 = vmatpush3.bf16.msra.mxu0 %v621_v51 }
  0xe2   :  { %v522_v41 = vpop.f32.mrf.mxu0 }
  0xe4   :  { %v523_v43 = vpop.f32.mrf.mxu0 }
  0xe5   :  { %v524_v44 = vadd.f32 %v523_v43, %v522_v41 }
  0xe6   :  { %v525_v45 = vpop.f32.mrf.mxu0 }
  0xe7   :  { %v224_v46 = vadd.f32 %v524_v44, %v470_v42 }
  0xe8   :  { %v526_v47 = vpop.f32.mrf.mxu0 }
  0xe9   :  { %v229_v48 = vmax.f32 %v224_v46, 0.0 }
  0xeb   :  { %v230_v49 = vpack.c.bf16 %v229_v48, %v229_v48 }
  0xed   :  { %563 = vmatmul.mubr.bf16.vlgmr.msra.gmra.mxu1 %v230_v49 }
 0x1ad   :  { %v336_v53 = vpop.f32.mrf.mxu1 }
 0x1ae   :  { %v337_v54 = vadd.f32 %v488_v52, %v336_v53 }
 0x1af   :  { %v564_v55 = vpop.f32.mrf.mxu1 }
 0x1b0   :  { %v342_v56 = vmax.f32 %v337_v54, 0.0 }
 0x1b1   :  { %v339_v57 = vpop.f32.mrf.mxu1 }
 0x1b2   :  { %v343_v58 = vpack.c.bf16 %v342_v56, %v342_v56 }
 0x1b3   :  { %v565_v59 = vpop.f32.mrf.mxu1 }
 0x1b4   :  { %583 = vmatmul.mubr.bf16.vlgmr.msra.gmra.mxu0 %v343_v58 }
 0x274   :  { %v449_v61 = vpop.f32.mrf.mxu0 }
 0x275   :  { %v450_v62 = vadd.f32 %v497_v60, %v449_v61 }
 0x276   :  { %v584_v63 = vpop.f32.mrf.mxu0 }
 0x277   :  { %455 = vst [vmem:[#allocation2] sm:$0x3] %v450_v62 }
 0x278   :  { %v452_v0 = vpop.f32.mrf.mxu0 }
 0x279   :  { %633 = shalt.err (!%p630_p4)
}
 0x27a   :  { %465 = dma.vmem_to_hbm [thread:$0]  %s463_s22, 32, %s824_s7, [#allocation3]   ;;  %v585_v1 = vpop.f32.mrf.mxu0 }
 0x27b   :  { %642 = dma.done.wait [#allocation3], 32  }
 0x27c   :  { %643 = vsyncadd [#allocation3], 4294967264 }
 0x27d   :  { %469 = vsyncpa [#allocation3], 1 }

// kernel: model_spg_forward.11
= control target key start
LH: loop header
LB: loop body
LE: loop exit
PB: predicated region body
PF: predicated region fallthrough
CT: control target
= control target key end

     0   :  { %s1864_s12 = smov 0   ;;  %s2364_s0 = inlined_call_operand.vmem [shape: bf16[2,3,3,128], index: 0, kind: input, shape index: {}]   ;;  %s2365_s1 = inlined_call_operand.vmem [shape: bf16[2,2,128,256], index: 1, kind: input, shape index: {}]   ;;  %s2366_s2 = inlined_call_operand.vmem [shape: f32[1,256], index: 2, kind: input, shape index: {}]   ;;  %s2367_s3 = inlined_call_operand.vmem [shape: bf16[2,2,2,256], index: 3, kind: output, shape index: {}]  }
   0x1 LB: > { %s1479_s13 = sadd.s32 4294967295, %s1840_s12   ;;  %p1483_p0 = scmp.ge.s32.totalorder %s1840_s12, 1  ;;  %s1840_s12 = sphi %s1864_s12, %s13_s12  }
   0x2   : > { %p137_p1 = scmp.lt.s32.totalorder %s1840_s12, 3 }
   0x4   : > { %p138_p2 = pnand %p1483_p0, %p137_p1 }
   0x6   : > { %141 = sbr.rel (%p138_p2) target bundleno = 349 (0x15d), region = 32 }
   0xb   : > { %v1875_v0 = vld [vmem:[%s2365_s1 + $0xf4] ss:$8 sps:$4 sm:$0xff]   ;;  %v2368_v2 = vmov 0   ;;  %v1888_v3 = vld [vmem:[%s2365_s1 + $0xf0] ss:$8 sps:$4 sm:$0xff]   ;;  %p160_p3 = scmp.lt.s32.totalorder %s1479_s13, 1 }
   0xc   : > { %v1880_v1 = vld [vmem:[%s2365_s1 + $0x74] ss:$8 sps:$4 sm:$0xff]   ;;  %333 = vmatprep.mubr.bf16.mxu0 %v2368_v2  ;;  %454 = vmatprep.mubr.bf16.mxu1 %v2368_v2  ;;  %v1893_v4 = vld [vmem:[%s2365_s1 + $0x70] ss:$8 sps:$4 sm:$0xff]   ;;  %v1899_v5 = vld [vmem:[%s2365_s1 + $0xe4] ss:$8 sps:$4 sm:$0xff]  }
   0xd   : > { %301 = vmatprep.subr.bf16.mxu0 %v1875_v0  ;;  %422 = vmatprep.subr.bf16.mxu1 %v1880_v1  ;;  %v1906_v6 = vld [vmem:[%s2365_s1 + $0x64] ss:$8 sps:$4 sm:$0xff]   ;;  %v1911_v7 = vld [vmem:[%s2365_s1 + $0xe0] ss:$8 sps:$4 sm:$0xff]   ;;  %v1923_v9 = vld [vmem:[%s2365_s1 + $0xd4] ss:$8 sps:$4 sm:$0xff]  }
   0xe   : > { %302 = vmatpush1.bf16.msra.mxu0 %v1888_v3  ;;  %423 = vmatpush1.bf16.msra.mxu1 %v1893_v4  ;;  %v1917_v8 = vld [vmem:[%s2365_s1 + $0x60] ss:$8 sps:$4 sm:$0xff]   ;;  %v1930_v10 = vld [vmem:[%s2365_s1 + $0x54] ss:$8 sps:$4 sm:$0xff]   ;;  %v1935_v11 = vld [vmem:[%s2365_s1 + $0xd0] ss:$8 sps:$4 sm:$0xff]  }
   0xf   : > { %303 = vmatprep.subr.bf16.mxu0 %v1899_v5  ;;  %424 = vmatprep.subr.bf16.mxu1 %v1906_v6  ;;  %v1940_v12 = vld [vmem:[%s2365_s1 + $0x50] ss:$8 sps:$4 sm:$0xff]   ;;  %v1947_v13 = vld [vmem:[%s2365_s1 + $0xc4] ss:$8 sps:$4 sm:$0xff]   ;;  %s2384_s13 = smov (!%p160_p3, %s1479_s13), 1 }
  0x10   : > { %v1954_v14 = vld [vmem:[%s2365_s1 + $0x44] ss:$8 sps:$4 sm:$0xff]   ;;  %v1963_v15 = vld [vmem:[%s2365_s1 + $0xc0] ss:$8 sps:$4 sm:$0xff]   ;;  %v1975_v17 = vld [vmem:[%s2365_s1 + $0xb4] ss:$8 sps:$4 sm:$0xff]  }
  0x11   : > { %v1970_v16 = vld [vmem:[%s2365_s1 + $0x40] ss:$8 sps:$4 sm:$0xff]   ;;  %v1982_v18 = vld [vmem:[%s2365_s1 + $0x34] ss:$8 sps:$4 sm:$0xff]   ;;  %s1727_s25 = smul.u32 6, %s2384_s13 }
  0x12   : > { %304 = vmatpush1.bf16.msra.mxu0 %v1911_v7  ;;  %425 = vmatpush1.bf16.msra.mxu1 %v1917_v8  ;;  %v1988_v19 = vld [vmem:[%s2365_s1 + $0xb0] ss:$8 sps:$4 sm:$0xff]   ;;  %v2000_v21 = vld [vmem:[%s2365_s1 + $0xa4] ss:$8 sps:$4 sm:$0xff]   ;;  %v2017_v23 = vld [vmem:[%s2365_s1 + $0xa0] ss:$8 sps:$4 sm:$0xff]  }
  0x13   : > { %305 = vmatprep.subr.bf16.mxu0 %v1923_v9  ;;  %426 = vmatprep.subr.bf16.mxu1 %v1930_v10  ;;  %v1993_v20 = vld [vmem:[%s2365_s1 + $0x30] ss:$8 sps:$4 sm:$0xff]   ;;  %v2007_v22 = vld [vmem:[%s2365_s1 + $0x24] ss:$8 sps:$4 sm:$0xff]   ;;  %s2012_s9 = scalar_lea.vmem %s2364_s0, %s1727_s25  ;;  %v2024_v24 = vld [vmem:[%s2365_s1 + $0x20] ss:$8 sps:$4 sm:$0xff]  }
  0x14   : > { %v2029_v25 = vld [vmem:[%s2365_s1 + $0x94] ss:$8 sps:$4 sm:$0xff]   ;;  %v1502_v27 = vld.sshfl [vmem:[%s2012_s9] sm:$0x3 pattern:$0x76325410] }
  0x15   : > { %v2036_v26 = vld [vmem:[%s2365_s1 + $0x14] ss:$8 sps:$4 sm:$0xff]   ;;  %v2042_v28 = vld [vmem:[%s2365_s1 + $0x90] ss:$8 sps:$4 sm:$0xff]   ;;  %v216_v29 = vshll.u32 %v1502_v27, 16  ;;  %v214_v34 = vshrl.u32 %v1502_v27, 16 }
  0x16   : > { %306 = vmatpush1.bf16.msra.mxu0 %v1935_v11  ;;  %427 = vmatpush1.bf16.msra.mxu1 %v1940_v12  ;;  %v2049_v30 = vld [vmem:[%s2365_s1 + $0x10] ss:$8 sps:$4 sm:$0xff]   ;;  %v2054_v31 = vld [vmem:[%s2365_s1 + $0x84] ss:$8 sps:$4 sm:$0xff]   ;;  %v2066_v33 = vld [vmem:[%s2365_s1 + $0x80] ss:$8 sps:$4 sm:$0xff]  }
  0x17   : > { %307 = vmatprep.subr.bf16.mxu0 %v1947_v13  ;;  %428 = vmatprep.subr.bf16.mxu1 %v1954_v14  ;;  %v2061_v32 = vld [vmem:[%s2365_s1 + $0x4] ss:$8 sps:$4 sm:$0xff]   ;;  %v218_v35 = vrot.slane %v216_v29, 1  ;;  %v2073_v36 = vld [vmem:[%s2365_s1] ss:$8 sps:$4 sm:$0xff]  }
  0x18   : > { %v2078_v37 = vld [vmem:[%s2365_s1 + $0x174] ss:$8 sps:$4 sm:$0xff]   ;;  %v170_v40 = vld [vmem:[%s2012_s9] sm:$0x1]  ;;  %v2091_v41 = vld [vmem:[%s2365_s1 + $0x170] ss:$8 sps:$4 sm:$0xff]  }
  0x19   : > { %v2085_v38 = vld [vmem:[%s2365_s1 + $0x1f4] ss:$8 sps:$4 sm:$0xff]   ;;  %v219_v39 = vor.u32 %v218_v35, %v214_v34  ;;  %v2098_v42 = vld [vmem:[%s2365_s1 + $0x1f0] ss:$8 sps:$4 sm:$0xff]   ;;  %v2103_v43 = vld [vmem:[%s2365_s1 + $0x164] ss:$8 sps:$4 sm:$0xff]  }
  0x1a   : > { %308 = vmatpush1.bf16.msra.mxu0 %v1963_v15  ;;  %429 = vmatpush1.bf16.msra.mxu1 %v1970_v16  ;;  %v2110_v44 = vld [vmem:[%s2365_s1 + $0x1e4] ss:$8 sps:$4 sm:$0xff]   ;;  %v2115_v45 = vld [vmem:[%s2365_s1 + $0x160] ss:$8 sps:$4 sm:$0xff]   ;;  %v2127_v47 = vld [vmem:[%s2365_s1 + $0x154] ss:$8 sps:$4 sm:$0xff]  }
  0x1b   : > { %309 = vmatprep.subr.bf16.mxu0 %v1975_v17  ;;  %430 = vmatprep.subr.bf16.mxu1 %v1982_v18  ;;  %v2122_v46 = vld [vmem:[%s2365_s1 + $0x1e0] ss:$8 sps:$4 sm:$0xff]   ;;  %v2134_v48 = vld [vmem:[%s2365_s1 + $0x1d4] ss:$8 sps:$4 sm:$0xff]   ;;  %v2141_v49 = vld [vmem:[%s2365_s1 + $0x150] ss:$8 sps:$4 sm:$0xff]  }
  0x1c   : > { %v2148_v50 = vld [vmem:[%s2365_s1 + $0x1d0] ss:$8 sps:$4 sm:$0xff]   ;;  %v2153_v51 = vld [vmem:[%s2365_s1 + $0x144] ss:$8 sps:$4 sm:$0xff]   ;;  %v2167_v53 = vld [vmem:[%s2365_s1 + $0x140] ss:$8 sps:$4 sm:$0xff]  }
  0x1d   : > { %v2160_v52 = vld [vmem:[%s2365_s1 + $0x1c4] ss:$8 sps:$4 sm:$0xff]   ;;  %v2172_v54 = vld [vmem:[%s2365_s1 + $0x1c0] ss:$8 sps:$4 sm:$0xff]   ;;  %v2179_v55 = vld [vmem:[%s2365_s1 + $0x134] ss:$8 sps:$4 sm:$0xff]  }
  0x1e   : > { %310 = vmatpush1.bf16.msra.mxu0 %v1988_v19  ;;  %431 = vmatpush1.bf16.msra.mxu1 %v1993_v20  ;;  %v2184_v56 = vld [vmem:[%s2365_s1 + $0x1b4] ss:$8 sps:$4 sm:$0xff]   ;;  %v2191_v57 = vld [vmem:[%s2365_s1 + $0x130] ss:$8 sps:$4 sm:$0xff]   ;;  %v2203_v59 = vld [vmem:[%s2365_s1 + $0x124] ss:$8 sps:$4 sm:$0xff]  }
  0x1f   : > { %311 = vmatprep.subr.bf16.mxu0 %v2000_v21  ;;  %432 = vmatprep.subr.bf16.mxu1 %v2007_v22  ;;  %v2196_v58 = vld [vmem:[%s2365_s1 + $0x1b0] ss:$8 sps:$4 sm:$0xff]   ;;  %v2208_v60 = vld [vmem:[%s2365_s1 + $0x1a4] ss:$8 sps:$4 sm:$0xff]   ;;  %v2213_v61 = vld [vmem:[%s2365_s1 + $0x120] ss:$8 sps:$4 sm:$0xff]  }
  0x20   : > { %2374 = vst [vmem:[#allocation2_spill] sm:$0xff] %v2213_v61  ;;  %v2220_v62 = vld [vmem:[%s2365_s1 + $0x1a0] ss:$8 sps:$4 sm:$0xff]   ;;  %v2228_v27 = vld [vmem:[%s2365_s1 + $0x114] ss:$8 sps:$4 sm:$0xff]  }
  0x21   : > { %2375 = vst [vmem:[#allocation3_spill] sm:$0xff] %v2220_v62  ;;  %v1585_v63 = vld.sshfl [vmem:[%s2012_s9 + $0x2] sm:$0x3 pattern:$0x76325410]  ;;  %2376 = vst [vmem:[#allocation4_spill] sm:$0xff] %v2228_v27 }
  0x22   : > { %312 = vmatpush1.bf16.msra.mxu0 %v2017_v23  ;;  %433 = vmatpush1.bf16.msra.mxu1 %v2024_v24  ;;  %v2233_v29 = vld [vmem:[%s2365_s1 + $0x194] ss:$8 sps:$4 sm:$0xff]   ;;  %v634_v34 = vshll.u32 %v1585_v63, 16  ;;  %v2240_v35 = vld [vmem:[%s2365_s1 + $0x110] ss:$8 sps:$4 sm:$0xff]  }
  0x23   : > { %313 = vmatprep.subr.bf16.mxu0 %v2029_v25  ;;  %434 = vmatprep.subr.bf16.mxu1 %v2036_v26  ;;  %2377 = vst [vmem:[#allocation5_spill] sm:$0xff] %v2233_v29 }
  0x26   : > { %314 = vmatpush1.bf16.msra.mxu0 %v2042_v28  ;;  %435 = vmatpush1.bf16.msra.mxu1 %v2049_v30 }
  0x27   : > { %315 = vmatprep.subr.bf16.mxu0 %v2054_v31  ;;  %436 = vmatprep.subr.bf16.mxu1 %v2061_v32 }
  0x2a   : > { %316 = vmatpush1.bf16.msra.mxu0 %v2066_v33  ;;  %437 = vmatpush1.bf16.msra.mxu1 %v2073_v36 }
  0x2b   : > { %562 = vmatprep.subr.bf16.mxu0 %v2078_v37  ;;  %719 = vmatprep.subr.bf16.mxu1 %v2085_v38 }
  0x2d   : > { %334 = vmatmul.mubr.bf16.vlgmr.msra.gmra.mxu0 %v219_v39  ;;  %455 = vmatmul.mubr.bf16.vlgmr.msra.gmra.mxu1 %v170_v40  ;;  %v2245_v39 = vld [vmem:[%s2365_s1 + $0x190] ss:$8 sps:$4 sm:$0xff]   ;;  %v2252_v40 = vld [vmem:[%s2365_s1 + $0x104] ss:$8 sps:$4 sm:$0xff]  }
  0x2e   : > { %563 = vmatpush1.bf16.msra.mxu0 %v2091_v41  ;;  %720 = vmatpush1.bf16.msra.mxu1 %v2098_v42 }
  0x2f   : > { %564 = vmatprep.subr.bf16.mxu0 %v2103_v43  ;;  %721 = vmatprep.subr.bf16.mxu1 %v2110_v44 }
  0x30   : > { %594 = vmatprep.mubr.bf16.mxu0 %v2368_v2  ;;  %751 = vmatprep.mubr.bf16.mxu1 %v2368_v2  ;;  %v2257_v2 = vld [vmem:[%s2365_s1 + $0x184] ss:$8 sps:$4 sm:$0xff]  }
  0x32   : > { %565 = vmatpush1.bf16.msra.mxu0 %v2115_v45  ;;  %722 = vmatpush1.bf16.msra.mxu1 %v2122_v46 }
  0x33   : > { %566 = vmatprep.subr.bf16.mxu0 %v2127_v47  ;;  %723 = vmatprep.subr.bf16.mxu1 %v2134_v48 }
  0x36   : > { %567 = vmatpush1.bf16.msra.mxu0 %v2141_v49  ;;  %724 = vmatpush1.bf16.msra.mxu1 %v2148_v50 }
  0x37   : > { %568 = vmatprep.subr.bf16.mxu0 %v2153_v51  ;;  %725 = vmatprep.subr.bf16.mxu1 %v2160_v52 }
  0x3a   : > { %569 = vmatpush1.bf16.msra.mxu0 %v2167_v53  ;;  %726 = vmatpush1.bf16.msra.mxu1 %v2172_v54 }
  0x3b   : > { %570 = vmatprep.subr.bf16.mxu0 %v2179_v55  ;;  %727 = vmatprep.subr.bf16.mxu1 %v2184_v56 }
  0x3e   : > { %571 = vmatpush1.bf16.msra.mxu0 %v2191_v57  ;;  %728 = vmatpush1.bf16.msra.mxu1 %v2196_v58 }
  0x3f   : > { %572 = vmatprep.subr.bf16.mxu0 %v2203_v59  ;;  %729 = vmatprep.subr.bf16.mxu1 %v2208_v60 }
  0x42   : > { %573 = vmatpush1.bf16.msra.mxu0 %v2213_v61  ;;  %730 = vmatpush1.bf16.msra.mxu1 %v2220_v62  ;;  %v632_v62 = vshrl.u32 %v1585_v63, 16  ;;  %v636_v61 = vrot.slane %v634_v34, 1  ;;  %v1535_v34 = vld [vmem:[%s2012_s9 + $0x2] sm:$0x1] }
  0x43   : > { %574 = vmatprep.subr.bf16.mxu0 %v2228_v27  ;;  %731 = vmatprep.subr.bf16.mxu1 %v2233_v29  ;;  %v2264_v29 = vld [vmem:[%s2365_s1 + $0x100] ss:$8 sps:$4 sm:$0xff]  }
  0x44   : > { %v2269_v27 = vld [vmem:[%s2365_s1 + $0x180] ss:$8 sps:$4 sm:$0xff]   ;;  %v637_v63 = vor.u32 %v636_v61, %v632_v62  ;;  %v2378_v61 = vmov 0  }
  0x46   : > { %575 = vmatpush1.bf16.msra.mxu0 %v2240_v35  ;;  %732 = vmatpush1.bf16.msra.mxu1 %v2245_v39 }
  0x47   : > { %576 = vmatprep.subr.bf16.mxu0 %v2252_v40  ;;  %733 = vmatprep.subr.bf16.mxu1 %v2257_v2 }
  0x4a   : > { %577 = vmatpush1.bf16.msra.mxu0 %v2264_v29  ;;  %734 = vmatpush1.bf16.msra.mxu1 %v2269_v27 }
  0x4b   : > { %929 = vmatprep.subr.bf16.mxu0 %v1875_v0  ;;  %1050 = vmatprep.subr.bf16.mxu1 %v1880_v1  ;;  %v1604_v0 = vld [vmem:[%s2012_s9 + $0x2] sm:$0x1]  ;;  %v1705_v1 = vld.sshfl [vmem:[%s2012_s9 + $0x4] sm:$0x3 pattern:$0x76325410] }
  0x4d   : > { %595 = vmatmul.mubr.bf16.vlgmr.msra.gmra.mxu0 %v1535_v34  ;;  %752 = vmatmul.mubr.bf16.vlgmr.msra.gmra.mxu1 %v637_v63 }
  0x4e   : > { %930 = vmatpush1.bf16.msra.mxu0 %v1888_v3  ;;  %1051 = vmatpush1.bf16.msra.mxu1 %v1893_v4  ;;  %v1260_v3 = vshll.u32 %v1705_v1, 16  ;;  %v2379_v4 = vld [vmem:[#allocation2_spill] sm:$0xff] }
  0x4f   : > { %931 = vmatprep.subr.bf16.mxu0 %v1899_v5  ;;  %1052 = vmatprep.subr.bf16.mxu1 %v1906_v6  ;;  %v2380_v5 = vld [vmem:[#allocation3_spill] sm:$0xff]  ;;  %v2381_v6 = vld [vmem:[#allocation4_spill] sm:$0xff] }
  0x50   : > { %961 = vmatprep.mubr.bf16.mxu0 %v2378_v61  ;;  %1082 = vmatprep.mubr.bf16.mxu1 %v2378_v61 }
  0x52   : > { %932 = vmatpush1.bf16.msra.mxu0 %v1911_v7  ;;  %1053 = vmatpush1.bf16.msra.mxu1 %v1917_v8  ;;  %v2382_v7 = vld [vmem:[#allocation5_spill] sm:$0xff]  ;;  %v1258_v8 = vshrl.u32 %v1705_v1, 16 }
  0x53   : > { %933 = vmatprep.subr.bf16.mxu0 %v1923_v9  ;;  %1054 = vmatprep.subr.bf16.mxu1 %v1930_v10  ;;  %v1262_v9 = vrot.slane %v1260_v3, 1 }
  0x55   : > { %v1263_v10 = vor.u32 %v1262_v9, %v1258_v8 }
  0x56   : > { %934 = vmatpush1.bf16.msra.mxu0 %v1935_v11  ;;  %1055 = vmatpush1.bf16.msra.mxu1 %v1940_v12  ;;  %v1655_v11 = vld [vmem:[%s2012_s9 + $0x4] sm:$0x1]  ;;  %s1485_s9 = sshll.u32 %s2384_s13, 2 }
  0x57   : > { %935 = vmatprep.subr.bf16.mxu0 %v1947_v13  ;;  %1056 = vmatprep.subr.bf16.mxu1 %v1954_v14  ;;  %s2354_s28 = scalar_lea.vmem %s2367_s3, %s1485_s9 }
  0x5a   : > { %936 = vmatpush1.bf16.msra.mxu0 %v1963_v15  ;;  %1057 = vmatpush1.bf16.msra.mxu1 %v1970_v16 }
  0x5b   : > { %937 = vmatprep.subr.bf16.mxu0 %v1975_v17  ;;  %1058 = vmatprep.subr.bf16.mxu1 %v1982_v18 }
  0x5e   : > { %938 = vmatpush1.bf16.msra.mxu0 %v1988_v19  ;;  %1059 = vmatpush1.bf16.msra.mxu1 %v1993_v20  ;;  %v764_v20 = vlaneseq }
  0x5f   : > { %939 = vmatprep.subr.bf16.mxu0 %v2000_v21  ;;  %1060 = vmatprep.subr.bf16.mxu1 %v2007_v22 }
  0x60   : > { %v765_v21 = vshrl.u32 %v764_v20, 7 }
  0x62   : > { %940 = vmatpush1.bf16.msra.mxu0 %v2017_v23  ;;  %1061 = vmatpush1.bf16.msra.mxu1 %v2024_v24  ;;  %v766_v22 = vsub.s32 0, %v765_v21  ;;  %v770_v24 = vsub.s32 1, %v765_v21 }
  0x63   : > { %941 = vmatprep.subr.bf16.mxu0 %v2029_v25  ;;  %1062 = vmatprep.subr.bf16.mxu1 %v2036_v26 }
  0x66   : > { %942 = vmatpush1.bf16.msra.mxu0 %v2042_v28  ;;  %1063 = vmatpush1.bf16.msra.mxu1 %v2049_v30 }
  0x67   : > { %943 = vmatprep.subr.bf16.mxu0 %v2054_v31  ;;  %1064 = vmatprep.subr.bf16.mxu1 %v2061_v32  ;;  %v1843_v32 = vmov 1966171168  }
  0x6a   : > { %944 = vmatpush1.bf16.msra.mxu0 %v2066_v33  ;;  %1065 = vmatpush1.bf16.msra.mxu1 %v2073_v36  ;;  %v784_v33 = vunpack.c.l.s4 %v1843_v32 }
  0x6b   : > { %1189 = vmatprep.subr.bf16.mxu0 %v2078_v37  ;;  %1345 = vmatprep.subr.bf16.mxu1 %v2085_v38 }
  0x6d   : > { %962 = vmatmul.mubr.bf16.vlgmr.msra.gmra.mxu0 %v637_v63  ;;  %1083 = vmatmul.mubr.bf16.vlgmr.msra.gmra.mxu1 %v1604_v0 }
  0x6e   : > { %1190 = vmatpush1.bf16.msra.mxu0 %v2091_v41  ;;  %1346 = vmatpush1.bf16.msra.mxu1 %v2098_v42 }
  0x6f   : > { %1191 = vmatprep.subr.bf16.mxu0 %v2103_v43  ;;  %1347 = vmatprep.subr.bf16.mxu1 %v2110_v44 }
  0x70   : > { %1221 = vmatprep.mubr.bf16.mxu0 %v2378_v61  ;;  %1377 = vmatprep.mubr.bf16.mxu1 %v2378_v61 }
  0x72   : > { %1192 = vmatpush1.bf16.msra.mxu0 %v2115_v45  ;;  %1348 = vmatpush1.bf16.msra.mxu1 %v2122_v46 }
  0x73   : > { %1193 = vmatprep.subr.bf16.mxu0 %v2127_v47  ;;  %1349 = vmatprep.subr.bf16.mxu1 %v2134_v48  ;;  %v785_v47 = vunpack.c.0.s8 %v784_v33 }
  0x76   : > { %1194 = vmatpush1.bf16.msra.mxu0 %v2141_v49  ;;  %1350 = vmatpush1.bf16.msra.mxu1 %v2148_v50 }
  0x77   : > { %1195 = vmatprep.subr.bf16.mxu0 %v2153_v51  ;;  %1351 = vmatprep.subr.bf16.mxu1 %v2160_v52 }
  0x7a   : > { %1196 = vmatpush1.bf16.msra.mxu0 %v2167_v53  ;;  %1352 = vmatpush1.bf16.msra.mxu1 %v2172_v54  ;;  %v788_v53 = vsub.s32 %v785_v47, %v765_v21 }
  0x7b   : > { %1197 = vmatprep.subr.bf16.mxu0 %v2179_v55  ;;  %1353 = vmatprep.subr.bf16.mxu1 %v2184_v56 }
  0x7e   : > { %1198 = vmatpush1.bf16.msra.mxu0 %v2191_v57  ;;  %1354 = vmatpush1.bf16.msra.mxu1 %v2196_v58 }
  0x7f   : > { %1199 = vmatprep.subr.bf16.mxu0 %v2203_v59  ;;  %1355 = vmatprep.subr.bf16.mxu1 %v2208_v60 }
  0x82   : > { %1200 = vmatpush1.bf16.msra.mxu0 %v2379_v4  ;;  %1356 = vmatpush1.bf16.msra.mxu1 %v2380_v5 }
  0x83   : > { %1201 = vmatprep.subr.bf16.mxu0 %v2381_v6  ;;  %1357 = vmatprep.subr.bf16.mxu1 %v2382_v7 }
  0x86   : > { %1202 = vmatpush1.bf16.msra.mxu0 %v2240_v35  ;;  %1358 = vmatpush1.bf16.msra.mxu1 %v2245_v39  ;;  %v1388_v35 = vld [vmem:[%s2366_s2] sm:$0x3] }
  0x87   : > { %1203 = vmatprep.subr.bf16.mxu0 %v2252_v40  ;;  %1359 = vmatprep.subr.bf16.mxu1 %v2257_v2  ;;  %v762_v2 = vld [vmem:[%s2366_s2] sm:$0x3]  ;;  %v1393_v0 = vrot.slane %v1388_v35, %v766_v22  ;;  %v1397_v6 = vrot.slane %v1388_v35, %v770_v24 }
  0x88   : > { %v767_v31 = vrot.slane %v762_v2, %v766_v22  ;;  %v771_v42 = vrot.slane %v762_v2, %v770_v24 }
  0x8a   : > { %1204 = vmatpush1.bf16.msra.mxu0 %v2264_v29  ;;  %1360 = vmatpush1.bf16.msra.mxu1 %v2269_v27 }
  0x8d   : > { %1222 = vmatmul.mubr.bf16.vlgmr.msra.gmra.mxu0 %v1655_v11  ;;  %1378 = vmatmul.mubr.bf16.vlgmr.msra.gmra.mxu1 %v1263_v10 }
  0xed   : > { %v335_v12 = vpop.f32.mrf.mxu0  ;;  %v456_v13 = vpop.f32.mrf.mxu1 }
  0xee   : > { %v457_v23 = vadd.f32 %v456_v13, %v335_v12 }
  0xef   : > { %v337_v14 = vpop.f32.mrf.mxu0  ;;  %v458_v15 = vpop.f32.mrf.mxu1 }
  0xf0   : > { %v459_v28 = vadd.f32 %v458_v15, %v337_v14 }
  0xf1   : > { %v339_v16 = vpop.f32.mrf.mxu0  ;;  %v460_v17 = vpop.f32.mrf.mxu1 }
  0xf3   : > { %v340_v18 = vpop.f32.mrf.mxu0  ;;  %v461_v19 = vpop.f32.mrf.mxu1 }
 0x10d   : > { %v596_v25 = vpop.f32.mrf.mxu0  ;;  %v753_v26 = vpop.f32.mrf.mxu1 }
 0x10e   : > { %v603_v30 = vadd.f32 %v596_v25, %v457_v23 }
 0x10f   : > { %v598_v36 = vpop.f32.mrf.mxu0  ;;  %v755_v37 = vpop.f32.mrf.mxu1 }
 0x110   : > { %v760_v38 = vadd.f32 %v753_v26, %v603_v30  ;;  %v604_v41 = vadd.f32 %v598_v36, %v459_v28 }
 0x111   : > { %v600_v43 = vpop.f32.mrf.mxu0  ;;  %v757_v44 = vpop.f32.mrf.mxu1 }
 0x112   : > { %v774_v45 = vadd.f32 %v767_v31, %v760_v38  ;;  %v761_v46 = vadd.f32 %v755_v37, %v604_v41 }
 0x113   : > { %v601_v48 = vpop.f32.mrf.mxu0  ;;  %v758_v49 = vpop.f32.mrf.mxu1 }
 0x114   : > { %v775_v50 = vadd.f32 %v771_v42, %v761_v46  ;;  %v776_v51 = vmax.f32 %v774_v45, 0.0 }
 0x116   : > { %v777_v52 = vmax.f32 %v775_v50, 0.0 }
 0x118   : > { %v1602_v54 = vpack.c.bf16 %v777_v52, %v776_v51 }
 0x11a   : > { %v789_v55 = vrot.slane %v1602_v54, %v788_v53 }
 0x11c   : > { %1603 = vst.sshfl [vmem:[%s2354_s28] sm:$0x5 pattern:$0x73625140] %v789_v55 }
 0x12d   : > { %v963_v56 = vpop.f32.mrf.mxu0  ;;  %v1084_v57 = vpop.f32.mrf.mxu1 }
 0x12e   : > { %v1085_v39 = vadd.f32 %v1084_v57, %v963_v56 }
 0x12f   : > { %v965_v58 = vpop.f32.mrf.mxu0  ;;  %v1086_v59 = vpop.f32.mrf.mxu1 }
 0x130   : > { %v1087_v34 = vadd.f32 %v1086_v59, %v965_v58 }
 0x131   : > { %v967_v60 = vpop.f32.mrf.mxu0  ;;  %v1088_v62 = vpop.f32.mrf.mxu1 }
 0x133   : > { %v968_v27 = vpop.f32.mrf.mxu0  ;;  %v1089_v29 = vpop.f32.mrf.mxu1 }
 0x14d   : > { %v1223_v40 = vpop.f32.mrf.mxu0  ;;  %v1379_v63 = vpop.f32.mrf.mxu1 }
 0x14e   : > { %v1230_v61 = vadd.f32 %v1223_v40, %v1085_v39 }
 0x14f   : > { %v1225_v1 = vpop.f32.mrf.mxu0  ;;  %v1381_v3 = vpop.f32.mrf.mxu1 }
 0x150   : > { %v1386_v4 = vadd.f32 %v1379_v63, %v1230_v61  ;;  %v1231_v5 = vadd.f32 %v1225_v1, %v1087_v34 }
 0x151   : > { %v1227_v7 = vpop.f32.mrf.mxu0  ;;  %v1383_v8 = vpop.f32.mrf.mxu1 }
 0x152   : > { %v1400_v9 = vadd.f32 %v1393_v0, %v1386_v4  ;;  %v1387_v10 = vadd.f32 %v1381_v3, %v1231_v5 }
 0x153   : > { %v1228_v11 = vpop.f32.mrf.mxu0  ;;  %v1384_v12 = vpop.f32.mrf.mxu1 }
 0x154   : > { %v1401_v13 = vadd.f32 %v1397_v6, %v1387_v10  ;;  %v1402_v14 = vmax.f32 %v1400_v9, 0.0 }
 0x156   : > { %v1403_v15 = vmax.f32 %v1401_v13, 0.0 }
 0x158   : > { %v1722_v16 = vpack.c.bf16 %v1403_v15, %v1402_v14 }
 0x15a   : > { %v1415_v17 = vrot.slane %v1722_v16, %v788_v53 }
 0x15c   : > { %1726 = vst.sshfl [vmem:[%s2354_s28 + $0x2] sm:$0x5 pattern:$0x73625140] %v1415_v17 }
 0x15d PF: > { %s13_s12 = sadd.s32 1, %s1840_s12  }
 0x15e   : > { %p10_p4 = scmp.ge.s32.totalorder %s13_s12, 4  }
 0x160   :  { %12 = sbr.rel (!%p10_p4) target bundleno = 1 (0x1), region = 68 }

</bundles_post_ra>
